<compile_context>
chip_gen: v6e
topology: v6e:2x2x1
jax: 0.10.0
libtpu: 0.0.40
codegen_flags: <defaults>
</compile_context>

<pallas_src>
import numpy as np

import jax
import jax.numpy as jnp
from jax.experimental import pallas as pl
from jax.experimental.pallas import tpu as pltpu

BN_EPS = 1e-5
MXU_DTYPE = jnp.bfloat16      # MXU operands / activation slabs; math stays f32.


def _pad_to_128(n):
    return ((n + 127) // 128) * 128


# ---------------------------------------------------------------------------
# Fused whole-network kernel (runs once per image, grid=(N,))
# ---------------------------------------------------------------------------
def _build_fused_kernel(stem_cfg, blocks_cfg):
    n_blocks = len(blocks_cfg)

    def kernel(*refs):
        it = iter(refs)
        x_ref = next(it)                                   # (1, Hp0, Kin0_pad)
        stem_w = (next(it), next(it))                      # wm, bias
        blk_w = []
        for cfg in blocks_cfg:
            k = 6 if cfg["has_sc"] else 4
            blk_w.append(tuple(next(it) for _ in range(k)))
        fcw_ref = next(it)
        fcb_ref = next(it)
        o_ref = next(it)                                   # (1, 1, ncls)
        lhs_ref = next(it)                                 # tap staging scratch
        stem_out = next(it)
        blk_scr = [(next(it), next(it)) for _ in range(n_blocks)]   # (mid, out)

        def read_rows(ref, start, size, idx0=None):
            if idx0 is None:
                return ref[start:start + size, :]
            return ref[idx0, start:start + size, :]

        def stage_tap(in_ref, col, start, ho, stride, kp, idx0=None):
            """Copy the row tap (stride 1 or 2) into lhs_ref[:, col:col+kp]."""
            if stride == 1:
                lhs_ref[0:ho, col:col + kp] = read_rows(in_ref, start, ho, idx0)
            else:  # static per-row copies: no strided / HBM relayout needed
                for r in range(ho):
                    lhs_ref[r:r + 1, col:col + kp] = read_rows(
                        in_ref, start + stride * r, 1, idx0)

        def conv_bn(in_ref, wm_ref, b_ref, *, ho, stride, kin_pad, kh, idx0=None):
            """conv (3x3 or 1x1) + folded BN as ONE MXU matmul + bias add."""
            if kh == 3:
                for ky in range(3):
                    stage_tap(in_ref, ky * kin_pad, ky, ho, stride, kin_pad, idx0)
                lhs = lhs_ref[0:ho, 0:3 * kin_pad]
            else:  # 1x1 shortcut conv: single tap starting at padded row 1
                stage_tap(in_ref, 0, 1, ho, stride, kin_pad, idx0)
                lhs = lhs_ref[0:ho, 0:kin_pad]
            return jnp.dot(lhs, wm_ref[...],
                           preferred_element_type=jnp.float32) + b_ref[...]

        def store_padded(dst_ref, y, ho):
            """Write y into the interior rows, keep the pad rows exactly zero."""
            kp = dst_ref.shape[-1]
            z = jnp.zeros((1, kp), dst_ref.dtype)
            dst_ref[0:1, :] = z
            dst_ref[ho + 1:ho + 2, :] = z
            dst_ref[1:1 + ho, :] = y.astype(dst_ref.dtype)

        # ---- stem: conv3x3(stride 1) + BN + ReLU ----
        y = jnp.maximum(
            conv_bn(x_ref, stem_w[0], stem_w[1], ho=stem_cfg["ho"], stride=1,
                    kin_pad=stem_cfg["kin_pad"], kh=3, idx0=0), 0.0)
        store_padded(stem_out, y, stem_cfg["ho"])

        # ---- BasicBlocks (intermediates never leave VMEM) ----
        cur = stem_out
        for cfg, wr, (mid_ref, out_scr) in zip(blocks_cfg, blk_w, blk_scr):
            ho, s = cfg["ho"], cfg["stride"]
            h1 = jnp.maximum(
                conv_bn(cur, wr[0], wr[1], ho=ho, stride=s,
                        kin_pad=cfg["kin_pad"], kh=3), 0.0)
            store_padded(mid_ref, h1, ho)
            acc2 = conv_bn(mid_ref, wr[2], wr[3], ho=ho, stride=1,
                           kin_pad=cfg["kout_pad"], kh=3)
            if cfg["has_sc"]:
                sc = conv_bn(cur, wr[4], wr[5], ho=ho, stride=s,
                             kin_pad=cfg["kin_pad"], kh=1)
            else:  # identity shortcut (stride 1, same channels)
                sc = read_rows(cur, 1, ho).astype(jnp.float32)
            y = jnp.maximum(acc2 + sc, 0.0)
            store_padded(out_scr, y, ho)
            cur = out_scr

        # ---- global average pool + Linear (fused epilogue) ----
        slab = cur[...].astype(jnp.float32)                  # (hp, kpad)
        pooled = jnp.sum(slab, axis=0, keepdims=True)         # pad rows/lanes = 0
        logits = jnp.dot(pooled, fcw_ref[...],
                         preferred_element_type=jnp.float32) + fcb_ref[...]
        o_ref[0] = logits

    return kernel


# ---------------------------------------------------------------------------
# Wrapper-side weight folding (conv taps + stride + padding + BN -> matmul)
# ---------------------------------------------------------------------------
def _col_select(kw, wp_in, wp_out, stride, pad):
    """(kx, x_in_padded, x_out_padded) 0/1 selection tensor (numpy constant)."""
    s = np.zeros((kw, wp_in, wp_out), np.float32)
    for a in range(kw):
        for xo in range(1, wp_out - 1):                 # interior output columns
            xi = stride * (xo - 1) + a - pad + 1        # padded input column
            if 0 <= xi < wp_in:
                s[a, xi, xo] = 1.0
    return s


def _fold_conv_bn(w, bn, wp_in, wp_out, stride, kin_pad, kout_pad):
    """w: (Cout, Cin, kh, kw) torch layout -> (kh*kin_pad, kout_pad) bf16 weight
    (BN scale + kx taps + stride + padding folded in, lanes zero-padded to 128)
    plus a (1, kout_pad) pad-masked f32 bias."""
    cout, cin, kh, kw = w.shape
    pad = 1 if kh == 3 else 0
    sel = _col_select(kw, wp_in, wp_out, stride, pad)
    scale = bn["gamma"] / jnp.sqrt(bn["rvar"] + BN_EPS)            # (Cout,)
    w_eff = w * scale[:, None, None, None]
    m = jnp.einsum("aio,ucya->yicou", jnp.asarray(sel), w_eff)
    m = m.reshape(kh, wp_in * cin, wp_out * cout)
    wm = jnp.zeros((kh, kin_pad, kout_pad), jnp.float32)
    wm = wm.at[:, : wp_in * cin, : wp_out * cout].set(m)
    wm = wm.reshape(kh * kin_pad, kout_pad).astype(MXU_DTYPE)

    colmask = np.zeros((wp_out, 1), np.float32)
    colmask[1:-1] = 1.0
    bias = jnp.asarray(colmask) * (bn["beta"] - bn["rmean"] * scale)[None, :]
    bias = bias.reshape(1, wp_out * cout)
    bias_p = jnp.zeros((1, kout_pad), jnp.float32)
    bias_p = bias_p.at[:, : wp_out * cout].set(bias)
    return wm, bias_p


def _fold_fc(fc_w, fc_b, wp, c, hw, k_pad):
    """Fold the 1/(H*W) average + pad-column mask into the Linear weight."""
    ncls = fc_w.shape[0]
    colmask = np.zeros((wp, 1, 1), np.float32)
    colmask[1:-1] = 1.0
    wb = jnp.asarray(colmask) * jnp.transpose(fc_w)[None, :, :] / float(hw)
    wb = wb.reshape(wp * c, ncls)
    wb_p = jnp.zeros((k_pad, ncls), jnp.float32).at[: wp * c, :].set(wb)
    bb = fc_b.reshape(1, ncls).astype(jnp.float32)
    return wb_p, bb


# ---------------------------------------------------------------------------
# Forward pass (matches ResNet.forward) — a single pallas_call
# ---------------------------------------------------------------------------
def resnet_forward(params, x_nchw):
    x = jnp.transpose(x_nchw, (0, 2, 3, 1))                 # NCHW -> NHWC
    n, h, w, c_in = x.shape
    hp0, wp0 = h + 2, w + 2
    kin0 = wp0 * c_in
    kin0_pad = _pad_to_128(kin0)
    # Lane-dense padded slab (N, H+2, (W+2)*C), lanes zero-padded to 128, bf16.
    xp = jnp.pad(x, ((0, 0), (1, 1), (1, 1), (0, 0))).reshape(n, hp0, kin0)
    xp = jnp.pad(xp, ((0, 0), (0, 0), (0, kin0_pad - kin0))).astype(MXU_DTYPE)

    weights = []

    # --- stem ---
    c_stem = params["conv1"].shape[0]
    k_stem_pad = _pad_to_128(wp0 * c_stem)
    wm_s, b_s = _fold_conv_bn(params["conv1"], params["bn1"],
                              wp0, wp0, 1, kin0_pad, k_stem_pad)
    weights += [wm_s, b_s]
    stem_cfg = dict(ho=h, hp_out=hp0, kin_pad=kin0_pad, kout_pad=k_stem_pad)

    # --- BasicBlocks ---
    blocks_cfg = []
    cur_hp, cur_wp, cur_kpad = hp0, wp0, k_stem_pad
    for layer in params["layers"]:
        for blk in layer:
            s = blk["stride"]
            cout = blk["conv1"].shape[0]
            ho = (cur_hp - 2 - 1) // s + 1
            wo = (cur_wp - 2 - 1) // s + 1
            hp_o, wp_o = ho + 2, wo + 2
            kmid_pad = _pad_to_128(wp_o * cout)
            wm1, b1 = _fold_conv_bn(blk["conv1"], blk["bn1"],
                                    cur_wp, wp_o, s, cur_kpad, kmid_pad)
            wm2, b2 = _fold_conv_bn(blk["conv2"], blk["bn2"],
                                    wp_o, wp_o, 1, kmid_pad, kmid_pad)
            has_sc = "sc_conv" in blk
            if not has_sc:
                assert s == 1 and cur_kpad == kmid_pad
            weights += [wm1, b1, wm2, b2]
            if has_sc:
                wsc, bsc = _fold_conv_bn(blk["sc_conv"], blk["sc_bn"],
                                         cur_wp, wp_o, s, cur_kpad, kmid_pad)
                weights += [wsc, bsc]
            blocks_cfg.append(dict(stride=s, has_sc=has_sc, ho=ho, hp_out=hp_o,
                                   kin_pad=cur_kpad, kout_pad=kmid_pad))
            cur_hp, cur_wp, cur_kpad = hp_o, wp_o, kmid_pad

    # --- pool + FC folded weights ---
    c_final = params["layers"][-1][-1]["conv2"].shape[0]
    ncls = params["fc_w"].shape[0]
    hw_final = (cur_hp - 2) * (cur_wp - 2)
    fcw, fcb = _fold_fc(params["fc_w"], params["fc_b"],
                        cur_wp, c_final, hw_final, cur_kpad)
    weights += [fcw, fcb]

    # --- VMEM scratch: tap-staging buffer + every inter-stage activation slab ---
    max_ho = max([stem_cfg["ho"]] + [b["ho"] for b in blocks_cfg])
    max_k = max([stem_cfg["kin_pad"], stem_cfg["kout_pad"]]
                + [b["kin_pad"] for b in blocks_cfg]
                + [b["kout_pad"] for b in blocks_cfg])
    scratch = [pltpu.VMEM((max_ho, 3 * max_k), MXU_DTYPE),                      # LHS taps
               pltpu.VMEM((stem_cfg["hp_out"], stem_cfg["kout_pad"]), MXU_DTYPE)]
    for b in blocks_cfg:
        scratch.append(pltpu.VMEM((b["hp_out"], b["kout_pad"]), MXU_DTYPE))    # mid
        scratch.append(pltpu.VMEM((b["hp_out"], b["kout_pad"]), MXU_DTYPE))    # out

    kernel = _build_fused_kernel(stem_cfg, blocks_cfg)
    weight_specs = [pl.BlockSpec(wt.shape, lambda i: (0, 0)) for wt in weights]
    out = pl.pallas_call(
        kernel,
        grid=(n,),
        out_shape=jax.ShapeDtypeStruct((n, 1, ncls), jnp.float32),
        in_specs=[pl.BlockSpec((1, hp0, kin0_pad), lambda i: (i, 0, 0))]
                 + weight_specs,
        out_specs=pl.BlockSpec((1, 1, ncls), lambda i: (i, 0, 0)),
        scratch_shapes=scratch,
        compiler_params=pltpu.CompilerParams(
            dimension_semantics=("parallel",)),
    )(xp, *weights)
    return out.reshape(n, ncls)


# ---------------------------------------------------------------------------
# Deterministic parameter construction (mirrors the PyTorch __init__ shapes)
# ---------------------------------------------------------------------------
def _init_conv(key, cout, cin, k):
    fan = cin * k * k
    return jax.random.normal(key, (cout, cin, k, k), jnp.float32) / jnp.sqrt(fan)


def _init_bn(key, c):
    k1, k2, k3, k4 = jax.random.split(key, 4)
    return dict(
        gamma=1.0 + 0.1 * jax.random.normal(k1, (c,), jnp.float32),
        beta=0.1 * jax.random.normal(k2, (c,), jnp.float32),
        rmean=0.1 * jax.random.normal(k3, (c,), jnp.float32),
        rvar=1.0 + 0.1 * jax.random.uniform(k4, (c,), jnp.float32),
    )


def init_params(key, nf=4, num_blocks=(2, 2), num_classes=10):
    keys = iter(jax.random.split(key, 128))
    params = {
        "conv1": _init_conv(next(keys), nf, 3, 3),
        "bn1": _init_bn(next(keys), nf),
    }
    in_planes = nf
    layers = []
    for i, (stride0, nb) in enumerate(zip((1, 2), num_blocks)):
        planes = nf * (2 ** i)
        strides = [stride0] + [1] * (nb - 1)
        blocks = []
        for s in strides:
            blk = {
                "stride": s,
                "conv1": _init_conv(next(keys), planes, in_planes, 3),
                "bn1": _init_bn(next(keys), planes),
                "conv2": _init_conv(next(keys), planes, planes, 3),
                "bn2": _init_bn(next(keys), planes),
            }
            if s != 1 or in_planes != planes:
                blk["sc_conv"] = _init_conv(next(keys), planes, in_planes, 1)
                blk["sc_bn"] = _init_bn(next(keys), planes)
            blocks.append(blk)
            in_planes = planes
        layers.append(blocks)
    params["layers"] = layers
    params["fc_w"] = jax.random.normal(next(keys), (num_classes, nf * 2),
                                       jnp.float32) / jnp.sqrt(nf * 2)
    params["fc_b"] = 0.1 * jax.random.normal(next(keys), (num_classes,),
                                             jnp.float32)
    return params


if __name__ == "__main__":
    key = jax.random.PRNGKey(0)
    pkey, xkey = jax.random.split(key)
    params = init_params(pkey, nf=4, num_blocks=(2, 2), num_classes=10)
    x = jax.random.normal(xkey, (2, 3, 16, 16), jnp.float32)   # NCHW, like PyTorch

    fwd = jax.jit(lambda inp: resnet_forward(params, inp))
    out = jax.block_until_ready(fwd(x))
    assert out.shape == (2, 10) and out.dtype == jnp.float32
    assert bool(jnp.all(jnp.isfinite(out)))
    print("KERNEL_OK")
</pallas_src>

<mosaic_0001>
module attributes {stable_mosaic.version = 11 : i64} {
  func.func @kernel(%arg0: i32, %arg1: memref<1x18x128xbf16, #tpu.memory_space<vmem>>, %arg2: memref<384x128xbf16, #tpu.memory_space<vmem>>, %arg3: memref<1x128xf32, #tpu.memory_space<vmem>>, %arg4: memref<384x128xbf16, #tpu.memory_space<vmem>>, %arg5: memref<1x128xf32, #tpu.memory_space<vmem>>, %arg6: memref<384x128xbf16, #tpu.memory_space<vmem>>, %arg7: memref<1x128xf32, #tpu.memory_space<vmem>>, %arg8: memref<384x128xbf16, #tpu.memory_space<vmem>>, %arg9: memref<1x128xf32, #tpu.memory_space<vmem>>, %arg10: memref<384x128xbf16, #tpu.memory_space<vmem>>, %arg11: memref<1x128xf32, #tpu.memory_space<vmem>>, %arg12: memref<384x128xbf16, #tpu.memory_space<vmem>>, %arg13: memref<1x128xf32, #tpu.memory_space<vmem>>, %arg14: memref<384x128xbf16, #tpu.memory_space<vmem>>, %arg15: memref<1x128xf32, #tpu.memory_space<vmem>>, %arg16: memref<128x128xbf16, #tpu.memory_space<vmem>>, %arg17: memref<1x128xf32, #tpu.memory_space<vmem>>, %arg18: memref<384x128xbf16, #tpu.memory_space<vmem>>, %arg19: memref<1x128xf32, #tpu.memory_space<vmem>>, %arg20: memref<384x128xbf16, #tpu.memory_space<vmem>>, %arg21: memref<1x128xf32, #tpu.memory_space<vmem>>, %arg22: memref<128x10xf32, #tpu.memory_space<vmem>>, %arg23: memref<1x10xf32, #tpu.memory_space<vmem>>, %arg24: memref<1x1x10xf32, #tpu.memory_space<vmem>>, %arg25: memref<16x384xbf16, #tpu.memory_space<vmem>>, %arg26: memref<18x128xbf16, #tpu.memory_space<vmem>>, %arg27: memref<18x128xbf16, #tpu.memory_space<vmem>>, %arg28: memref<18x128xbf16, #tpu.memory_space<vmem>>, %arg29: memref<18x128xbf16, #tpu.memory_space<vmem>>, %arg30: memref<18x128xbf16, #tpu.memory_space<vmem>>, %arg31: memref<10x128xbf16, #tpu.memory_space<vmem>>, %arg32: memref<10x128xbf16, #tpu.memory_space<vmem>>, %arg33: memref<10x128xbf16, #tpu.memory_space<vmem>>, %arg34: memref<10x128xbf16, #tpu.memory_space<vmem>>) attributes {dimension_semantics = [#tpu.dimension_semantics<parallel>], iteration_bounds = array<i64: 2>, scalar_prefetch = 0 : i64, scratch_operands = 10 : i64, tpu.core_type = #tpu.core_type<tc>, window_params = [{transform_indices = @transform_0, window_bounds = array<i64: 1, 18, 128>}, {pipeline_mode = #tpu.pipeline_mode<synchronous>, transform_indices = @transform_1, window_bounds = array<i64: 384, 128>}, {pipeline_mode = #tpu.pipeline_mode<synchronous>, transform_indices = @transform_2, window_bounds = array<i64: 1, 128>}, {pipeline_mode = #tpu.pipeline_mode<synchronous>, transform_indices = @transform_3, window_bounds = array<i64: 384, 128>}, {pipeline_mode = #tpu.pipeline_mode<synchronous>, transform_indices = @transform_4, window_bounds = array<i64: 1, 128>}, {pipeline_mode = #tpu.pipeline_mode<synchronous>, transform_indices = @transform_5, window_bounds = array<i64: 384, 128>}, {pipeline_mode = #tpu.pipeline_mode<synchronous>, transform_indices = @transform_6, window_bounds = array<i64: 1, 128>}, {pipeline_mode = #tpu.pipeline_mode<synchronous>, transform_indices = @transform_7, window_bounds = array<i64: 384, 128>}, {pipeline_mode = #tpu.pipeline_mode<synchronous>, transform_indices = @transform_8, window_bounds = array<i64: 1, 128>}, {pipeline_mode = #tpu.pipeline_mode<synchronous>, transform_indices = @transform_9, window_bounds = array<i64: 384, 128>}, {pipeline_mode = #tpu.pipeline_mode<synchronous>, transform_indices = @transform_10, window_bounds = array<i64: 1, 128>}, {pipeline_mode = #tpu.pipeline_mode<synchronous>, transform_indices = @transform_11, window_bounds = array<i64: 384, 128>}, {pipeline_mode = #tpu.pipeline_mode<synchronous>, transform_indices = @transform_12, window_bounds = array<i64: 1, 128>}, {pipeline_mode = #tpu.pipeline_mode<synchronous>, transform_indices = @transform_13, window_bounds = array<i64: 384, 128>}, {pipeline_mode = #tpu.pipeline_mode<synchronous>, transform_indices = @transform_14, window_bounds = array<i64: 1, 128>}, {pipeline_mode = #tpu.pipeline_mode<synchronous>, transform_indices = @transform_15, window_bounds = array<i64: 128, 128>}, {pipeline_mode = #tpu.pipeline_mode<synchronous>, transform_indices = @transform_16, window_bounds = array<i64: 1, 128>}, {pipeline_mode = #tpu.pipeline_mode<synchronous>, transform_indices = @transform_17, window_bounds = array<i64: 384, 128>}, {pipeline_mode = #tpu.pipeline_mode<synchronous>, transform_indices = @transform_18, window_bounds = array<i64: 1, 128>}, {pipeline_mode = #tpu.pipeline_mode<synchronous>, transform_indices = @transform_19, window_bounds = array<i64: 384, 128>}, {pipeline_mode = #tpu.pipeline_mode<synchronous>, transform_indices = @transform_20, window_bounds = array<i64: 1, 128>}, {pipeline_mode = #tpu.pipeline_mode<synchronous>, transform_indices = @transform_21, window_bounds = array<i64: 128, 10>}, {pipeline_mode = #tpu.pipeline_mode<synchronous>, transform_indices = @transform_22, window_bounds = array<i64: 1, 10>}, {transform_indices = @transform_23, window_bounds = array<i64: 1, 1, 10>}]} {
    %c0 = arith.constant 0 : index
    %c0_0 = arith.constant 0 : index
    %c0_1 = arith.constant 0 : index
    %0 = vector.load %arg1[%c0, %c0_0, %c0_1] : memref<1x18x128xbf16, #tpu.memory_space<vmem>>, vector<1x16x128xbf16>
    %1 = vector.shape_cast %0 : vector<1x16x128xbf16> to vector<16x128xbf16>
    %c0_2 = arith.constant 0 : index
    %c0_3 = arith.constant 0 : index
    %2 = vector.load %arg25[%c0_2, %c0_3] : memref<16x384xbf16, #tpu.memory_space<vmem>>, vector<16x128xbf16>
    tpu.vector_store %arg25[%c0_2, %c0_3], %1 {strides = array<i32>} : memref<16x384xbf16, #tpu.memory_space<vmem>>, vector<16x128xbf16>,
    %c0_4 = arith.constant 0 : index
    %c1 = arith.constant 1 : index
    %c0_5 = arith.constant 0 : index
    %3 = vector.load %arg1[%c0_4, %c1, %c0_5] : memref<1x18x128xbf16, #tpu.memory_space<vmem>>, vector<1x16x128xbf16>
    %4 = vector.shape_cast %3 : vector<1x16x128xbf16> to vector<16x128xbf16>
    %c0_6 = arith.constant 0 : index
    %c128 = arith.constant 128 : index
    %5 = vector.load %arg25[%c0_6, %c128] : memref<16x384xbf16, #tpu.memory_space<vmem>>, vector<16x128xbf16>
    tpu.vector_store %arg25[%c0_6, %c128], %4 {strides = array<i32>} : memref<16x384xbf16, #tpu.memory_space<vmem>>, vector<16x128xbf16>,
    %c0_7 = arith.constant 0 : index
    %c2 = arith.constant 2 : index
    %c0_8 = arith.constant 0 : index
    %6 = vector.load %arg1[%c0_7, %c2, %c0_8] : memref<1x18x128xbf16, #tpu.memory_space<vmem>>, vector<1x16x128xbf16>
    %7 = vector.shape_cast %6 : vector<1x16x128xbf16> to vector<16x128xbf16>
    %c0_9 = arith.constant 0 : index
    %c256 = arith.constant 256 : index
    %8 = vector.load %arg25[%c0_9, %c256] : memref<16x384xbf16, #tpu.memory_space<vmem>>, vector<16x128xbf16>
    tpu.vector_store %arg25[%c0_9, %c256], %7 {strides = array<i32>} : memref<16x384xbf16, #tpu.memory_space<vmem>>, vector<16x128xbf16>,
    %c0_10 = arith.constant 0 : index
    %c0_11 = arith.constant 0 : index
    %9 = vector.load %arg25[%c0_10, %c0_11] : memref<16x384xbf16, #tpu.memory_space<vmem>>, vector<16x384xbf16>
    %c0_12 = arith.constant 0 : index
    %c0_13 = arith.constant 0 : index
    %10 = vector.load %arg2[%c0_12, %c0_13] : memref<384x128xbf16, #tpu.memory_space<vmem>>, vector<384x128xbf16>
    %cst = arith.constant dense<0.000000e+00> : vector<16x128xf32>
    %11 = tpu.matmul %9, %10, %cst {dimension_numbers = #tpu.dot_dimension_numbers<[1], [0], [0], [1], [0, 0, 1, 1], [], []>} : vector<16x384xbf16>, vector<384x128xbf16>, vector<16x128xf32> -> vector<16x128xf32>
    %c0_14 = arith.constant 0 : index
    %c0_15 = arith.constant 0 : index
    %12 = vector.load %arg3[%c0_14, %c0_15] : memref<1x128xf32, #tpu.memory_space<vmem>>, vector<1x128xf32>
    %13 = vector.broadcast %12 : vector<1x128xf32> to vector<16x128xf32>
    %14 = arith.addf %11, %13 : vector<16x128xf32>
    %cst_16 = arith.constant 0.000000e+00 : f32
    %15 = vector.broadcast %cst_16 : f32 to vector<16x128xf32>
    %16 = arith.maximumf %14, %15 : vector<16x128xf32>
    %cst_17 = arith.constant 0.000000e+00 : bf16
    %17 = vector.broadcast %cst_17 : bf16 to vector<1x128xbf16>
    %c0_18 = arith.constant 0 : index
    %c0_19 = arith.constant 0 : index
    %18 = vector.load %arg26[%c0_18, %c0_19] : memref<18x128xbf16, #tpu.memory_space<vmem>>, vector<1x128xbf16>
    tpu.vector_store %arg26[%c0_18, %c0_19], %17 {strides = array<i32>} : memref<18x128xbf16, #tpu.memory_space<vmem>>, vector<1x128xbf16>,
    %c17 = arith.constant 17 : index
    %c0_20 = arith.constant 0 : index
    %19 = vector.load %arg26[%c17, %c0_20] : memref<18x128xbf16, #tpu.memory_space<vmem>>, vector<1x128xbf16>
    tpu.vector_store %arg26[%c17, %c0_20], %17 {strides = array<i32>} : memref<18x128xbf16, #tpu.memory_space<vmem>>, vector<1x128xbf16>,
    %20 = arith.truncf %16 : vector<16x128xf32> to vector<16x128xbf16>
    %c1_21 = arith.constant 1 : index
    %c0_22 = arith.constant 0 : index
    %21 = vector.load %arg26[%c1_21, %c0_22] : memref<18x128xbf16, #tpu.memory_space<vmem>>, vector<16x128xbf16>
    tpu.vector_store %arg26[%c1_21, %c0_22], %20 {strides = array<i32>} : memref<18x128xbf16, #tpu.memory_space<vmem>>, vector<16x128xbf16>,
    %c0_23 = arith.constant 0 : index
    %c0_24 = arith.constant 0 : index
    %22 = vector.load %arg26[%c0_23, %c0_24] : memref<18x128xbf16, #tpu.memory_space<vmem>>, vector<16x128xbf16>
    %c0_25 = arith.constant 0 : index
    %c0_26 = arith.constant 0 : index
    %23 = vector.load %arg25[%c0_25, %c0_26] : memref<16x384xbf16, #tpu.memory_space<vmem>>, vector<16x128xbf16>
    tpu.vector_store %arg25[%c0_25, %c0_26], %22 {strides = array<i32>} : memref<16x384xbf16, #tpu.memory_space<vmem>>, vector<16x128xbf16>,
    %c1_27 = arith.constant 1 : index
    %c0_28 = arith.constant 0 : index
    %24 = vector.load %arg26[%c1_27, %c0_28] : memref<18x128xbf16, #tpu.memory_space<vmem>>, vector<16x128xbf16>
    %c0_29 = arith.constant 0 : index
    %c128_30 = arith.constant 128 : index
    %25 = vector.load %arg25[%c0_29, %c128_30] : memref<16x384xbf16, #tpu.memory_space<vmem>>, vector<16x128xbf16>
    tpu.vector_store %arg25[%c0_29, %c128_30], %24 {strides = array<i32>} : memref<16x384xbf16, #tpu.memory_space<vmem>>, vector<16x128xbf16>,
    %c2_31 = arith.constant 2 : index
    %c0_32 = arith.constant 0 : index
    %26 = vector.load %arg26[%c2_31, %c0_32] : memref<18x128xbf16, #tpu.memory_space<vmem>>, vector<16x128xbf16>
    %c0_33 = arith.constant 0 : index
    %c256_34 = arith.constant 256 : index
    %27 = vector.load %arg25[%c0_33, %c256_34] : memref<16x384xbf16, #tpu.memory_space<vmem>>, vector<16x128xbf16>
    tpu.vector_store %arg25[%c0_33, %c256_34], %26 {strides = array<i32>} : memref<16x384xbf16, #tpu.memory_space<vmem>>, vector<16x128xbf16>,
    %c0_35 = arith.constant 0 : index
    %c0_36 = arith.constant 0 : index
    %28 = vector.load %arg25[%c0_35, %c0_36] : memref<16x384xbf16, #tpu.memory_space<vmem>>, vector<16x384xbf16>
    %c0_37 = arith.constant 0 : index
    %c0_38 = arith.constant 0 : index
    %29 = vector.load %arg4[%c0_37, %c0_38] : memref<384x128xbf16, #tpu.memory_space<vmem>>, vector<384x128xbf16>
    %cst_39 = arith.constant dense<0.000000e+00> : vector<16x128xf32>
    %30 = tpu.matmul %28, %29, %cst_39 {dimension_numbers = #tpu.dot_dimension_numbers<[1], [0], [0], [1], [0, 0, 1, 1], [], []>} : vector<16x384xbf16>, vector<384x128xbf16>, vector<16x128xf32> -> vector<16x128xf32>
    %c0_40 = arith.constant 0 : index
    %c0_41 = arith.constant 0 : index
    %31 = vector.load %arg5[%c0_40, %c0_41] : memref<1x128xf32, #tpu.memory_space<vmem>>, vector<1x128xf32>
    %32 = vector.broadcast %31 : vector<1x128xf32> to vector<16x128xf32>
    %33 = arith.addf %30, %32 : vector<16x128xf32>
    %cst_42 = arith.constant 0.000000e+00 : f32
    %34 = vector.broadcast %cst_42 : f32 to vector<16x128xf32>
    %35 = arith.maximumf %33, %34 : vector<16x128xf32>
    %cst_43 = arith.constant 0.000000e+00 : bf16
    %36 = vector.broadcast %cst_43 : bf16 to vector<1x128xbf16>
    %c0_44 = arith.constant 0 : index
    %c0_45 = arith.constant 0 : index
    %37 = vector.load %arg27[%c0_44, %c0_45] : memref<18x128xbf16, #tpu.memory_space<vmem>>, vector<1x128xbf16>
    tpu.vector_store %arg27[%c0_44, %c0_45], %36 {strides = array<i32>} : memref<18x128xbf16, #tpu.memory_space<vmem>>, vector<1x128xbf16>,
    %c17_46 = arith.constant 17 : index
    %c0_47 = arith.constant 0 : index
    %38 = vector.load %arg27[%c17_46, %c0_47] : memref<18x128xbf16, #tpu.memory_space<vmem>>, vector<1x128xbf16>
    tpu.vector_store %arg27[%c17_46, %c0_47], %36 {strides = array<i32>} : memref<18x128xbf16, #tpu.memory_space<vmem>>, vector<1x128xbf16>,
    %39 = arith.truncf %35 : vector<16x128xf32> to vector<16x128xbf16>
    %c1_48 = arith.constant 1 : index
    %c0_49 = arith.constant 0 : index
    %40 = vector.load %arg27[%c1_48, %c0_49] : memref<18x128xbf16, #tpu.memory_space<vmem>>, vector<16x128xbf16>
    tpu.vector_store %arg27[%c1_48, %c0_49], %39 {strides = array<i32>} : memref<18x128xbf16, #tpu.memory_space<vmem>>, vector<16x128xbf16>,
    %c0_50 = arith.constant 0 : index
    %c0_51 = arith.constant 0 : index
    %41 = vector.load %arg27[%c0_50, %c0_51] : memref<18x128xbf16, #tpu.memory_space<vmem>>, vector<16x128xbf16>
    %c0_52 = arith.constant 0 : index
    %c0_53 = arith.constant 0 : index
    %42 = vector.load %arg25[%c0_52, %c0_53] : memref<16x384xbf16, #tpu.memory_space<vmem>>, vector<16x128xbf16>
    tpu.vector_store %arg25[%c0_52, %c0_53], %41 {strides = array<i32>} : memref<16x384xbf16, #tpu.memory_space<vmem>>, vector<16x128xbf16>,
    %c1_54 = arith.constant 1 : index
    %c0_55 = arith.constant 0 : index
    %43 = vector.load %arg27[%c1_54, %c0_55] : memref<18x128xbf16, #tpu.memory_space<vmem>>, vector<16x128xbf16>
    %c0_56 = arith.constant 0 : index
    %c128_57 = arith.constant 128 : index
    %44 = vector.load %arg25[%c0_56, %c128_57] : memref<16x384xbf16, #tpu.memory_space<vmem>>, vector<16x128xbf16>
    tpu.vector_store %arg25[%c0_56, %c128_57], %43 {strides = array<i32>} : memref<16x384xbf16, #tpu.memory_space<vmem>>, vector<16x128xbf16>,
    %c2_58 = arith.constant 2 : index
    %c0_59 = arith.constant 0 : index
    %45 = vector.load %arg27[%c2_58, %c0_59] : memref<18x128xbf16, #tpu.memory_space<vmem>>, vector<16x128xbf16>
    %c0_60 = arith.constant 0 : index
    %c256_61 = arith.constant 256 : index
    %46 = vector.load %arg25[%c0_60, %c256_61] : memref<16x384xbf16, #tpu.memory_space<vmem>>, vector<16x128xbf16>
    tpu.vector_store %arg25[%c0_60, %c256_61], %45 {strides = array<i32>} : memref<16x384xbf16, #tpu.memory_space<vmem>>, vector<16x128xbf16>,
    %c0_62 = arith.constant 0 : index
    %c0_63 = arith.constant 0 : index
    %47 = vector.load %arg25[%c0_62, %c0_63] : memref<16x384xbf16, #tpu.memory_space<vmem>>, vector<16x384xbf16>
    %c0_64 = arith.constant 0 : index
    %c0_65 = arith.constant 0 : index
    %48 = vector.load %arg6[%c0_64, %c0_65] : memref<384x128xbf16, #tpu.memory_space<vmem>>, vector<384x128xbf16>
    %cst_66 = arith.constant dense<0.000000e+00> : vector<16x128xf32>
    %49 = tpu.matmul %47, %48, %cst_66 {dimension_numbers = #tpu.dot_dimension_numbers<[1], [0], [0], [1], [0, 0, 1, 1], [], []>} : vector<16x384xbf16>, vector<384x128xbf16>, vector<16x128xf32> -> vector<16x128xf32>
    %c0_67 = arith.constant 0 : index
    %c0_68 = arith.constant 0 : index
    %50 = vector.load %arg7[%c0_67, %c0_68] : memref<1x128xf32, #tpu.memory_space<vmem>>, vector<1x128xf32>
    %51 = vector.broadcast %50 : vector<1x128xf32> to vector<16x128xf32>
    %52 = arith.addf %49, %51 : vector<16x128xf32>
    %c1_69 = arith.constant 1 : index
    %c0_70 = arith.constant 0 : index
    %53 = vector.load %arg26[%c1_69, %c0_70] : memref<18x128xbf16, #tpu.memory_space<vmem>>, vector<16x128xbf16>
    %54 = arith.extf %53 : vector<16x128xbf16> to vector<16x128xf32>
    %55 = arith.addf %52, %54 : vector<16x128xf32>
    %cst_71 = arith.constant 0.000000e+00 : f32
    %56 = vector.broadcast %cst_71 : f32 to vector<16x128xf32>
    %57 = arith.maximumf %55, %56 : vector<16x128xf32>
    %cst_72 = arith.constant 0.000000e+00 : bf16
    %58 = vector.broadcast %cst_72 : bf16 to vector<1x128xbf16>
    %c0_73 = arith.constant 0 : index
    %c0_74 = arith.constant 0 : index
    %59 = vector.load %arg28[%c0_73, %c0_74] : memref<18x128xbf16, #tpu.memory_space<vmem>>, vector<1x128xbf16>
    tpu.vector_store %arg28[%c0_73, %c0_74], %58 {strides = array<i32>} : memref<18x128xbf16, #tpu.memory_space<vmem>>, vector<1x128xbf16>,
    %c17_75 = arith.constant 17 : index
    %c0_76 = arith.constant 0 : index
    %60 = vector.load %arg28[%c17_75, %c0_76] : memref<18x128xbf16, #tpu.memory_space<vmem>>, vector<1x128xbf16>
    tpu.vector_store %arg28[%c17_75, %c0_76], %58 {strides = array<i32>} : memref<18x128xbf16, #tpu.memory_space<vmem>>, vector<1x128xbf16>,
    %61 = arith.truncf %57 : vector<16x128xf32> to vector<16x128xbf16>
    %c1_77 = arith.constant 1 : index
    %c0_78 = arith.constant 0 : index
    %62 = vector.load %arg28[%c1_77, %c0_78] : memref<18x128xbf16, #tpu.memory_space<vmem>>, vector<16x128xbf16>
    tpu.vector_store %arg28[%c1_77, %c0_78], %61 {strides = array<i32>} : memref<18x128xbf16, #tpu.memory_space<vmem>>, vector<16x128xbf16>,
    %c0_79 = arith.constant 0 : index
    %c0_80 = arith.constant 0 : index
    %63 = vector.load %arg28[%c0_79, %c0_80] : memref<18x128xbf16, #tpu.memory_space<vmem>>, vector<16x128xbf16>
    %c0_81 = arith.constant 0 : index
    %c0_82 = arith.constant 0 : index
    %64 = vector.load %arg25[%c0_81, %c0_82] : memref<16x384xbf16, #tpu.memory_space<vmem>>, vector<16x128xbf16>
    tpu.vector_store %arg25[%c0_81, %c0_82], %63 {strides = array<i32>} : memref<16x384xbf16, #tpu.memory_space<vmem>>, vector<16x128xbf16>,
    %c1_83 = arith.constant 1 : index
    %c0_84 = arith.constant 0 : index
    %65 = vector.load %arg28[%c1_83, %c0_84] : memref<18x128xbf16, #tpu.memory_space<vmem>>, vector<16x128xbf16>
    %c0_85 = arith.constant 0 : index
    %c128_86 = arith.constant 128 : index
    %66 = vector.load %arg25[%c0_85, %c128_86] : memref<16x384xbf16, #tpu.memory_space<vmem>>, vector<16x128xbf16>
    tpu.vector_store %arg25[%c0_85, %c128_86], %65 {strides = array<i32>} : memref<16x384xbf16, #tpu.memory_space<vmem>>, vector<16x128xbf16>,
    %c2_87 = arith.constant 2 : index
    %c0_88 = arith.constant 0 : index
    %67 = vector.load %arg28[%c2_87, %c0_88] : memref<18x128xbf16, #tpu.memory_space<vmem>>, vector<16x128xbf16>
    %c0_89 = arith.constant 0 : index
    %c256_90 = arith.constant 256 : index
    %68 = vector.load %arg25[%c0_89, %c256_90] : memref<16x384xbf16, #tpu.memory_space<vmem>>, vector<16x128xbf16>
    tpu.vector_store %arg25[%c0_89, %c256_90], %67 {strides = array<i32>} : memref<16x384xbf16, #tpu.memory_space<vmem>>, vector<16x128xbf16>,
    %c0_91 = arith.constant 0 : index
    %c0_92 = arith.constant 0 : index
    %69 = vector.load %arg25[%c0_91, %c0_92] : memref<16x384xbf16, #tpu.memory_space<vmem>>, vector<16x384xbf16>
    %c0_93 = arith.constant 0 : index
    %c0_94 = arith.constant 0 : index
    %70 = vector.load %arg8[%c0_93, %c0_94] : memref<384x128xbf16, #tpu.memory_space<vmem>>, vector<384x128xbf16>
    %cst_95 = arith.constant dense<0.000000e+00> : vector<16x128xf32>
    %71 = tpu.matmul %69, %70, %cst_95 {dimension_numbers = #tpu.dot_dimension_numbers<[1], [0], [0], [1], [0, 0, 1, 1], [], []>} : vector<16x384xbf16>, vector<384x128xbf16>, vector<16x128xf32> -> vector<16x128xf32>
    %c0_96 = arith.constant 0 : index
    %c0_97 = arith.constant 0 : index
    %72 = vector.load %arg9[%c0_96, %c0_97] : memref<1x128xf32, #tpu.memory_space<vmem>>, vector<1x128xf32>
    %73 = vector.broadcast %72 : vector<1x128xf32> to vector<16x128xf32>
    %74 = arith.addf %71, %73 : vector<16x128xf32>
    %cst_98 = arith.constant 0.000000e+00 : f32
    %75 = vector.broadcast %cst_98 : f32 to vector<16x128xf32>
    %76 = arith.maximumf %74, %75 : vector<16x128xf32>
    %cst_99 = arith.constant 0.000000e+00 : bf16
    %77 = vector.broadcast %cst_99 : bf16 to vector<1x128xbf16>
    %c0_100 = arith.constant 0 : index
    %c0_101 = arith.constant 0 : index
    %78 = vector.load %arg29[%c0_100, %c0_101] : memref<18x128xbf16, #tpu.memory_space<vmem>>, vector<1x128xbf16>
    tpu.vector_store %arg29[%c0_100, %c0_101], %77 {strides = array<i32>} : memref<18x128xbf16, #tpu.memory_space<vmem>>, vector<1x128xbf16>,
    %c17_102 = arith.constant 17 : index
    %c0_103 = arith.constant 0 : index
    %79 = vector.load %arg29[%c17_102, %c0_103] : memref<18x128xbf16, #tpu.memory_space<vmem>>, vector<1x128xbf16>
    tpu.vector_store %arg29[%c17_102, %c0_103], %77 {strides = array<i32>} : memref<18x128xbf16, #tpu.memory_space<vmem>>, vector<1x128xbf16>,
    %80 = arith.truncf %76 : vector<16x128xf32> to vector<16x128xbf16>
    %c1_104 = arith.constant 1 : index
    %c0_105 = arith.constant 0 : index
    %81 = vector.load %arg29[%c1_104, %c0_105] : memref<18x128xbf16, #tpu.memory_space<vmem>>, vector<16x128xbf16>
    tpu.vector_store %arg29[%c1_104, %c0_105], %80 {strides = array<i32>} : memref<18x128xbf16, #tpu.memory_space<vmem>>, vector<16x128xbf16>,
    %c0_106 = arith.constant 0 : index
    %c0_107 = arith.constant 0 : index
    %82 = vector.load %arg29[%c0_106, %c0_107] : memref<18x128xbf16, #tpu.memory_space<vmem>>, vector<16x128xbf16>
    %c0_108 = arith.constant 0 : index
    %c0_109 = arith.constant 0 : index
    %83 = vector.load %arg25[%c0_108, %c0_109] : memref<16x384xbf16, #tpu.memory_space<vmem>>, vector<16x128xbf16>
    tpu.vector_store %arg25[%c0_108, %c0_109], %82 {strides = array<i32>} : memref<16x384xbf16, #tpu.memory_space<vmem>>, vector<16x128xbf16>,
    %c1_110 = arith.constant 1 : index
    %c0_111 = arith.constant 0 : index
    %84 = vector.load %arg29[%c1_110, %c0_111] : memref<18x128xbf16, #tpu.memory_space<vmem>>, vector<16x128xbf16>
    %c0_112 = arith.constant 0 : index
    %c128_113 = arith.constant 128 : index
    %85 = vector.load %arg25[%c0_112, %c128_113] : memref<16x384xbf16, #tpu.memory_space<vmem>>, vector<16x128xbf16>
    tpu.vector_store %arg25[%c0_112, %c128_113], %84 {strides = array<i32>} : memref<16x384xbf16, #tpu.memory_space<vmem>>, vector<16x128xbf16>,
    %c2_114 = arith.constant 2 : index
    %c0_115 = arith.constant 0 : index
    %86 = vector.load %arg29[%c2_114, %c0_115] : memref<18x128xbf16, #tpu.memory_space<vmem>>, vector<16x128xbf16>
    %c0_116 = arith.constant 0 : index
    %c256_117 = arith.constant 256 : index
    %87 = vector.load %arg25[%c0_116, %c256_117] : memref<16x384xbf16, #tpu.memory_space<vmem>>, vector<16x128xbf16>
    tpu.vector_store %arg25[%c0_116, %c256_117], %86 {strides = array<i32>} : memref<16x384xbf16, #tpu.memory_space<vmem>>, vector<16x128xbf16>,
    %c0_118 = arith.constant 0 : index
    %c0_119 = arith.constant 0 : index
    %88 = vector.load %arg25[%c0_118, %c0_119] : memref<16x384xbf16, #tpu.memory_space<vmem>>, vector<16x384xbf16>
    %c0_120 = arith.constant 0 : index
    %c0_121 = arith.constant 0 : index
    %89 = vector.load %arg10[%c0_120, %c0_121] : memref<384x128xbf16, #tpu.memory_space<vmem>>, vector<384x128xbf16>
    %cst_122 = arith.constant dense<0.000000e+00> : vector<16x128xf32>
    %90 = tpu.matmul %88, %89, %cst_122 {dimension_numbers = #tpu.dot_dimension_numbers<[1], [0], [0], [1], [0, 0, 1, 1], [], []>} : vector<16x384xbf16>, vector<384x128xbf16>, vector<16x128xf32> -> vector<16x128xf32>
    %c0_123 = arith.constant 0 : index
    %c0_124 = arith.constant 0 : index
    %91 = vector.load %arg11[%c0_123, %c0_124] : memref<1x128xf32, #tpu.memory_space<vmem>>, vector<1x128xf32>
    %92 = vector.broadcast %91 : vector<1x128xf32> to vector<16x128xf32>
    %93 = arith.addf %90, %92 : vector<16x128xf32>
    %c1_125 = arith.constant 1 : index
    %c0_126 = arith.constant 0 : index
    %94 = vector.load %arg28[%c1_125, %c0_126] : memref<18x128xbf16, #tpu.memory_space<vmem>>, vector<16x128xbf16>
    %95 = arith.extf %94 : vector<16x128xbf16> to vector<16x128xf32>
    %96 = arith.addf %93, %95 : vector<16x128xf32>
    %cst_127 = arith.constant 0.000000e+00 : f32
    %97 = vector.broadcast %cst_127 : f32 to vector<16x128xf32>
    %98 = arith.maximumf %96, %97 : vector<16x128xf32>
    %cst_128 = arith.constant 0.000000e+00 : bf16
    %99 = vector.broadcast %cst_128 : bf16 to vector<1x128xbf16>
    %c0_129 = arith.constant 0 : index
    %c0_130 = arith.constant 0 : index
    %100 = vector.load %arg30[%c0_129, %c0_130] : memref<18x128xbf16, #tpu.memory_space<vmem>>, vector<1x128xbf16>
    tpu.vector_store %arg30[%c0_129, %c0_130], %99 {strides = array<i32>} : memref<18x128xbf16, #tpu.memory_space<vmem>>, vector<1x128xbf16>,
    %c17_131 = arith.constant 17 : index
    %c0_132 = arith.constant 0 : index
    %101 = vector.load %arg30[%c17_131, %c0_132] : memref<18x128xbf16, #tpu.memory_space<vmem>>, vector<1x128xbf16>
    tpu.vector_store %arg30[%c17_131, %c0_132], %99 {strides = array<i32>} : memref<18x128xbf16, #tpu.memory_space<vmem>>, vector<1x128xbf16>,
    %102 = arith.truncf %98 : vector<16x128xf32> to vector<16x128xbf16>
    %c1_133 = arith.constant 1 : index
    %c0_134 = arith.constant 0 : index
    %103 = vector.load %arg30[%c1_133, %c0_134] : memref<18x128xbf16, #tpu.memory_space<vmem>>, vector<16x128xbf16>
    tpu.vector_store %arg30[%c1_133, %c0_134], %102 {strides = array<i32>} : memref<18x128xbf16, #tpu.memory_space<vmem>>, vector<16x128xbf16>,
    %c0_135 = arith.constant 0 : index
    %c0_136 = arith.constant 0 : index
    %104 = vector.load %arg30[%c0_135, %c0_136] : memref<18x128xbf16, #tpu.memory_space<vmem>>, vector<1x128xbf16>
    %c0_137 = arith.constant 0 : index
    %c0_138 = arith.constant 0 : index
    %105 = vector.load %arg25[%c0_137, %c0_138] : memref<16x384xbf16, #tpu.memory_space<vmem>>, vector<1x128xbf16>
    tpu.vector_store %arg25[%c0_137, %c0_138], %104 {strides = array<i32>} : memref<16x384xbf16, #tpu.memory_space<vmem>>, vector<1x128xbf16>,
    %c2_139 = arith.constant 2 : index
    %c0_140 = arith.constant 0 : index
    %106 = vector.load %arg30[%c2_139, %c0_140] : memref<18x128xbf16, #tpu.memory_space<vmem>>, vector<1x128xbf16>
    %c1_141 = arith.constant 1 : index
    %c0_142 = arith.constant 0 : index
    %107 = vector.load %arg25[%c1_141, %c0_142] : memref<16x384xbf16, #tpu.memory_space<vmem>>, vector<1x128xbf16>
    tpu.vector_store %arg25[%c1_141, %c0_142], %106 {strides = array<i32>} : memref<16x384xbf16, #tpu.memory_space<vmem>>, vector<1x128xbf16>,
    %c4 = arith.constant 4 : index
    %c0_143 = arith.constant 0 : index
    %108 = vector.load %arg30[%c4, %c0_143] : memref<18x128xbf16, #tpu.memory_space<vmem>>, vector<1x128xbf16>
    %c2_144 = arith.constant 2 : index
    %c0_145 = arith.constant 0 : index
    %109 = vector.load %arg25[%c2_144, %c0_145] : memref<16x384xbf16, #tpu.memory_space<vmem>>, vector<1x128xbf16>
    tpu.vector_store %arg25[%c2_144, %c0_145], %108 {strides = array<i32>} : memref<16x384xbf16, #tpu.memory_space<vmem>>, vector<1x128xbf16>,
    %c6 = arith.constant 6 : index
    %c0_146 = arith.constant 0 : index
    %110 = vector.load %arg30[%c6, %c0_146] : memref<18x128xbf16, #tpu.memory_space<vmem>>, vector<1x128xbf16>
    %c3 = arith.constant 3 : index
    %c0_147 = arith.constant 0 : index
    %111 = vector.load %arg25[%c3, %c0_147] : memref<16x384xbf16, #tpu.memory_space<vmem>>, vector<1x128xbf16>
    tpu.vector_store %arg25[%c3, %c0_147], %110 {strides = array<i32>} : memref<16x384xbf16, #tpu.memory_space<vmem>>, vector<1x128xbf16>,
    %c8 = arith.constant 8 : index
    %c0_148 = arith.constant 0 : index
    %112 = vector.load %arg30[%c8, %c0_148] : memref<18x128xbf16, #tpu.memory_space<vmem>>, vector<1x128xbf16>
    %c4_149 = arith.constant 4 : index
    %c0_150 = arith.constant 0 : index
    %113 = vector.load %arg25[%c4_149, %c0_150] : memref<16x384xbf16, #tpu.memory_space<vmem>>, vector<1x128xbf16>
    tpu.vector_store %arg25[%c4_149, %c0_150], %112 {strides = array<i32>} : memref<16x384xbf16, #tpu.memory_space<vmem>>, vector<1x128xbf16>,
    %c10 = arith.constant 10 : index
    %c0_151 = arith.constant 0 : index
    %114 = vector.load %arg30[%c10, %c0_151] : memref<18x128xbf16, #tpu.memory_space<vmem>>, vector<1x128xbf16>
    %c5 = arith.constant 5 : index
    %c0_152 = arith.constant 0 : index
    %115 = vector.load %arg25[%c5, %c0_152] : memref<16x384xbf16, #tpu.memory_space<vmem>>, vector<1x128xbf16>
    tpu.vector_store %arg25[%c5, %c0_152], %114 {strides = array<i32>} : memref<16x384xbf16, #tpu.memory_space<vmem>>, vector<1x128xbf16>,
    %c12 = arith.constant 12 : index
    %c0_153 = arith.constant 0 : index
    %116 = vector.load %arg30[%c12, %c0_153] : memref<18x128xbf16, #tpu.memory_space<vmem>>, vector<1x128xbf16>
    %c6_154 = arith.constant 6 : index
    %c0_155 = arith.constant 0 : index
    %117 = vector.load %arg25[%c6_154, %c0_155] : memref<16x384xbf16, #tpu.memory_space<vmem>>, vector<1x128xbf16>
    tpu.vector_store %arg25[%c6_154, %c0_155], %116 {strides = array<i32>} : memref<16x384xbf16, #tpu.memory_space<vmem>>, vector<1x128xbf16>,
    %c14 = arith.constant 14 : index
    %c0_156 = arith.constant 0 : index
    %118 = vector.load %arg30[%c14, %c0_156] : memref<18x128xbf16, #tpu.memory_space<vmem>>, vector<1x128xbf16>
    %c7 = arith.constant 7 : index
    %c0_157 = arith.constant 0 : index
    %119 = vector.load %arg25[%c7, %c0_157] : memref<16x384xbf16, #tpu.memory_space<vmem>>, vector<1x128xbf16>
    tpu.vector_store %arg25[%c7, %c0_157], %118 {strides = array<i32>} : memref<16x384xbf16, #tpu.memory_space<vmem>>, vector<1x128xbf16>,
    %c1_158 = arith.constant 1 : index
    %c0_159 = arith.constant 0 : index
    %120 = vector.load %arg30[%c1_158, %c0_159] : memref<18x128xbf16, #tpu.memory_space<vmem>>, vector<1x128xbf16>
    %c0_160 = arith.constant 0 : index
    %c128_161 = arith.constant 128 : index
    %121 = vector.load %arg25[%c0_160, %c128_161] : memref<16x384xbf16, #tpu.memory_space<vmem>>, vector<1x128xbf16>
    tpu.vector_store %arg25[%c0_160, %c128_161], %120 {strides = array<i32>} : memref<16x384xbf16, #tpu.memory_space<vmem>>, vector<1x128xbf16>,
    %c3_162 = arith.constant 3 : index
    %c0_163 = arith.constant 0 : index
    %122 = vector.load %arg30[%c3_162, %c0_163] : memref<18x128xbf16, #tpu.memory_space<vmem>>, vector<1x128xbf16>
    %c1_164 = arith.constant 1 : index
    %c128_165 = arith.constant 128 : index
    %123 = vector.load %arg25[%c1_164, %c128_165] : memref<16x384xbf16, #tpu.memory_space<vmem>>, vector<1x128xbf16>
    tpu.vector_store %arg25[%c1_164, %c128_165], %122 {strides = array<i32>} : memref<16x384xbf16, #tpu.memory_space<vmem>>, vector<1x128xbf16>,
    %c5_166 = arith.constant 5 : index
    %c0_167 = arith.constant 0 : index
    %124 = vector.load %arg30[%c5_166, %c0_167] : memref<18x128xbf16, #tpu.memory_space<vmem>>, vector<1x128xbf16>
    %c2_168 = arith.constant 2 : index
    %c128_169 = arith.constant 128 : index
    %125 = vector.load %arg25[%c2_168, %c128_169] : memref<16x384xbf16, #tpu.memory_space<vmem>>, vector<1x128xbf16>
    tpu.vector_store %arg25[%c2_168, %c128_169], %124 {strides = array<i32>} : memref<16x384xbf16, #tpu.memory_space<vmem>>, vector<1x128xbf16>,
    %c7_170 = arith.constant 7 : index
    %c0_171 = arith.constant 0 : index
    %126 = vector.load %arg30[%c7_170, %c0_171] : memref<18x128xbf16, #tpu.memory_space<vmem>>, vector<1x128xbf16>
    %c3_172 = arith.constant 3 : index
    %c128_173 = arith.constant 128 : index
    %127 = vector.load %arg25[%c3_172, %c128_173] : memref<16x384xbf16, #tpu.memory_space<vmem>>, vector<1x128xbf16>
    tpu.vector_store %arg25[%c3_172, %c128_173], %126 {strides = array<i32>} : memref<16x384xbf16, #tpu.memory_space<vmem>>, vector<1x128xbf16>,
    %c9 = arith.constant 9 : index
    %c0_174 = arith.constant 0 : index
    %128 = vector.load %arg30[%c9, %c0_174] : memref<18x128xbf16, #tpu.memory_space<vmem>>, vector<1x128xbf16>
    %c4_175 = arith.constant 4 : index
    %c128_176 = arith.constant 128 : index
    %129 = vector.load %arg25[%c4_175, %c128_176] : memref<16x384xbf16, #tpu.memory_space<vmem>>, vector<1x128xbf16>
    tpu.vector_store %arg25[%c4_175, %c128_176], %128 {strides = array<i32>} : memref<16x384xbf16, #tpu.memory_space<vmem>>, vector<1x128xbf16>,
    %c11 = arith.constant 11 : index
    %c0_177 = arith.constant 0 : index
    %130 = vector.load %arg30[%c11, %c0_177] : memref<18x128xbf16, #tpu.memory_space<vmem>>, vector<1x128xbf16>
    %c5_178 = arith.constant 5 : index
    %c128_179 = arith.constant 128 : index
    %131 = vector.load %arg25[%c5_178, %c128_179] : memref<16x384xbf16, #tpu.memory_space<vmem>>, vector<1x128xbf16>
    tpu.vector_store %arg25[%c5_178, %c128_179], %130 {strides = array<i32>} : memref<16x384xbf16, #tpu.memory_space<vmem>>, vector<1x128xbf16>,
    %c13 = arith.constant 13 : index
    %c0_180 = arith.constant 0 : index
    %132 = vector.load %arg30[%c13, %c0_180] : memref<18x128xbf16, #tpu.memory_space<vmem>>, vector<1x128xbf16>
    %c6_181 = arith.constant 6 : index
    %c128_182 = arith.constant 128 : index
    %133 = vector.load %arg25[%c6_181, %c128_182] : memref<16x384xbf16, #tpu.memory_space<vmem>>, vector<1x128xbf16>
    tpu.vector_store %arg25[%c6_181, %c128_182], %132 {strides = array<i32>} : memref<16x384xbf16, #tpu.memory_space<vmem>>, vector<1x128xbf16>,
    %c15 = arith.constant 15 : index
    %c0_183 = arith.constant 0 : index
    %134 = vector.load %arg30[%c15, %c0_183] : memref<18x128xbf16, #tpu.memory_space<vmem>>, vector<1x128xbf16>
    %c7_184 = arith.constant 7 : index
    %c128_185 = arith.constant 128 : index
    %135 = vector.load %arg25[%c7_184, %c128_185] : memref<16x384xbf16, #tpu.memory_space<vmem>>, vector<1x128xbf16>
    tpu.vector_store %arg25[%c7_184, %c128_185], %134 {strides = array<i32>} : memref<16x384xbf16, #tpu.memory_space<vmem>>, vector<1x128xbf16>,
    %c2_186 = arith.constant 2 : index
    %c0_187 = arith.constant 0 : index
    %136 = vector.load %arg30[%c2_186, %c0_187] : memref<18x128xbf16, #tpu.memory_space<vmem>>, vector<1x128xbf16>
    %c0_188 = arith.constant 0 : index
    %c256_189 = arith.constant 256 : index
    %137 = vector.load %arg25[%c0_188, %c256_189] : memref<16x384xbf16, #tpu.memory_space<vmem>>, vector<1x128xbf16>
    tpu.vector_store %arg25[%c0_188, %c256_189], %136 {strides = array<i32>} : memref<16x384xbf16, #tpu.memory_space<vmem>>, vector<1x128xbf16>,
    %c4_190 = arith.constant 4 : index
    %c0_191 = arith.constant 0 : index
    %138 = vector.load %arg30[%c4_190, %c0_191] : memref<18x128xbf16, #tpu.memory_space<vmem>>, vector<1x128xbf16>
    %c1_192 = arith.constant 1 : index
    %c256_193 = arith.constant 256 : index
    %139 = vector.load %arg25[%c1_192, %c256_193] : memref<16x384xbf16, #tpu.memory_space<vmem>>, vector<1x128xbf16>
    tpu.vector_store %arg25[%c1_192, %c256_193], %138 {strides = array<i32>} : memref<16x384xbf16, #tpu.memory_space<vmem>>, vector<1x128xbf16>,
    %c6_194 = arith.constant 6 : index
    %c0_195 = arith.constant 0 : index
    %140 = vector.load %arg30[%c6_194, %c0_195] : memref<18x128xbf16, #tpu.memory_space<vmem>>, vector<1x128xbf16>
    %c2_196 = arith.constant 2 : index
    %c256_197 = arith.constant 256 : index
    %141 = vector.load %arg25[%c2_196, %c256_197] : memref<16x384xbf16, #tpu.memory_space<vmem>>, vector<1x128xbf16>
    tpu.vector_store %arg25[%c2_196, %c256_197], %140 {strides = array<i32>} : memref<16x384xbf16, #tpu.memory_space<vmem>>, vector<1x128xbf16>,
    %c8_198 = arith.constant 8 : index
    %c0_199 = arith.constant 0 : index
    %142 = vector.load %arg30[%c8_198, %c0_199] : memref<18x128xbf16, #tpu.memory_space<vmem>>, vector<1x128xbf16>
    %c3_200 = arith.constant 3 : index
    %c256_201 = arith.constant 256 : index
    %143 = vector.load %arg25[%c3_200, %c256_201] : memref<16x384xbf16, #tpu.memory_space<vmem>>, vector<1x128xbf16>
    tpu.vector_store %arg25[%c3_200, %c256_201], %142 {strides = array<i32>} : memref<16x384xbf16, #tpu.memory_space<vmem>>, vector<1x128xbf16>,
    %c10_202 = arith.constant 10 : index
    %c0_203 = arith.constant 0 : index
    %144 = vector.load %arg30[%c10_202, %c0_203] : memref<18x128xbf16, #tpu.memory_space<vmem>>, vector<1x128xbf16>
    %c4_204 = arith.constant 4 : index
    %c256_205 = arith.constant 256 : index
    %145 = vector.load %arg25[%c4_204, %c256_205] : memref<16x384xbf16, #tpu.memory_space<vmem>>, vector<1x128xbf16>
    tpu.vector_store %arg25[%c4_204, %c256_205], %144 {strides = array<i32>} : memref<16x384xbf16, #tpu.memory_space<vmem>>, vector<1x128xbf16>,
    %c12_206 = arith.constant 12 : index
    %c0_207 = arith.constant 0 : index
    %146 = vector.load %arg30[%c12_206, %c0_207] : memref<18x128xbf16, #tpu.memory_space<vmem>>, vector<1x128xbf16>
    %c5_208 = arith.constant 5 : index
    %c256_209 = arith.constant 256 : index
    %147 = vector.load %arg25[%c5_208, %c256_209] : memref<16x384xbf16, #tpu.memory_space<vmem>>, vector<1x128xbf16>
    tpu.vector_store %arg25[%c5_208, %c256_209], %146 {strides = array<i32>} : memref<16x384xbf16, #tpu.memory_space<vmem>>, vector<1x128xbf16>,
    %c14_210 = arith.constant 14 : index
    %c0_211 = arith.constant 0 : index
    %148 = vector.load %arg30[%c14_210, %c0_211] : memref<18x128xbf16, #tpu.memory_space<vmem>>, vector<1x128xbf16>
    %c6_212 = arith.constant 6 : index
    %c256_213 = arith.constant 256 : index
    %149 = vector.load %arg25[%c6_212, %c256_213] : memref<16x384xbf16, #tpu.memory_space<vmem>>, vector<1x128xbf16>
    tpu.vector_store %arg25[%c6_212, %c256_213], %148 {strides = array<i32>} : memref<16x384xbf16, #tpu.memory_space<vmem>>, vector<1x128xbf16>,
    %c16 = arith.constant 16 : index
    %c0_214 = arith.constant 0 : index
    %150 = vector.load %arg30[%c16, %c0_214] : memref<18x128xbf16, #tpu.memory_space<vmem>>, vector<1x128xbf16>
    %c7_215 = arith.constant 7 : index
    %c256_216 = arith.constant 256 : index
    %151 = vector.load %arg25[%c7_215, %c256_216] : memref<16x384xbf16, #tpu.memory_space<vmem>>, vector<1x128xbf16>
    tpu.vector_store %arg25[%c7_215, %c256_216], %150 {strides = array<i32>} : memref<16x384xbf16, #tpu.memory_space<vmem>>, vector<1x128xbf16>,
    %c0_217 = arith.constant 0 : index
    %c0_218 = arith.constant 0 : index
    %152 = vector.load %arg25[%c0_217, %c0_218] : memref<16x384xbf16, #tpu.memory_space<vmem>>, vector<8x384xbf16>
    %c0_219 = arith.constant 0 : index
    %c0_220 = arith.constant 0 : index
    %153 = vector.load %arg12[%c0_219, %c0_220] : memref<384x128xbf16, #tpu.memory_space<vmem>>, vector<384x128xbf16>
    %cst_221 = arith.constant dense<0.000000e+00> : vector<8x128xf32>
    %154 = tpu.matmul %152, %153, %cst_221 {dimension_numbers = #tpu.dot_dimension_numbers<[1], [0], [0], [1], [0, 0, 1, 1], [], []>} : vector<8x384xbf16>, vector<384x128xbf16>, vector<8x128xf32> -> vector<8x128xf32>
    %c0_222 = arith.constant 0 : index
    %c0_223 = arith.constant 0 : index
    %155 = vector.load %arg13[%c0_222, %c0_223] : memref<1x128xf32, #tpu.memory_space<vmem>>, vector<1x128xf32>
    %156 = vector.broadcast %155 : vector<1x128xf32> to vector<8x128xf32>
    %157 = arith.addf %154, %156 : vector<8x128xf32>
    %cst_224 = arith.constant 0.000000e+00 : f32
    %158 = vector.broadcast %cst_224 : f32 to vector<8x128xf32>
    %159 = arith.maximumf %157, %158 : vector<8x128xf32>
    %cst_225 = arith.constant 0.000000e+00 : bf16
    %160 = vector.broadcast %cst_225 : bf16 to vector<1x128xbf16>
    %c0_226 = arith.constant 0 : index
    %c0_227 = arith.constant 0 : index
    %161 = vector.load %arg31[%c0_226, %c0_227] : memref<10x128xbf16, #tpu.memory_space<vmem>>, vector<1x128xbf16>
    tpu.vector_store %arg31[%c0_226, %c0_227], %160 {strides = array<i32>} : memref<10x128xbf16, #tpu.memory_space<vmem>>, vector<1x128xbf16>,
    %c9_228 = arith.constant 9 : index
    %c0_229 = arith.constant 0 : index
    %162 = vector.load %arg31[%c9_228, %c0_229] : memref<10x128xbf16, #tpu.memory_space<vmem>>, vector<1x128xbf16>
    tpu.vector_store %arg31[%c9_228, %c0_229], %160 {strides = array<i32>} : memref<10x128xbf16, #tpu.memory_space<vmem>>, vector<1x128xbf16>,
    %163 = arith.truncf %159 : vector<8x128xf32> to vector<8x128xbf16>
    %c1_230 = arith.constant 1 : index
    %c0_231 = arith.constant 0 : index
    %164 = vector.load %arg31[%c1_230, %c0_231] : memref<10x128xbf16, #tpu.memory_space<vmem>>, vector<8x128xbf16>
    tpu.vector_store %arg31[%c1_230, %c0_231], %163 {strides = array<i32>} : memref<10x128xbf16, #tpu.memory_space<vmem>>, vector<8x128xbf16>,
    %c0_232 = arith.constant 0 : index
    %c0_233 = arith.constant 0 : index
    %165 = vector.load %arg31[%c0_232, %c0_233] : memref<10x128xbf16, #tpu.memory_space<vmem>>, vector<8x128xbf16>
    %c0_234 = arith.constant 0 : index
    %c0_235 = arith.constant 0 : index
    %166 = vector.load %arg25[%c0_234, %c0_235] : memref<16x384xbf16, #tpu.memory_space<vmem>>, vector<8x128xbf16>
    tpu.vector_store %arg25[%c0_234, %c0_235], %165 {strides = array<i32>} : memref<16x384xbf16, #tpu.memory_space<vmem>>, vector<8x128xbf16>,
    %c1_236 = arith.constant 1 : index
    %c0_237 = arith.constant 0 : index
    %167 = vector.load %arg31[%c1_236, %c0_237] : memref<10x128xbf16, #tpu.memory_space<vmem>>, vector<8x128xbf16>
    %c0_238 = arith.constant 0 : index
    %c128_239 = arith.constant 128 : index
    %168 = vector.load %arg25[%c0_238, %c128_239] : memref<16x384xbf16, #tpu.memory_space<vmem>>, vector<8x128xbf16>
    tpu.vector_store %arg25[%c0_238, %c128_239], %167 {strides = array<i32>} : memref<16x384xbf16, #tpu.memory_space<vmem>>, vector<8x128xbf16>,
    %c2_240 = arith.constant 2 : index
    %c0_241 = arith.constant 0 : index
    %169 = vector.load %arg31[%c2_240, %c0_241] : memref<10x128xbf16, #tpu.memory_space<vmem>>, vector<8x128xbf16>
    %c0_242 = arith.constant 0 : index
    %c256_243 = arith.constant 256 : index
    %170 = vector.load %arg25[%c0_242, %c256_243] : memref<16x384xbf16, #tpu.memory_space<vmem>>, vector<8x128xbf16>
    tpu.vector_store %arg25[%c0_242, %c256_243], %169 {strides = array<i32>} : memref<16x384xbf16, #tpu.memory_space<vmem>>, vector<8x128xbf16>,
    %c0_244 = arith.constant 0 : index
    %c0_245 = arith.constant 0 : index
    %171 = vector.load %arg25[%c0_244, %c0_245] : memref<16x384xbf16, #tpu.memory_space<vmem>>, vector<8x384xbf16>
    %c0_246 = arith.constant 0 : index
    %c0_247 = arith.constant 0 : index
    %172 = vector.load %arg14[%c0_246, %c0_247] : memref<384x128xbf16, #tpu.memory_space<vmem>>, vector<384x128xbf16>
    %cst_248 = arith.constant dense<0.000000e+00> : vector<8x128xf32>
    %173 = tpu.matmul %171, %172, %cst_248 {dimension_numbers = #tpu.dot_dimension_numbers<[1], [0], [0], [1], [0, 0, 1, 1], [], []>} : vector<8x384xbf16>, vector<384x128xbf16>, vector<8x128xf32> -> vector<8x128xf32>
    %c0_249 = arith.constant 0 : index
    %c0_250 = arith.constant 0 : index
    %174 = vector.load %arg15[%c0_249, %c0_250] : memref<1x128xf32, #tpu.memory_space<vmem>>, vector<1x128xf32>
    %175 = vector.broadcast %174 : vector<1x128xf32> to vector<8x128xf32>
    %176 = arith.addf %173, %175 : vector<8x128xf32>
    %c1_251 = arith.constant 1 : index
    %c0_252 = arith.constant 0 : index
    %177 = vector.load %arg30[%c1_251, %c0_252] : memref<18x128xbf16, #tpu.memory_space<vmem>>, vector<1x128xbf16>
    %c0_253 = arith.constant 0 : index
    %c0_254 = arith.constant 0 : index
    %178 = vector.load %arg25[%c0_253, %c0_254] : memref<16x384xbf16, #tpu.memory_space<vmem>>, vector<1x128xbf16>
    tpu.vector_store %arg25[%c0_253, %c0_254], %177 {strides = array<i32>} : memref<16x384xbf16, #tpu.memory_space<vmem>>, vector<1x128xbf16>,
    %c3_255 = arith.constant 3 : index
    %c0_256 = arith.constant 0 : index
    %179 = vector.load %arg30[%c3_255, %c0_256] : memref<18x128xbf16, #tpu.memory_space<vmem>>, vector<1x128xbf16>
    %c1_257 = arith.constant 1 : index
    %c0_258 = arith.constant 0 : index
    %180 = vector.load %arg25[%c1_257, %c0_258] : memref<16x384xbf16, #tpu.memory_space<vmem>>, vector<1x128xbf16>
    tpu.vector_store %arg25[%c1_257, %c0_258], %179 {strides = array<i32>} : memref<16x384xbf16, #tpu.memory_space<vmem>>, vector<1x128xbf16>,
    %c5_259 = arith.constant 5 : index
    %c0_260 = arith.constant 0 : index
    %181 = vector.load %arg30[%c5_259, %c0_260] : memref<18x128xbf16, #tpu.memory_space<vmem>>, vector<1x128xbf16>
    %c2_261 = arith.constant 2 : index
    %c0_262 = arith.constant 0 : index
    %182 = vector.load %arg25[%c2_261, %c0_262] : memref<16x384xbf16, #tpu.memory_space<vmem>>, vector<1x128xbf16>
    tpu.vector_store %arg25[%c2_261, %c0_262], %181 {strides = array<i32>} : memref<16x384xbf16, #tpu.memory_space<vmem>>, vector<1x128xbf16>,
    %c7_263 = arith.constant 7 : index
    %c0_264 = arith.constant 0 : index
    %183 = vector.load %arg30[%c7_263, %c0_264] : memref<18x128xbf16, #tpu.memory_space<vmem>>, vector<1x128xbf16>
    %c3_265 = arith.constant 3 : index
    %c0_266 = arith.constant 0 : index
    %184 = vector.load %arg25[%c3_265, %c0_266] : memref<16x384xbf16, #tpu.memory_space<vmem>>, vector<1x128xbf16>
    tpu.vector_store %arg25[%c3_265, %c0_266], %183 {strides = array<i32>} : memref<16x384xbf16, #tpu.memory_space<vmem>>, vector<1x128xbf16>,
    %c9_267 = arith.constant 9 : index
    %c0_268 = arith.constant 0 : index
    %185 = vector.load %arg30[%c9_267, %c0_268] : memref<18x128xbf16, #tpu.memory_space<vmem>>, vector<1x128xbf16>
    %c4_269 = arith.constant 4 : index
    %c0_270 = arith.constant 0 : index
    %186 = vector.load %arg25[%c4_269, %c0_270] : memref<16x384xbf16, #tpu.memory_space<vmem>>, vector<1x128xbf16>
    tpu.vector_store %arg25[%c4_269, %c0_270], %185 {strides = array<i32>} : memref<16x384xbf16, #tpu.memory_space<vmem>>, vector<1x128xbf16>,
    %c11_271 = arith.constant 11 : index
    %c0_272 = arith.constant 0 : index
    %187 = vector.load %arg30[%c11_271, %c0_272] : memref<18x128xbf16, #tpu.memory_space<vmem>>, vector<1x128xbf16>
    %c5_273 = arith.constant 5 : index
    %c0_274 = arith.constant 0 : index
    %188 = vector.load %arg25[%c5_273, %c0_274] : memref<16x384xbf16, #tpu.memory_space<vmem>>, vector<1x128xbf16>
    tpu.vector_store %arg25[%c5_273, %c0_274], %187 {strides = array<i32>} : memref<16x384xbf16, #tpu.memory_space<vmem>>, vector<1x128xbf16>,
    %c13_275 = arith.constant 13 : index
    %c0_276 = arith.constant 0 : index
    %189 = vector.load %arg30[%c13_275, %c0_276] : memref<18x128xbf16, #tpu.memory_space<vmem>>, vector<1x128xbf16>
    %c6_277 = arith.constant 6 : index
    %c0_278 = arith.constant 0 : index
    %190 = vector.load %arg25[%c6_277, %c0_278] : memref<16x384xbf16, #tpu.memory_space<vmem>>, vector<1x128xbf16>
    tpu.vector_store %arg25[%c6_277, %c0_278], %189 {strides = array<i32>} : memref<16x384xbf16, #tpu.memory_space<vmem>>, vector<1x128xbf16>,
    %c15_279 = arith.constant 15 : index
    %c0_280 = arith.constant 0 : index
    %191 = vector.load %arg30[%c15_279, %c0_280] : memref<18x128xbf16, #tpu.memory_space<vmem>>, vector<1x128xbf16>
    %c7_281 = arith.constant 7 : index
    %c0_282 = arith.constant 0 : index
    %192 = vector.load %arg25[%c7_281, %c0_282] : memref<16x384xbf16, #tpu.memory_space<vmem>>, vector<1x128xbf16>
    tpu.vector_store %arg25[%c7_281, %c0_282], %191 {strides = array<i32>} : memref<16x384xbf16, #tpu.memory_space<vmem>>, vector<1x128xbf16>,
    %c0_283 = arith.constant 0 : index
    %c0_284 = arith.constant 0 : index
    %193 = vector.load %arg25[%c0_283, %c0_284] : memref<16x384xbf16, #tpu.memory_space<vmem>>, vector<8x128xbf16>
    %c0_285 = arith.constant 0 : index
    %c0_286 = arith.constant 0 : index
    %194 = vector.load %arg16[%c0_285, %c0_286] : memref<128x128xbf16, #tpu.memory_space<vmem>>, vector<128x128xbf16>
    %cst_287 = arith.constant dense<0.000000e+00> : vector<8x128xf32>
    %195 = tpu.matmul %193, %194, %cst_287 {dimension_numbers = #tpu.dot_dimension_numbers<[1], [0], [0], [1], [0, 0, 1, 1], [], []>} : vector<8x128xbf16>, vector<128x128xbf16>, vector<8x128xf32> -> vector<8x128xf32>
    %c0_288 = arith.constant 0 : index
    %c0_289 = arith.constant 0 : index
    %196 = vector.load %arg17[%c0_288, %c0_289] : memref<1x128xf32, #tpu.memory_space<vmem>>, vector<1x128xf32>
    %197 = vector.broadcast %196 : vector<1x128xf32> to vector<8x128xf32>
    %198 = arith.addf %195, %197 : vector<8x128xf32>
    %199 = arith.addf %176, %198 : vector<8x128xf32>
    %cst_290 = arith.constant 0.000000e+00 : f32
    %200 = vector.broadcast %cst_290 : f32 to vector<8x128xf32>
    %201 = arith.maximumf %199, %200 : vector<8x128xf32>
    %cst_291 = arith.constant 0.000000e+00 : bf16
    %202 = vector.broadcast %cst_291 : bf16 to vector<1x128xbf16>
    %c0_292 = arith.constant 0 : index
    %c0_293 = arith.constant 0 : index
    %203 = vector.load %arg32[%c0_292, %c0_293] : memref<10x128xbf16, #tpu.memory_space<vmem>>, vector<1x128xbf16>
    tpu.vector_store %arg32[%c0_292, %c0_293], %202 {strides = array<i32>} : memref<10x128xbf16, #tpu.memory_space<vmem>>, vector<1x128xbf16>,
    %c9_294 = arith.constant 9 : index
    %c0_295 = arith.constant 0 : index
    %204 = vector.load %arg32[%c9_294, %c0_295] : memref<10x128xbf16, #tpu.memory_space<vmem>>, vector<1x128xbf16>
    tpu.vector_store %arg32[%c9_294, %c0_295], %202 {strides = array<i32>} : memref<10x128xbf16, #tpu.memory_space<vmem>>, vector<1x128xbf16>,
    %205 = arith.truncf %201 : vector<8x128xf32> to vector<8x128xbf16>
    %c1_296 = arith.constant 1 : index
    %c0_297 = arith.constant 0 : index
    %206 = vector.load %arg32[%c1_296, %c0_297] : memref<10x128xbf16, #tpu.memory_space<vmem>>, vector<8x128xbf16>
    tpu.vector_store %arg32[%c1_296, %c0_297], %205 {strides = array<i32>} : memref<10x128xbf16, #tpu.memory_space<vmem>>, vector<8x128xbf16>,
    %c0_298 = arith.constant 0 : index
    %c0_299 = arith.constant 0 : index
    %207 = vector.load %arg32[%c0_298, %c0_299] : memref<10x128xbf16, #tpu.memory_space<vmem>>, vector<8x128xbf16>
    %c0_300 = arith.constant 0 : index
    %c0_301 = arith.constant 0 : index
    %208 = vector.load %arg25[%c0_300, %c0_301] : memref<16x384xbf16, #tpu.memory_space<vmem>>, vector<8x128xbf16>
    tpu.vector_store %arg25[%c0_300, %c0_301], %207 {strides = array<i32>} : memref<16x384xbf16, #tpu.memory_space<vmem>>, vector<8x128xbf16>,
    %c1_302 = arith.constant 1 : index
    %c0_303 = arith.constant 0 : index
    %209 = vector.load %arg32[%c1_302, %c0_303] : memref<10x128xbf16, #tpu.memory_space<vmem>>, vector<8x128xbf16>
    %c0_304 = arith.constant 0 : index
    %c128_305 = arith.constant 128 : index
    %210 = vector.load %arg25[%c0_304, %c128_305] : memref<16x384xbf16, #tpu.memory_space<vmem>>, vector<8x128xbf16>
    tpu.vector_store %arg25[%c0_304, %c128_305], %209 {strides = array<i32>} : memref<16x384xbf16, #tpu.memory_space<vmem>>, vector<8x128xbf16>,
    %c2_306 = arith.constant 2 : index
    %c0_307 = arith.constant 0 : index
    %211 = vector.load %arg32[%c2_306, %c0_307] : memref<10x128xbf16, #tpu.memory_space<vmem>>, vector<8x128xbf16>
    %c0_308 = arith.constant 0 : index
    %c256_309 = arith.constant 256 : index
    %212 = vector.load %arg25[%c0_308, %c256_309] : memref<16x384xbf16, #tpu.memory_space<vmem>>, vector<8x128xbf16>
    tpu.vector_store %arg25[%c0_308, %c256_309], %211 {strides = array<i32>} : memref<16x384xbf16, #tpu.memory_space<vmem>>, vector<8x128xbf16>,
    %c0_310 = arith.constant 0 : index
    %c0_311 = arith.constant 0 : index
    %213 = vector.load %arg25[%c0_310, %c0_311] : memref<16x384xbf16, #tpu.memory_space<vmem>>, vector<8x384xbf16>
    %c0_312 = arith.constant 0 : index
    %c0_313 = arith.constant 0 : index
    %214 = vector.load %arg18[%c0_312, %c0_313] : memref<384x128xbf16, #tpu.memory_space<vmem>>, vector<384x128xbf16>
    %cst_314 = arith.constant dense<0.000000e+00> : vector<8x128xf32>
    %215 = tpu.matmul %213, %214, %cst_314 {dimension_numbers = #tpu.dot_dimension_numbers<[1], [0], [0], [1], [0, 0, 1, 1], [], []>} : vector<8x384xbf16>, vector<384x128xbf16>, vector<8x128xf32> -> vector<8x128xf32>
    %c0_315 = arith.constant 0 : index
    %c0_316 = arith.constant 0 : index
    %216 = vector.load %arg19[%c0_315, %c0_316] : memref<1x128xf32, #tpu.memory_space<vmem>>, vector<1x128xf32>
    %217 = vector.broadcast %216 : vector<1x128xf32> to vector<8x128xf32>
    %218 = arith.addf %215, %217 : vector<8x128xf32>
    %cst_317 = arith.constant 0.000000e+00 : f32
    %219 = vector.broadcast %cst_317 : f32 to vector<8x128xf32>
    %220 = arith.maximumf %218, %219 : vector<8x128xf32>
    %cst_318 = arith.constant 0.000000e+00 : bf16
    %221 = vector.broadcast %cst_318 : bf16 to vector<1x128xbf16>
    %c0_319 = arith.constant 0 : index
    %c0_320 = arith.constant 0 : index
    %222 = vector.load %arg33[%c0_319, %c0_320] : memref<10x128xbf16, #tpu.memory_space<vmem>>, vector<1x128xbf16>
    tpu.vector_store %arg33[%c0_319, %c0_320], %221 {strides = array<i32>} : memref<10x128xbf16, #tpu.memory_space<vmem>>, vector<1x128xbf16>,
    %c9_321 = arith.constant 9 : index
    %c0_322 = arith.constant 0 : index
    %223 = vector.load %arg33[%c9_321, %c0_322] : memref<10x128xbf16, #tpu.memory_space<vmem>>, vector<1x128xbf16>
    tpu.vector_store %arg33[%c9_321, %c0_322], %221 {strides = array<i32>} : memref<10x128xbf16, #tpu.memory_space<vmem>>, vector<1x128xbf16>,
    %224 = arith.truncf %220 : vector<8x128xf32> to vector<8x128xbf16>
    %c1_323 = arith.constant 1 : index
    %c0_324 = arith.constant 0 : index
    %225 = vector.load %arg33[%c1_323, %c0_324] : memref<10x128xbf16, #tpu.memory_space<vmem>>, vector<8x128xbf16>
    tpu.vector_store %arg33[%c1_323, %c0_324], %224 {strides = array<i32>} : memref<10x128xbf16, #tpu.memory_space<vmem>>, vector<8x128xbf16>,
    %c0_325 = arith.constant 0 : index
    %c0_326 = arith.constant 0 : index
    %226 = vector.load %arg33[%c0_325, %c0_326] : memref<10x128xbf16, #tpu.memory_space<vmem>>, vector<8x128xbf16>
    %c0_327 = arith.constant 0 : index
    %c0_328 = arith.constant 0 : index
    %227 = vector.load %arg25[%c0_327, %c0_328] : memref<16x384xbf16, #tpu.memory_space<vmem>>, vector<8x128xbf16>
    tpu.vector_store %arg25[%c0_327, %c0_328], %226 {strides = array<i32>} : memref<16x384xbf16, #tpu.memory_space<vmem>>, vector<8x128xbf16>,
    %c1_329 = arith.constant 1 : index
    %c0_330 = arith.constant 0 : index
    %228 = vector.load %arg33[%c1_329, %c0_330] : memref<10x128xbf16, #tpu.memory_space<vmem>>, vector<8x128xbf16>
    %c0_331 = arith.constant 0 : index
    %c128_332 = arith.constant 128 : index
    %229 = vector.load %arg25[%c0_331, %c128_332] : memref<16x384xbf16, #tpu.memory_space<vmem>>, vector<8x128xbf16>
    tpu.vector_store %arg25[%c0_331, %c128_332], %228 {strides = array<i32>} : memref<16x384xbf16, #tpu.memory_space<vmem>>, vector<8x128xbf16>,
    %c2_333 = arith.constant 2 : index
    %c0_334 = arith.constant 0 : index
    %230 = vector.load %arg33[%c2_333, %c0_334] : memref<10x128xbf16, #tpu.memory_space<vmem>>, vector<8x128xbf16>
    %c0_335 = arith.constant 0 : index
    %c256_336 = arith.constant 256 : index
    %231 = vector.load %arg25[%c0_335, %c256_336] : memref<16x384xbf16, #tpu.memory_space<vmem>>, vector<8x128xbf16>
    tpu.vector_store %arg25[%c0_335, %c256_336], %230 {strides = array<i32>} : memref<16x384xbf16, #tpu.memory_space<vmem>>, vector<8x128xbf16>,
    %c0_337 = arith.constant 0 : index
    %c0_338 = arith.constant 0 : index
    %232 = vector.load %arg25[%c0_337, %c0_338] : memref<16x384xbf16, #tpu.memory_space<vmem>>, vector<8x384xbf16>
    %c0_339 = arith.constant 0 : index
    %c0_340 = arith.constant 0 : index
    %233 = vector.load %arg20[%c0_339, %c0_340] : memref<384x128xbf16, #tpu.memory_space<vmem>>, vector<384x128xbf16>
    %cst_341 = arith.constant dense<0.000000e+00> : vector<8x128xf32>
    %234 = tpu.matmul %232, %233, %cst_341 {dimension_numbers = #tpu.dot_dimension_numbers<[1], [0], [0], [1], [0, 0, 1, 1], [], []>} : vector<8x384xbf16>, vector<384x128xbf16>, vector<8x128xf32> -> vector<8x128xf32>
    %c0_342 = arith.constant 0 : index
    %c0_343 = arith.constant 0 : index
    %235 = vector.load %arg21[%c0_342, %c0_343] : memref<1x128xf32, #tpu.memory_space<vmem>>, vector<1x128xf32>
    %236 = vector.broadcast %235 : vector<1x128xf32> to vector<8x128xf32>
    %237 = arith.addf %234, %236 : vector<8x128xf32>
    %c1_344 = arith.constant 1 : index
    %c0_345 = arith.constant 0 : index
    %238 = vector.load %arg32[%c1_344, %c0_345] : memref<10x128xbf16, #tpu.memory_space<vmem>>, vector<8x128xbf16>
    %239 = arith.extf %238 : vector<8x128xbf16> to vector<8x128xf32>
    %240 = arith.addf %237, %239 : vector<8x128xf32>
    %cst_346 = arith.constant 0.000000e+00 : f32
    %241 = vector.broadcast %cst_346 : f32 to vector<8x128xf32>
    %242 = arith.maximumf %240, %241 : vector<8x128xf32>
    %cst_347 = arith.constant 0.000000e+00 : bf16
    %243 = vector.broadcast %cst_347 : bf16 to vector<1x128xbf16>
    %c0_348 = arith.constant 0 : index
    %c0_349 = arith.constant 0 : index
    %244 = vector.load %arg34[%c0_348, %c0_349] : memref<10x128xbf16, #tpu.memory_space<vmem>>, vector<1x128xbf16>
    tpu.vector_store %arg34[%c0_348, %c0_349], %243 {strides = array<i32>} : memref<10x128xbf16, #tpu.memory_space<vmem>>, vector<1x128xbf16>,
    %c9_350 = arith.constant 9 : index
    %c0_351 = arith.constant 0 : index
    %245 = vector.load %arg34[%c9_350, %c0_351] : memref<10x128xbf16, #tpu.memory_space<vmem>>, vector<1x128xbf16>
    tpu.vector_store %arg34[%c9_350, %c0_351], %243 {strides = array<i32>} : memref<10x128xbf16, #tpu.memory_space<vmem>>, vector<1x128xbf16>,
    %246 = arith.truncf %242 : vector<8x128xf32> to vector<8x128xbf16>
    %c1_352 = arith.constant 1 : index
    %c0_353 = arith.constant 0 : index
    %247 = vector.load %arg34[%c1_352, %c0_353] : memref<10x128xbf16, #tpu.memory_space<vmem>>, vector<8x128xbf16>
    tpu.vector_store %arg34[%c1_352, %c0_353], %246 {strides = array<i32>} : memref<10x128xbf16, #tpu.memory_space<vmem>>, vector<8x128xbf16>,
    %c0_354 = arith.constant 0 : index
    %c0_355 = arith.constant 0 : index
    %248 = vector.load %arg34[%c0_354, %c0_355] : memref<10x128xbf16, #tpu.memory_space<vmem>>, vector<10x128xbf16>
    %249 = arith.extf %248 : vector<10x128xbf16> to vector<10x128xf32>
    %cst_356 = arith.constant dense<0.000000e+00> : vector<128xf32>
    %250 = vector.multi_reduction <add>, %249, %cst_356 [0] : vector<10x128xf32> to vector<128xf32>
    %251 = vector.shape_cast %250 : vector<128xf32> to vector<1x128xf32>
    %c0_357 = arith.constant 0 : index
    %c0_358 = arith.constant 0 : index
    %252 = vector.load %arg22[%c0_357, %c0_358] : memref<128x10xf32, #tpu.memory_space<vmem>>, vector<128x10xf32>
    %cst_359 = arith.constant dense<0.000000e+00> : vector<1x10xf32>
    %253 = tpu.matmul %251, %252, %cst_359 {dimension_numbers = #tpu.dot_dimension_numbers<[1], [0], [0], [1], [0, 0, 1, 1], [], []>} : vector<1x128xf32>, vector<128x10xf32>, vector<1x10xf32> -> vector<1x10xf32>
    %c0_360 = arith.constant 0 : index
    %c0_361 = arith.constant 0 : index
    %254 = vector.load %arg23[%c0_360, %c0_361] : memref<1x10xf32, #tpu.memory_space<vmem>>, vector<1x10xf32>
    %255 = arith.addf %253, %254 : vector<1x10xf32>
    %c0_362 = arith.constant 0 : index
    %c0_363 = arith.constant 0 : index
    %c0_364 = arith.constant 0 : index
    %256 = vector.load %arg24[%c0_362, %c0_363, %c0_364] : memref<1x1x10xf32, #tpu.memory_space<vmem>>, vector<1x1x10xf32>
    %257 = vector.shape_cast %256 : vector<1x1x10xf32> to vector<1x10xf32>
    %258 = vector.shape_cast %255 : vector<1x10xf32> to vector<1x1x10xf32>
    tpu.vector_store %arg24[%c0_362, %c0_363, %c0_364], %258 {strides = array<i32>} : memref<1x1x10xf32, #tpu.memory_space<vmem>>, vector<1x1x10xf32>,
    return
  }
  func.func @transform_0(%arg0: i32) -> (i32, i32, i32) {
    %c0_i32 = arith.constant 0 : i32
    %c0_i32_0 = arith.constant 0 : i32
    %c0_i32_1 = arith.constant 0 : i32
    return %arg0, %c0_i32, %c0_i32_0 : i32, i32, i32
  }
  func.func @transform_1(%arg0: i32) -> (i32, i32) {
    %c0_i32 = arith.constant 0 : i32
    %c0_i32_0 = arith.constant 0 : i32
    %c0_i32_1 = arith.constant 0 : i32
    return %c0_i32, %c0_i32_0 : i32, i32
  }
  func.func @transform_2(%arg0: i32) -> (i32, i32) {
    %c0_i32 = arith.constant 0 : i32
    %c0_i32_0 = arith.constant 0 : i32
    %c0_i32_1 = arith.constant 0 : i32
    return %c0_i32, %c0_i32_0 : i32, i32
  }
  func.func @transform_3(%arg0: i32) -> (i32, i32) {
    %c0_i32 = arith.constant 0 : i32
    %c0_i32_0 = arith.constant 0 : i32
    %c0_i32_1 = arith.constant 0 : i32
    return %c0_i32, %c0_i32_0 : i32, i32
  }
  func.func @transform_4(%arg0: i32) -> (i32, i32) {
    %c0_i32 = arith.constant 0 : i32
    %c0_i32_0 = arith.constant 0 : i32
    %c0_i32_1 = arith.constant 0 : i32
    return %c0_i32, %c0_i32_0 : i32, i32
  }
  func.func @transform_5(%arg0: i32) -> (i32, i32) {
    %c0_i32 = arith.constant 0 : i32
    %c0_i32_0 = arith.constant 0 : i32
    %c0_i32_1 = arith.constant 0 : i32
    return %c0_i32, %c0_i32_0 : i32, i32
  }
  func.func @transform_6(%arg0: i32) -> (i32, i32) {
    %c0_i32 = arith.constant 0 : i32
    %c0_i32_0 = arith.constant 0 : i32
    %c0_i32_1 = arith.constant 0 : i32
    return %c0_i32, %c0_i32_0 : i32, i32
  }
  func.func @transform_7(%arg0: i32) -> (i32, i32) {
    %c0_i32 = arith.constant 0 : i32
    %c0_i32_0 = arith.constant 0 : i32
    %c0_i32_1 = arith.constant 0 : i32
    return %c0_i32, %c0_i32_0 : i32, i32
  }
  func.func @transform_8(%arg0: i32) -> (i32, i32) {
    %c0_i32 = arith.constant 0 : i32
    %c0_i32_0 = arith.constant 0 : i32
    %c0_i32_1 = arith.constant 0 : i32
    return %c0_i32, %c0_i32_0 : i32, i32
  }
  func.func @transform_9(%arg0: i32) -> (i32, i32) {
    %c0_i32 = arith.constant 0 : i32
    %c0_i32_0 = arith.constant 0 : i32
    %c0_i32_1 = arith.constant 0 : i32
    return %c0_i32, %c0_i32_0 : i32, i32
  }
  func.func @transform_10(%arg0: i32) -> (i32, i32) {
    %c0_i32 = arith.constant 0 : i32
    %c0_i32_0 = arith.constant 0 : i32
    %c0_i32_1 = arith.constant 0 : i32
    return %c0_i32, %c0_i32_0 : i32, i32
  }
  func.func @transform_11(%arg0: i32) -> (i32, i32) {
    %c0_i32 = arith.constant 0 : i32
    %c0_i32_0 = arith.constant 0 : i32
    %c0_i32_1 = arith.constant 0 : i32
    return %c0_i32, %c0_i32_0 : i32, i32
  }
  func.func @transform_12(%arg0: i32) -> (i32, i32) {
    %c0_i32 = arith.constant 0 : i32
    %c0_i32_0 = arith.constant 0 : i32
    %c0_i32_1 = arith.constant 0 : i32
    return %c0_i32, %c0_i32_0 : i32, i32
  }
  func.func @transform_13(%arg0: i32) -> (i32, i32) {
    %c0_i32 = arith.constant 0 : i32
    %c0_i32_0 = arith.constant 0 : i32
    %c0_i32_1 = arith.constant 0 : i32
    return %c0_i32, %c0_i32_0 : i32, i32
  }
  func.func @transform_14(%arg0: i32) -> (i32, i32) {
    %c0_i32 = arith.constant 0 : i32
    %c0_i32_0 = arith.constant 0 : i32
    %c0_i32_1 = arith.constant 0 : i32
    return %c0_i32, %c0_i32_0 : i32, i32
  }
  func.func @transform_15(%arg0: i32) -> (i32, i32) {
    %c0_i32 = arith.constant 0 : i32
    %c0_i32_0 = arith.constant 0 : i32
    %c0_i32_1 = arith.constant 0 : i32
    return %c0_i32, %c0_i32_0 : i32, i32
  }
  func.func @transform_16(%arg0: i32) -> (i32, i32) {
    %c0_i32 = arith.constant 0 : i32
    %c0_i32_0 = arith.constant 0 : i32
    %c0_i32_1 = arith.constant 0 : i32
    return %c0_i32, %c0_i32_0 : i32, i32
  }
  func.func @transform_17(%arg0: i32) -> (i32, i32) {
    %c0_i32 = arith.constant 0 : i32
    %c0_i32_0 = arith.constant 0 : i32
    %c0_i32_1 = arith.constant 0 : i32
    return %c0_i32, %c0_i32_0 : i32, i32
  }
  func.func @transform_18(%arg0: i32) -> (i32, i32) {
    %c0_i32 = arith.constant 0 : i32
    %c0_i32_0 = arith.constant 0 : i32
    %c0_i32_1 = arith.constant 0 : i32
    return %c0_i32, %c0_i32_0 : i32, i32
  }
  func.func @transform_19(%arg0: i32) -> (i32, i32) {
    %c0_i32 = arith.constant 0 : i32
    %c0_i32_0 = arith.constant 0 : i32
    %c0_i32_1 = arith.constant 0 : i32
    return %c0_i32, %c0_i32_0 : i32, i32
  }
  func.func @transform_20(%arg0: i32) -> (i32, i32) {
    %c0_i32 = arith.constant 0 : i32
    %c0_i32_0 = arith.constant 0 : i32
    %c0_i32_1 = arith.constant 0 : i32
    return %c0_i32, %c0_i32_0 : i32, i32
  }
  func.func @transform_21(%arg0: i32) -> (i32, i32) {
    %c0_i32 = arith.constant 0 : i32
    %c0_i32_0 = arith.constant 0 : i32
    %c0_i32_1 = arith.constant 0 : i32
    return %c0_i32, %c0_i32_0 : i32, i32
  }
  func.func @transform_22(%arg0: i32) -> (i32, i32) {
    %c0_i32 = arith.constant 0 : i32
    %c0_i32_0 = arith.constant 0 : i32
    %c0_i32_1 = arith.constant 0 : i32
    return %c0_i32, %c0_i32_0 : i32, i32
  }
  func.func @transform_23(%arg0: i32) -> (i32, i32, i32) {
    %c0_i32 = arith.constant 0 : i32
    %c0_i32_0 = arith.constant 0 : i32
    %c0_i32_1 = arith.constant 0 : i32
    return %arg0, %c0_i32, %c0_i32_0 : i32, i32, i32
  }
}

</mosaic_0001>

<bundles_post_ra>
// kernel: _lambda_.1
= control target key start
LH: loop header
LB: loop body
LE: loop exit
PB: predicated region body
PF: predicated region fallthrough
CT: control target
= control target key end

     0   :  { %s7337_s0 = inlined_call_operand.vmem [shape: bf16[2,18,128], index: 0, kind: input, shape index: {}]   ;;  %s7338_s1 = inlined_call_operand.vmem [shape: bf16[384,128], index: 1, kind: input, shape index: {}]   ;;  %s7339_s2 = inlined_call_operand.vmem [shape: f32[1,128], index: 2, kind: input, shape index: {}]   ;;  %s7340_s3 = inlined_call_operand.vmem [shape: bf16[384,128], index: 3, kind: input, shape index: {}]   ;;  %s7341_s4 = inlined_call_operand.vmem [shape: f32[1,128], index: 4, kind: input, shape index: {}]   ;;  %s7342_s5 = inlined_call_operand.vmem [shape: bf16[384,128], index: 5, kind: input, shape index: {}]   ;;  %s7343_s6 = inlined_call_operand.vmem [shape: f32[1,128], index: 6, kind: input, shape index: {}]   ;;  %s7344_s7 = inlined_call_operand.vmem [shape: bf16[384,128], index: 7, kind: input, shape index: {}]   ;;  %s7345_s8 = inlined_call_operand.vmem [shape: f32[1,128], index: 8, kind: input, shape index: {}]   ;;  %s7346_s9 = inlined_call_operand.vmem [shape: bf16[384,128], index: 9, kind: input, shape index: {}]   ;;  %s7347_s10 = inlined_call_operand.vmem [shape: f32[1,128], index: 10, kind: input, shape index: {}]   ;;  %s7348_s11 = inlined_call_operand.vmem [shape: bf16[384,128], index: 11, kind: input, shape index: {}]   ;;  %s7349_s12 = inlined_call_operand.vmem [shape: f32[1,128], index: 12, kind: input, shape index: {}]   ;;  %s7350_s13 = inlined_call_operand.hbm [shape: bf16[384,128], index: 13, kind: input, shape index: {}]   ;;  %s7351_s14 = inlined_call_operand.vmem [shape: f32[1,128], index: 14, kind: input, shape index: {}]   ;;  %s7352_s15 = inlined_call_operand.hbm [shape: bf16[128,128], index: 15, kind: input, shape index: {}]   ;;  %s7353_s16 = inlined_call_operand.vmem [shape: f32[1,128], index: 16, kind: input, shape index: {}]   ;;  %s7354_s17 = inlined_call_operand.hbm [shape: bf16[384,128], index: 17, kind: input, shape index: {}]   ;;  %s7355_s18 = inlined_call_operand.vmem [shape: f32[1,128], index: 18, kind: input, shape index: {}]   ;;  %s7356_s19 = inlined_call_operand.hbm [shape: bf16[384,128], index: 19, kind: input, shape index: {}]   ;;  %s7357_s20 = inlined_call_operand.vmem [shape: f32[1,128], index: 20, kind: input, shape index: {}]   ;;  %s7358_s21 = inlined_call_operand.vmem [shape: f32[128,10], index: 21, kind: input, shape index: {}]   ;;  %s7359_s22 = inlined_call_operand.vmem [shape: f32[1,10], index: 22, kind: input, shape index: {}]   ;;  %s7360_s23 = inlined_call_operand.hbm [shape: f32[2,1,10], index: 23, kind: output, shape index: {}]  }
   0x1   :  { %7373 = sst [smem:[#allocation31_spill]] %s7337_s0 }
   0x2   :  { %7374 = sst [smem:[#allocation32_spill]] %s7338_s1 }
   0x3   :  { %7375 = sst [smem:[#allocation33_spill]] %s7339_s2 }
   0x4   :  { %7376 = sst [smem:[#allocation34_spill]] %s7340_s3 }
   0x5   :  { %7377 = sst [smem:[#allocation35_spill]] %s7341_s4 }
   0x6   :  { %7378 = sst [smem:[#allocation36_spill]] %s7342_s5 }
   0x7   :  { %7379 = sst [smem:[#allocation37_spill]] %s7343_s6 }
   0x8   :  { %7380 = sst [smem:[#allocation38_spill]] %s7344_s7 }
   0x9   :  { %7381 = sst [smem:[#allocation39_spill]] %s7350_s13 }
   0xa   :  { %7382 = sst [smem:[#allocation40_spill]] %s7352_s15 }
   0xb   :  { %28 = vsyncpa [#allocation13], 0 }
   0xc   :  { %29 = vsyncpa [#allocation16], 0 }
   0xd   :  { %30 = vsyncpa [#allocation19], 0 }
   0xe   :  { %31 = vsyncpa [#allocation14], 0 }
   0xf   :  { %33 = vsyncpa [#allocation14 + $0x1], 0  ;;  %s6272_s4 = smov 0   ;;  %s6274_s30 = smov 0  }
  0x10   :  { %s6276_s24 = smov 0   ;;  %s6278_s25 = smov 0  }
  0x11 LB: > { %7383 = sst [smem:[#allocation25_spill]] %s6129_s4  ;;  %s6293_s5 = sadd.s32 4294967295, %s6141_s25   ;;  %s6141_s25 = sphi %s6278_s25, %s7431_s25   ;;  %s6137_s24 = sphi %s6276_s24, %s7433_s24   ;;  %s6133_s30 = sphi %s6274_s30, %s7435_s30   ;;  %s6129_s4 = sphi %s6272_s4, %s7434_s4  }
  0x12   : > { %7384 = sst [smem:[#allocation26_spill]] %s6137_s24  ;;  %s4761_s1 = sadd.s32 4294967294, %s6141_s25  }
  0x13   : > { %7385 = sst [smem:[#allocation27_spill]] %s6141_s25  ;;  %s6297_s26 = sadd.s32 1, %s6141_s25  }
  0x14   : > { %7386 = sst [smem:[#allocation28_spill]] %s6297_s26  ;;  %s534_s2 = sadd.s32 1, %s6137_s24 }
  0x15   : > { %s531_s6 = ssub.s32 %s6141_s25, %s6297_s26  ;;  %p544_p0 = scmp.ne.s32.totalorder %s6137_s24, %s6133_s30 }
  0x16   : > { %p532_p1 = scmp.eq.s32.totalorder %s531_s6, 0  ;;  %p545_p2 = scmp.eq.s32.totalorder %s6293_s5, 1 }
  0x17   : > { %p550_p3 = scmp.ne.s32.totalorder %s6133_s30, %s6129_s4  ;;  %p551_p4 = scmp.eq.s32.totalorder %s4761_s1, 1 }
  0x18   : > { %s6308_s27 = scalar_select %p532_p1, %s6137_s24, %s534_s2  }
  0x19   : > { %p6310_p5 = por %p545_p2, %p544_p0  ;;  %p6314_p6 = por %p551_p4, %p550_p3 }
  0x1a   : > { %7387 = sst [smem:[#allocation29_spill]] %s6308_s27  ;;  %p4762_p7 = scmp.ge.s32.totalorder %s6141_s25, 1 }
  0x1b   : > { %s7389_s28 = scalar_select %p6314_p6, 1, 0 }
  0x1c   : > { %p558_p8 = scmp.lt.s32.totalorder %s6141_s25, 3  ;;  %p5672_p9 = scmp.eq.s32.totalorder %s6293_s5, 0 }
  0x1d   : > { %7390 = sst [smem:[#allocation30_spill]] %s7389_s28  ;;  %s6143_s3 = smov [#allocation15]  }
  0x1e   : > { %p6321_p10 = pnand %p4762_p7, %p558_p8  ;;  %s622_s0 = sshll.u32 %s6143_s3, 4  ;;  %s623_s0 = int_to_ptr.vmem [resolvable:$true] %s622_s0 }
  0x1f   : > { %s6144_s2 = smov [#allocation12]   ;;  %s6145_s27 = smov [#allocation17]  }
  0x20   : > { %p5655_p11 = pneg %p6321_p10  ;;  %s606_s6 = sshll.u32 %s6144_s2, 4  ;;  %s607_s6 = int_to_ptr.vmem [resolvable:$true] %s606_s6 }
  0x21   : > { %s638_s24 = sshll.u32 %s6145_s27, 4  ;;  %s5976_s26 = scalar_lea.vmem %s623_s0, 1024  ;;  %s639_s24 = int_to_ptr.vmem [resolvable:$true] %s638_s24 }
  0x22   : > { %p6329_p12 = pnand %p5672_p9, %p5655_p11  ;;  %p5977_p0 = scmp.ne.s32.totalorder %s623_s0, %s5976_s26 }
  0x23   : > { %p5984_p3 = scmp.lt.s32.totalorder %s623_s0, %s623_s0  ;;  %p5985_p4 = scmp.lt.s32.totalorder %s5976_s26, %s5976_s26 }
  0x24   : > { %p5967_p13 = pneg %p6329_p12 }
  0x25   : > { %p5986_p7 = por %p5985_p4, %p5984_p3 }
  0x26   : > { %p5979_p1 = pnand %p5977_p0, %p5967_p13 }
  0x28   : > { %p5980_p2 = pneg %p5979_p1 }
  0x2a   : > { %p5987_p8 = pnand %p5986_p7, %p5980_p2 }
  0x2c   : > { %5990 = shalt.err (!%p5987_p8)
}
  0x2d   : > { %s6146_s3 = smov 64   ;;  %s6147_s2 = smov 4  }
  0x2e   : > { %s7393_s15 = sld [smem:[#allocation40_spill]]  ;;  %s6002_s4 = scalar_lea.vmem %s607_s6, 3072 }
  0x2f   : > { %p6003_p11 = scmp.ne.s32.totalorder %s607_s6, %s6002_s4  ;;  %p6010_p2 = scmp.lt.s32.totalorder %s607_s6, %s607_s6 }
  0x30   : > { %p6011_p3 = scmp.lt.s32.totalorder %s6002_s4, %s6002_s4 }
  0x31   : > { %p6005_p0 = pnand %p6003_p11, %p5967_p13 }
  0x32   : > { %p6012_p4 = por %p6011_p3, %p6010_p2 }
  0x33   : > { %p6006_p1 = pneg %p6005_p0 }
  0x34   : > { %5661 = dma.hbm_to_vmem [thread:$0]  (!%p6329_p12), %s7393_s15, 1024, %s623_s0, [#allocation16], %s6146_s3, %s6146_s3, %s6147_s2  }
  0x35   : > { %p6013_p7 = pnand %p6012_p4, %p6006_p1 }
  0x37   : > { %6016 = shalt.err (!%p6013_p7)
}
  0x38   : > { %s7394_s13 = sld [smem:[#allocation39_spill]]  ;;  %s6028_s28 = scalar_lea.vmem %s639_s24, 3072 }
  0x39   : > { %p6029_p8 = scmp.ne.s32.totalorder %s639_s24, %s6028_s28  ;;  %p6036_p2 = scmp.lt.s32.totalorder %s639_s24, %s639_s24 }
  0x3a   : > { %p6037_p1 = scmp.lt.s32.totalorder %s6028_s28, %s6028_s28 }
  0x3b   : > { %p6031_p11 = pnand %p6029_p8, %p5967_p13 }
  0x3c   : > { %p6038_p3 = por %p6037_p1, %p6036_p2 }
  0x3d   : > { %p6032_p0 = pneg %p6031_p11 }
  0x3e   : > { %5658 = dma.hbm_to_vmem [thread:$0]  (!%p6329_p12), %s7394_s13, 3072, %s607_s6, [#allocation13], %s6146_s3, %s6146_s3, %s6147_s2  }
  0x3f   : > { %p6039_p4 = pnand %p6038_p3, %p6032_p0 }
  0x41   : > { %6042 = shalt.err (!%p6039_p4)
}
  0x42   : > { %5664 = dma.hbm_to_vmem [thread:$0]  (!%p6329_p12), %s7354_s17, 3072, %s639_s24, [#allocation16], %s6146_s3, %s6146_s3, %s6147_s2  }
  0x43   : > { %s6148_s0 = smov [#allocation18]  }
  0x44   : > { %s654_s6 = sshll.u32 %s6148_s0, 4  ;;  %s655_s6 = int_to_ptr.vmem [resolvable:$true] %s654_s6 }
  0x45   : > { %s6054_s27 = scalar_lea.vmem %s655_s6, 3072  ;;  %p6062_p0 = scmp.lt.s32.totalorder %s655_s6, %s655_s6 }
  0x46   : > { %p6055_p7 = scmp.ne.s32.totalorder %s655_s6, %s6054_s27  ;;  %p6063_p2 = scmp.lt.s32.totalorder %s6054_s27, %s6054_s27 }
  0x48   : > { %p6057_p8 = pnand %p6055_p7, %p5967_p13  ;;  %p6064_p1 = por %p6063_p2, %p6062_p0 }
  0x4a   : > { %p6058_p11 = pneg %p6057_p8 }
  0x4c   : > { %p6065_p3 = pnand %p6064_p1, %p6058_p11 }
  0x4e   : > { %6068 = shalt.err (!%p6065_p3)
}
  0x4f   : > { %5667 = dma.hbm_to_vmem [thread:$0]  (!%p6329_p12), %s7356_s19, 3072, %s655_s6, [#allocation19], %s6146_s3, %s6146_s3, %s6147_s2  }
  0x50   : > { %687 = sbr.rel (%p6321_p10) target bundleno = 2569 (0xa09), region = 112 }
  0x55   : > { %6112 = dma.done.wait (%p5672_p9), [#allocation13], 3072  }
  0x56   : > { %6114 = vsyncadd (%p5672_p9), [#allocation13], 4294964224 }
  0x57   : > { %6116 = dma.done.wait (%p5672_p9), [#allocation16], 4096  }
  0x58   : > { %6118 = vsyncadd (%p5672_p9), [#allocation16], 4294963200 }
  0x59   : > { %6120 = dma.done.wait (%p5672_p9), [#allocation19], 3072  }
  0x5a   : > { %6122 = vsyncadd (%p5672_p9), [#allocation19], 4294964224  ;;  %v6149_v0 = vmov 0.0   ;;  %vm6150_vm0 = vmmov 0   ;;  %s7395_s3 = sld [smem:[#allocation32_spill]]  ;;  %p762_p9 = scmp.lt.s32.totalorder %s6293_s5, 1 }
  0x5b   : > { %5401 = vmatprep.subr.bf16.mxu1 %v6149_v0  ;;  %5417 = vmatprep.mubr.msk.bf16.mxu1 %vm6150_vm0, %v6149_v0  ;;  %vm775_vm1 = vsmask.f32 3328  ;;  %vm776_vm2 = vsmask.f32 7440  ;;  %s7396_s1 = sld [smem:[#allocation31_spill]]  ;;  %vm812_vm3 = vcmask 1042432  }
  0x5c   : > { %s763_s4 = scalar_select %p762_p9, %s6293_s5, 1  ;;  %vm813_vm4 = vcmask 1046532   ;;  %vm6488_vm6 = vmor %vm775_vm1, %vm776_vm2  ;;  %vm1129_vm7 = vcmask 1040384   ;;  %vm1130_vm8 = vsmask.f32 256  ;;  %vm1168_vm12 = vcmask 1043456  }
  0x5d   : > { %vm6481_vm5 = vmor %vm812_vm3, %vm813_vm4  ;;  %v1132_v61 = vld [vmem:[#allocation3] sm:$0x1]  ;;  %vm1135_vm10 = vsmask.f32 7938  ;;  %s7405_s27 = sld [smem:[#allocation34_spill]]  ;;  %vm1933_vm2 = vcmask 1046528  }
  0x5e   : > { %s5636_s29 = smul.u32 12, %s763_s4  ;;  %vm6504_vm9 = vmand %vm1129_vm7, %vm1130_vm8  ;;  %s7406_s24 = sld [smem:[#allocation33_spill]]  ;;  %vm1146_vm14 = vsmask.f32 4368  ;;  %vm2809_vm3 = vcmask 1041409   ;;  %v4575_v63 = vld [vmem:[%s7358_s21 + $0x60] sm:$0xff] }
  0x5f   : > { %v1133_v62 = vsel %vm6504_vm9, 0, %v1132_v61  ;;  %vm6511_vm11 = vmand %vm1129_vm7, %vm1135_vm10  ;;  %s7412_s13 = sld [smem:[#allocation35_spill]]  ;;  %vm2810_vm4 = vsmask.f32 1280  ;;  %v4527_v43 = vld [vmem:[#allocation11 + $0x4] sm:$0x1] }
  0x60   : > { %v5721_v1 = vld [vmem:[%s7395_s3 + $0x78] sm:$0xff]   ;;  %v5724_v4 = vld [vmem:[%s7395_s3 + $0x70] sm:$0xff]   ;;  %v5727_v7 = vld [vmem:[%s7395_s3 + $0x68] sm:$0xff]   ;;  %1134 = vst [vmem:[#allocation3] sm:$0x1] %v1133_v62  ;;  %s7413_s4 = sld [smem:[#allocation38_spill]] }
  0x61   : > { %v5722_v2 = vld [vmem:[%s7395_s3 + $0x38] sm:$0xff]   ;;  %5096 = vmatprep.subr.bf16.mxu0 %v5721_v1  ;;  %v5725_v5 = vld [vmem:[%s7395_s3 + $0x30] sm:$0xff]   ;;  %v5728_v8 = vld [vmem:[%s7395_s3 + $0x28] sm:$0xff]   ;;  %s766_s2 = scalar_lea.vmem %s7396_s1, %s5636_s29  ;;  %s7415_s6 = sld [smem:[#allocation37_spill]]  ;;  %v4528_v45 = vsel %vm6511_vm11, 0, %v4527_v43 }
  0x62   : > { %v5723_v3 = vld [vmem:[%s7395_s3 + $0xb8] sm:$0xff]   ;;  %5097 = vmatpush3.bf16.msra.mxu0 %v5722_v2  ;;  %v5726_v6 = vld [vmem:[%s7395_s3 + $0xb0] sm:$0xff]   ;;  %v5729_v9 = vld [vmem:[%s7395_s3 + $0xa8] sm:$0xff]   ;;  %4529 = vst [vmem:[#allocation11 + $0x4] sm:$0x1] %v4528_v45  ;;  %s760_s1 = sand.u32 1, %s6133_s30  }
  0x63   : > { %5402 = vmatpush3.bf16.msra.mxu1 %v5723_v3  ;;  %5098 = vmatprep.subr.bf16.mxu0 %v5724_v4  ;;  %v5730_v10 = vld [vmem:[%s7395_s3 + $0x60] sm:$0xff]   ;;  %v5733_v13 = vld [vmem:[%s7395_s3 + $0x58] sm:$0xff]   ;;  %v5736_v16 = vld [vmem:[%s7395_s3 + $0x50] sm:$0xff]   ;;  %s5071_s0 = sshll.u32 %s6293_s5, 4  ;;  %s761_s29 = scalar_lea.vmem [#allocation20], %s760_s1 }
  0x64   : > { %5403 = vmatprep.subr.bf16.mxu1 %v6149_v0  ;;  %v5731_v11 = vld [vmem:[%s7395_s3 + $0x20] sm:$0xff]   ;;  %v5734_v14 = vld [vmem:[%s7395_s3 + $0x18] sm:$0xff]   ;;  %v5737_v17 = vld [vmem:[%s7395_s3 + $0x10] sm:$0xff]   ;;  %s6151_s5 = smov [#allocation20]  }
  0x65   : > { %v5732_v12 = vld [vmem:[%s7395_s3 + $0xa0] sm:$0xff]   ;;  %v5735_v15 = vld [vmem:[%s7395_s3 + $0x98] sm:$0xff]   ;;  %v5738_v18 = vld [vmem:[%s7395_s3 + $0x90] sm:$0xff]   ;;  %s6073_s28 = sshll.u32 %s6151_s5, 4  ;;  %s6074_s28 = int_to_ptr.vmem [resolvable:$false] %s6073_s28 }
  0x66   : > { %5099 = vmatpush3.bf16.msra.mxu0 %v5725_v5  ;;  %v5739_v19 = vld [vmem:[%s7395_s3 + $0x48] sm:$0xff]   ;;  %v5742_v22 = vld [vmem:[%s7395_s3 + $0x40] sm:$0xff]   ;;  %v5749_v3 = vld [vmem:[%s7405_s27 + $0xb8] sm:$0xff]   ;;  %s7414_s26 = smov %s7413_s4  ;;  %s6075_s25 = scalar_lea.vmem %s6074_s28, 32 }
  0x67   : > { %5404 = vmatpush3.bf16.msra.mxu1 %v5726_v6  ;;  %5100 = vmatprep.subr.bf16.mxu0 %v5727_v7  ;;  %v5740_v20 = vld [vmem:[%s7395_s3 + $0x8] sm:$0xff]   ;;  %v768_v23 = vld [vmem:[%s766_s2] sm:$0xf]  ;;  %v769_v24 = vld [vmem:[%s766_s2 + $0x4] sm:$0xf] }
  0x68   : > { %5405 = vmatprep.subr.bf16.mxu1 %v6149_v0  ;;  %v5741_v21 = vld [vmem:[%s7395_s3 + $0x88] sm:$0xff]   ;;  %v772_v25 = vld [vmem:[%s766_s2] sm:$0xf]  ;;  %770 = vst [vmem:[#allocation2] sm:$0xf] %v768_v23  ;;  %v5751_v4 = vld [vmem:[%s7405_s27 + $0xb0] sm:$0xff]  }
  0x69   : > { %v5743_v26 = vld [vmem:[%s7395_s3] sm:$0xff]   ;;  %771 = vst [vmem:[#allocation2 + $0xc] sm:$0xf] %v769_v24  ;;  %v774_v28 = vld [vmem:[%s766_s2 + $0x8] sm:$0x1]  ;;  %v779_v29 = vshrl.u32 %v772_v25, 16  ;;  %vm6601_vm13 = vmand %vm1168_vm12, %vm1135_vm10 }
  0x6a   : > { %5101 = vmatpush3.bf16.msra.mxu0 %v5728_v8  ;;  %v773_v27 = vld [vmem:[%s766_s2 + $0x4] sm:$0xf]  ;;  %v782_v30 = vshll.u32 %v772_v25, 16  ;;  %v798_v34 = vshll.u32 %v774_v28, 16  ;;  %v806_v35 = vld [vmem:[%s766_s2] sm:$0xe]  ;;  %vm6608_vm15 = vmor %vm1130_vm8, %vm1146_vm14 }
  0x6b   : > { %5406 = vmatpush3.bf16.msra.mxu1 %v5729_v9  ;;  %5102 = vmatprep.subr.bf16.mxu0 %v5730_v10  ;;  %v5744_v31 = vld [vmem:[%s7395_s3 + $0x80] sm:$0xff]   ;;  %v788_v32 = vshll.u32 %v773_v27, 16  ;;  %v792_v33 = vshrl.u32 %v773_v27, 16  ;;  %v781_v36 = vrot.slane %v779_v29, 4  ;;  %v808_v39 = vld [vmem:[%s766_s2 + $0x8] sm:$0x1]  ;;  %vm7033_vm7 = vmand %vm2809_vm3, %vm2810_vm4 }
  0x6c   : > { %5407 = vmatprep.subr.bf16.mxu1 %v6149_v0  ;;  %v784_v37 = vrot.slane %v782_v30, 5  ;;  %v807_v38 = vld [vmem:[%s766_s2 + $0x4] sm:$0xf]  ;;  %v800_v42 = vrot.slane %v798_v34, 5  ;;  %v4774_v44 = vrot.slane %v806_v35, 9  ;;  %v820_v48 = vrot.slane %v808_v39, 5 }
  0x6d   : > { %v790_v40 = vrot.slane %v788_v32, 5  ;;  %v794_v41 = vrot.slane %v792_v33, 4  ;;  %v817_v47 = vrot.slane %v807_v38, 5  ;;  %v1137_v1 = vld [vmem:[#allocation3 + $0x8] sm:$0x1]  ;;  %v5750_v5 = vld [vmem:[%s7405_s27 + $0x78] sm:$0xff]  }
  0x6e   : > { %5103 = vmatpush3.bf16.msra.mxu0 %v5731_v11  ;;  %v785_v46 = vor.u32 %v784_v37, %v781_v36  ;;  %v1138_v2 = vsel %vm6511_vm11, 0, %v1137_v1  ;;  %v5752_v6 = vld [vmem:[%s7405_s27 + $0x38] sm:$0xff]   ;;  %v5754_v7 = vld [vmem:[%s7405_s27 + $0xa8] sm:$0xff]   ;;  %v5753_v8 = vld [vmem:[%s7405_s27 + $0x70] sm:$0xff]   ;;  %s7411_s2 = sld [smem:[#allocation36_spill]]  ;;  %vm2831_vm8 = vcmask 1042434  }
  0x6f   : > { %5408 = vmatpush3.bf16.msra.mxu1 %v5732_v12  ;;  %5104 = vmatprep.subr.bf16.mxu0 %v5733_v13  ;;  %v795_v49 = vor.u32 %v794_v41, %v790_v40  ;;  %v818_v51 = vsel %vm6481_vm5, %v4774_v44, %v817_v47  ;;  %v819_v52 = vrot.slane %v817_v47, 4  ;;  %1139 = vst [vmem:[#allocation3 + $0x8] sm:$0x1] %v1138_v2  ;;  %v5755_v9 = vld [vmem:[%s7405_s27 + $0x30] sm:$0xff]   ;;  %v5757_v10 = vld [vmem:[%s7405_s27 + $0xa0] sm:$0xff]   ;;  %v5756_v11 = vld [vmem:[%s7405_s27 + $0x68] sm:$0xff]  }
  0x70   : > { %5409 = vmatprep.subr.bf16.mxu1 %v6149_v0  ;;  %v786_v50 = vrot.slane %v785_v46, 4  ;;  %824 = vst [vmem:[#allocation2 + $0x8] sm:$0xf] %v818_v51  ;;  %v5747_v59 = vld [vmem:[#allocation2] ss:$12 sps:$4 sm:$0xff]   ;;  %v5760_v13 = vld [vmem:[%s7405_s27 + $0x98] sm:$0xff]  }
  0x71   : > { %v796_v53 = vrot.slane %v795_v49, 4  ;;  %v821_v55 = vsel %vm6481_vm5, %v819_v52, %v820_v48  ;;  %v5758_v12 = vld [vmem:[%s7405_s27 + $0x28] sm:$0xff]   ;;  %v5772_v25 = vld [vmem:[%s7405_s27 + $0x40] sm:$0xff]   ;;  %v1170_v52 = vld [vmem:[#allocation3] sm:$0xf] }
  0x72   : > { %5105 = vmatpush3.bf16.msra.mxu0 %v5734_v14  ;;  %v791_v54 = vsel %vm6488_vm6, %v786_v50, %v790_v40  ;;  %825 = vst [vmem:[#allocation2 + $0x14] sm:$0xf] %v821_v55  ;;  %v5759_v14 = vld [vmem:[%s7405_s27 + $0x60] sm:$0xff]   ;;  %v5768_v23 = vld [vmem:[%s7405_s27 + $0x48] sm:$0xff]   ;;  %vm2832_vm10 = vsmask.f32 2304 }
  0x73   : > { %5410 = vmatpush3.bf16.msra.mxu1 %v5735_v15  ;;  %5106 = vmatprep.subr.bf16.mxu0 %v5736_v16  ;;  %v801_v56 = vsel %vm6488_vm6, %v796_v53, %v800_v42  ;;  %804 = vst [vmem:[#allocation2 + $0x4] sm:$0xf] %v791_v54  ;;  %v5761_v15 = vld [vmem:[%s7405_s27 + $0x20] sm:$0xff]   ;;  %v5763_v16 = vld [vmem:[%s7405_s27 + $0x90] sm:$0xff]   ;;  %v5770_v24 = vld [vmem:[%s7405_s27 + $0x8] sm:$0xff]  }
  0x74   : > { %5411 = vmatprep.subr.bf16.mxu1 %v6149_v0  ;;  %805 = vst [vmem:[#allocation2 + $0x10] sm:$0xf] %v801_v56  ;;  %v4775_v30 = vld [vmem:[%s7406_s24] ss:$0 sm:$0xff]  ;;  %vm2822_vm12 = vsmask.f32 7942  ;;  %vm7050_vm14 = vmand %vm2831_vm8, %vm2832_vm10 }
  0x75   : > { %vm7056_vm4 = vmand %vm2809_vm3, %vm2822_vm12  ;;  %vm2843_vm3 = vsmask.f32 7946  ;;  %vm2862_vm12 = vsmask.f32 7950  ;;  %v4579_v60 = vld [vmem:[%s7359_s22] sm:$0x1] }
  0x76   : > { %5107 = vmatpush3.bf16.msra.mxu0 %v5737_v17  ;;  %v5762_v17 = vld [vmem:[%s7405_s27 + $0x58] sm:$0xff]   ;;  %s4653_s24 = scalar_lea.sflag [#allocation14], %s760_s1 }
  0x77   : > { %5412 = vmatpush3.bf16.msra.mxu1 %v5738_v18  ;;  %5108 = vmatprep.subr.bf16.mxu0 %v5739_v19  ;;  %v5764_v18 = vld [vmem:[%s7405_s27 + $0x18] sm:$0xff]   ;;  %v5766_v19 = vld [vmem:[%s7405_s27 + $0x88] sm:$0xff]  }
  0x78   : > { %5413 = vmatprep.subr.bf16.mxu1 %v6149_v0 }
  0x79   : > { %v5748_v57 = vld [vmem:[#allocation2 + $0x8] ss:$12 sps:$4 sm:$0xff]  }
  0x7a   : > { %5109 = vmatpush3.bf16.msra.mxu0 %v5740_v20  ;;  %v5765_v20 = vld [vmem:[%s7405_s27 + $0x50] sm:$0xff]  }
  0x7b   : > { %5414 = vmatpush3.bf16.msra.mxu1 %v5741_v21  ;;  %5110 = vmatprep.subr.bf16.mxu0 %v5742_v22  ;;  %v5745_v58 = vld [vmem:[#allocation2 + $0x4] ss:$12 sps:$4 sm:$0xff]  }
  0x7c   : > { %5415 = vmatprep.subr.bf16.mxu1 %v6149_v0  ;;  %1077 = vmatprep.mubr.bf16.mxu0 %v5745_v58  ;;  %v5767_v21 = vld [vmem:[%s7405_s27 + $0x10] sm:$0xff]   ;;  %v5769_v22 = vld [vmem:[%s7405_s27 + $0x80] sm:$0xff]  }
  0x7e   : > { %5111 = vmatpush3.bf16.msra.mxu0 %v5743_v26  ;;  %v5773_v26 = vld [vmem:[%s7405_s27] sm:$0xff]  }
  0x7f   : > { %5416 = vmatpush3.bf16.msra.mxu1 %v5744_v31  ;;  %5127 = vmatprep.subr.bf16.mxu0 %v5750_v5 }
  0x80   : > { %5421 = vmatprep.subr.bf16.mxu1 %v6149_v0 }
  0x81   : > { %1078 = vmatmul.mubr.bf16.vlgmr.msra.gmra.mxu0 %v5747_v59  ;;  %v1174_v59 = vld [vmem:[#allocation3 + $0x8] sm:$0x1] }
  0x82   : > { %5418 = vmatmul.mubr.bf16.vlgmr.msra.gmra.mxu1 %v5748_v57  ;;  %5128 = vmatpush3.bf16.msra.mxu0 %v5752_v6 }
  0x83   : > { %5437 = vmatprep.mubr.msk.bf16.mxu1 %vm6150_vm0, %v6149_v0  ;;  %5422 = vmatpush3.bf16.msra.mxu1 %v5749_v3 }
  0x84   : > { %5423 = vmatprep.subr.bf16.mxu1 %v6149_v0  ;;  %5129 = vmatprep.subr.bf16.mxu0 %v5753_v8 }
  0x86   : > { %5130 = vmatpush3.bf16.msra.mxu0 %v5755_v9 }
  0x87   : > { %5424 = vmatpush3.bf16.msra.mxu1 %v5751_v4  ;;  %5131 = vmatprep.subr.bf16.mxu0 %v5756_v11 }
  0x88   : > { %5425 = vmatprep.subr.bf16.mxu1 %v6149_v0 }
  0x8a   : > { %5132 = vmatpush3.bf16.msra.mxu0 %v5758_v12 }
  0x8b   : > { %5426 = vmatpush3.bf16.msra.mxu1 %v5754_v7  ;;  %5133 = vmatprep.subr.bf16.mxu0 %v5759_v14 }
  0x8c   : > { %5427 = vmatprep.subr.bf16.mxu1 %v6149_v0 }
  0x8e   : > { %5134 = vmatpush3.bf16.msra.mxu0 %v5761_v15 }
  0x8f   : > { %5428 = vmatpush3.bf16.msra.mxu1 %v5757_v10  ;;  %5135 = vmatprep.subr.bf16.mxu0 %v5762_v17 }
  0x90   : > { %5429 = vmatprep.subr.bf16.mxu1 %v6149_v0 }
  0x92   : > { %5136 = vmatpush3.bf16.msra.mxu0 %v5764_v18 }
  0x93   : > { %5430 = vmatpush3.bf16.msra.mxu1 %v5760_v13  ;;  %5137 = vmatprep.subr.bf16.mxu0 %v5765_v20 }
  0x94   : > { %5431 = vmatprep.subr.bf16.mxu1 %v6149_v0 }
  0x96   : > { %5138 = vmatpush3.bf16.msra.mxu0 %v5767_v21 }
  0x97   : > { %5432 = vmatpush3.bf16.msra.mxu1 %v5763_v16  ;;  %5139 = vmatprep.subr.bf16.mxu0 %v5768_v23 }
  0x98   : > { %5433 = vmatprep.subr.bf16.mxu1 %v6149_v0 }
  0x9a   : > { %5140 = vmatpush3.bf16.msra.mxu0 %v5770_v24 }
  0x9b   : > { %5434 = vmatpush3.bf16.msra.mxu1 %v5766_v19  ;;  %5141 = vmatprep.subr.bf16.mxu0 %v5772_v25 }
  0x9c   : > { %5435 = vmatprep.subr.bf16.mxu1 %v6149_v0 }
  0x9e   : > { %5142 = vmatpush3.bf16.msra.mxu0 %v5773_v26 }
  0x9f   : > { %5436 = vmatpush3.bf16.msra.mxu1 %v5769_v22 }
  0xa0   : > { %5441 = vmatprep.subr.bf16.mxu1 %v6149_v0 }
 0x141   : > { %v5112_v28 = vpop.f32.mrf.mxu0 }
 0x142   : > { %v1120_v27 = vpop.f32.mrf.mxu1 }
 0x143   : > { %v5113_v31 = vpop.f32.mrf.mxu0 }
 0x144   : > { %v5419_v29 = vpop.f32.mrf.mxu1  ;;  %v5114_v33 = vadd.f32 %v5113_v31, %v5112_v28 }
 0x145   : > { %v5115_v34 = vpop.f32.mrf.mxu0 }
 0x146   : > { %v1123_v32 = vpop.f32.mrf.mxu1  ;;  %v1080_v36 = vadd.f32 %v5114_v33, %v4775_v30 }
 0x147   : > { %v5116_v37 = vpop.f32.mrf.mxu0 }
 0x148   : > { %v5420_v35 = vpop.f32.mrf.mxu1  ;;  %v1121_v38 = vadd.f32 %v1120_v27, %v1080_v36  ;;  %v5117_v39 = vadd.f32 %v5116_v37, %v5115_v34 }
 0x14a   : > { %v1127_v40 = vmax.f32 %v1121_v38, 0.0  ;;  %v1083_v41 = vadd.f32 %v5117_v39, %v4775_v30  ;;  %v1532_v39 = vld [vmem:[#allocation4] sm:$0x1] }
 0x14c   : > { %v5074_v42 = vpack.c.bf16 %v1127_v40, %v1127_v40  ;;  %v1124_v44 = vadd.f32 %v1123_v32, %v1083_v41  ;;  %v1533_v40 = vsel %vm6504_vm9, 0, %v1532_v39  ;;  %v1535_v41 = vld [vmem:[#allocation4 + $0x8] sm:$0x1] }
 0x14d   : > { %1534 = vst [vmem:[#allocation4] sm:$0x1] %v1533_v40 }
 0x14e   : > { %v1149_v46 = vshrl.u32 %v5074_v42, 16  ;;  %v1128_v47 = vmax.f32 %v1124_v44, 0.0  ;;  %v1152_v49 = vshll.u32 %v5074_v42, 16  ;;  %v5774_v42 = vld [vmem:[%s7411_s2 + $0xb8] sm:$0xff]   ;;  %v1536_v44 = vsel %vm6511_vm11, 0, %v1535_v41 }
 0x14f   : > { %1537 = vst [vmem:[#allocation4 + $0x8] sm:$0x1] %v1536_v44 }
 0x150   : > { %v1151_v48 = vrot.slane %v1149_v46, 7  ;;  %v5075_v50 = vpack.c.bf16 %v1128_v47, %v1128_v47  ;;  %v5776_v46 = vld [vmem:[%s7411_s2 + $0xb0] sm:$0xff]   ;;  %v5775_v47 = vld [vmem:[%s7411_s2 + $0x78] sm:$0xff]  }
 0x151   : > { %5158 = vmatprep.subr.bf16.mxu0 %v5775_v47 }
 0x152   : > { %v1154_v53 = vor.u32 %v1152_v49, %v1151_v48  ;;  %v1157_v54 = vshrl.u32 %v5075_v50, 16  ;;  %v1160_v57 = vshll.u32 %v5075_v50, 16  ;;  %v1155_v61 = vrot.slane %v1151_v48, 4  ;;  %v5777_v48 = vld [vmem:[%s7411_s2 + $0x38] sm:$0xff]   ;;  %v5779_v49 = vld [vmem:[%s7411_s2 + $0xa8] sm:$0xff]   ;;  %v5778_v50 = vld [vmem:[%s7411_s2 + $0x70] sm:$0xff]  }
 0x154   : > { %v1171_v55 = vsel %vm6601_vm13, %v1154_v53, %v1170_v52  ;;  %v1159_v56 = vrot.slane %v1157_v54, 7  ;;  %v5780_v52 = vld [vmem:[%s7411_s2 + $0x30] sm:$0xff]   ;;  %v5782_v53 = vld [vmem:[%s7411_s2 + $0xa0] sm:$0xff]   ;;  %v5781_v54 = vld [vmem:[%s7411_s2 + $0x68] sm:$0xff]  }
 0x155   : > { %1172 = vst [vmem:[#allocation3] sm:$0xf] %v1171_v55  ;;  %v5783_v55 = vld [vmem:[%s7411_s2 + $0x28] sm:$0xff]  }
 0x156   : > { %v1162_v62 = vor.u32 %v1160_v57, %v1159_v56  ;;  %v1164_v1 = vrot.slane %v1159_v56, 4  ;;  %v5785_v56 = vld [vmem:[%s7411_s2 + $0x98] sm:$0xff]   ;;  %v5784_v57 = vld [vmem:[%s7411_s2 + $0x60] sm:$0xff]  }
 0x158   : > { %v1163_v2 = vsel %vm6608_vm15, %v1155_v61, %v1162_v62  ;;  %v1175_v3 = vsel %vm6504_vm9, %v1164_v1, %v1174_v59  ;;  %v5786_v59 = vld [vmem:[%s7411_s2 + $0x20] sm:$0xff]   ;;  %v5788_v61 = vld [vmem:[%s7411_s2 + $0x90] sm:$0xff]   ;;  %v5787_v62 = vld [vmem:[%s7411_s2 + $0x58] sm:$0xff]  }
 0x159   : > { %1173 = vst [vmem:[#allocation3 + $0x4] sm:$0xf] %v1163_v2  ;;  %1176 = vst [vmem:[#allocation3 + $0x8] sm:$0x1] %v1175_v3  ;;  %v5789_v1 = vld [vmem:[%s7411_s2 + $0x18] sm:$0xff]   ;;  %v5791_v2 = vld [vmem:[%s7411_s2 + $0x88] sm:$0xff]  }
 0x15a   : > { %v5790_v3 = vld [vmem:[%s7411_s2 + $0x50] sm:$0xff]  }
 0x15c   : > { %v1177_v4 = vld [vmem:[#allocation3] sm:$0xf] }
 0x15d   : > { %v1181_v5 = vld [vmem:[#allocation3] sm:$0xf]  ;;  %1179 = vst [vmem:[#allocation2] sm:$0xf] %v1177_v4  ;;  %v5792_v4 = vld [vmem:[%s7411_s2 + $0x10] sm:$0xff]  }
 0x15e   : > { %v1185_v6 = vshrl.u32 %v1181_v5, 16  ;;  %v1188_v7 = vshll.u32 %v1181_v5, 16  ;;  %v1212_v10 = vld [vmem:[#allocation3] sm:$0xe]  ;;  %v5793_v5 = vld [vmem:[%s7411_s2 + $0x48] sm:$0xff]  }
 0x15f   : > { %v4805_v18 = vrot.slane %v1212_v10, 9 }
 0x160   : > { %v1187_v8 = vrot.slane %v1185_v6, 4  ;;  %v1190_v9 = vrot.slane %v1188_v7, 5  ;;  %v1178_v11 = vld [vmem:[#allocation3 + $0x4] sm:$0xf]  ;;  %v1183_v13 = vld [vmem:[#allocation3 + $0x8] sm:$0x1] }
 0x161   : > { %v1182_v12 = vld [vmem:[#allocation3 + $0x4] sm:$0xf]  ;;  %1180 = vst [vmem:[#allocation2 + $0xc] sm:$0xf] %v1178_v11  ;;  %v1214_v20 = vld [vmem:[#allocation3 + $0x8] sm:$0x1] }
 0x162   : > { %v1191_v14 = vor.u32 %v1190_v9, %v1187_v8  ;;  %v1194_v15 = vshll.u32 %v1182_v12, 16  ;;  %v1198_v16 = vshrl.u32 %v1182_v12, 16  ;;  %v1213_v17 = vld [vmem:[#allocation3 + $0x4] sm:$0xf]  ;;  %v1204_v24 = vshll.u32 %v1183_v13, 16  ;;  %v5794_v6 = vld [vmem:[%s7411_s2 + $0x80] sm:$0xff]  }
 0x163   : > { %v1220_v19 = vrot.slane %v1213_v17, 5  ;;  %v1223_v27 = vrot.slane %v1214_v20, 5  ;;  %v5795_v7 = vld [vmem:[%s7411_s2 + $0x8] sm:$0xff]   ;;  %v5797_v8 = vld [vmem:[%s7411_s2 + $0x40] sm:$0xff]  }
 0x164   : > { %v1192_v21 = vrot.slane %v1191_v14, 4  ;;  %v1196_v22 = vrot.slane %v1194_v15, 5  ;;  %v1200_v23 = vrot.slane %v1198_v16, 4  ;;  %v1206_v32 = vrot.slane %v1204_v24, 5  ;;  %v5798_v9 = vld [vmem:[%s7411_s2] sm:$0xff]  }
 0x165   : > { %v1221_v25 = vsel %vm6481_vm5, %v4805_v18, %v1220_v19  ;;  %v1222_v26 = vrot.slane %v1220_v19, 4  ;;  %v4806_v15 = vld [vmem:[%s7412_s13] ss:$0 sm:$0xff]  ;;  %s4665_s13 = sshll.u32 %s761_s29, 4  ;;  %s4666_s13 = int_to_ptr.vmem [resolvable:$true] %s4665_s13 }
 0x166   : > { %v1197_v28 = vsel %vm6488_vm6, %v1192_v21, %v1196_v22  ;;  %v1201_v29 = vor.u32 %v1200_v23, %v1196_v22  ;;  %1227 = vst [vmem:[#allocation2 + $0x8] sm:$0xf] %v1221_v25  ;;  %s6069_s2 = scalar_lea.vmem %s4666_s13, 16  ;;  %p6076_p4 = scmp.lt.s32.totalorder %s4666_s13, %s6074_s28 }
 0x167   : > { %1210 = vst [vmem:[#allocation2 + $0x4] sm:$0xf] %v1197_v28  ;;  %v1224_v30 = vsel %vm6481_vm5, %v1222_v26, %v1223_v27  ;;  %p6070_p10 = scmp.ne.s32.totalorder %s4666_s13, %s6069_s2  ;;  %p6077_p7 = scmp.lt.s32.totalorder %s6075_s25, %s6069_s2 }
 0x168   : > { %v1202_v31 = vrot.slane %v1201_v29, 4  ;;  %1228 = vst [vmem:[#allocation2 + $0x14] sm:$0xf] %v1224_v30 }
 0x169   : > { %p6071_p12 = pnand %p6070_p10, %p6310_p5  ;;  %p6078_p8 = por %p6077_p7, %p6076_p4 }
 0x16a   : > { %v1207_v33 = vsel %vm6488_vm6, %v1202_v31, %v1206_v32  ;;  %v1564_v32 = vld [vmem:[#allocation4] sm:$0xf] }
 0x16b   : > { %1211 = vst [vmem:[#allocation2 + $0x10] sm:$0xf] %v1207_v33  ;;  %p6072_p13 = pneg %p6071_p12 }
 0x16d   : > { %p6079_p11 = pnand %p6078_p8, %p6072_p13 }
 0x16e   : > { %v1229_v35 = vld [vmem:[#allocation2] sm:$0xff] }
 0x16f   : > { %v5771_v34 = vld [vmem:[#allocation2 + $0x8] ss:$12 sps:$4 sm:$0xff]  }
 0x170   : > { %5438 = vmatmul.mubr.bf16.vlgmr.msra.gmra.mxu1 %v5771_v34 }
 0x171   : > { %5457 = vmatprep.mubr.msk.bf16.mxu1 %vm6150_vm0, %v6149_v0  ;;  %5442 = vmatpush3.bf16.msra.mxu1 %v5774_v42 }
 0x172   : > { %v1231_v36 = vld [vmem:[#allocation2 + $0xc] sm:$0xff]  ;;  %5443 = vmatprep.subr.bf16.mxu1 %v6149_v0 }
 0x173   : > { %v4808_v37 = vcombine.high %v1229_v35, %v1231_v36  ;;  %v4807_v38 = vcombine.low %v1229_v35, %v1231_v36 }
 0x175   : > { %1480 = vmatprep.mubr.bf16.mxu0 %v4808_v37  ;;  %5444 = vmatpush3.bf16.msra.mxu1 %v5776_v46 }
 0x176   : > { %1481 = vmatmul.mubr.bf16.vlgmr.msra.gmra.mxu0 %v4807_v38  ;;  %5445 = vmatprep.subr.bf16.mxu1 %v6149_v0  ;;  %v1568_v38 = vld [vmem:[#allocation4 + $0x8] sm:$0x1] }
 0x177   : > { %5159 = vmatpush3.bf16.msra.mxu0 %v5777_v48 }
 0x178   : > { %5160 = vmatprep.subr.bf16.mxu0 %v5778_v50 }
 0x179   : > { %5446 = vmatpush3.bf16.msra.mxu1 %v5779_v49 }
 0x17a   : > { %5447 = vmatprep.subr.bf16.mxu1 %v6149_v0 }
 0x17b   : > { %5161 = vmatpush3.bf16.msra.mxu0 %v5780_v52 }
 0x17c   : > { %5162 = vmatprep.subr.bf16.mxu0 %v5781_v54 }
 0x17d   : > { %5448 = vmatpush3.bf16.msra.mxu1 %v5782_v53 }
 0x17e   : > { %5449 = vmatprep.subr.bf16.mxu1 %v6149_v0 }
 0x17f   : > { %5163 = vmatpush3.bf16.msra.mxu0 %v5783_v55 }
 0x180   : > { %5164 = vmatprep.subr.bf16.mxu0 %v5784_v57 }
 0x181   : > { %5450 = vmatpush3.bf16.msra.mxu1 %v5785_v56 }
 0x182   : > { %5451 = vmatprep.subr.bf16.mxu1 %v6149_v0 }
 0x183   : > { %5165 = vmatpush3.bf16.msra.mxu0 %v5786_v59 }
 0x184   : > { %5166 = vmatprep.subr.bf16.mxu0 %v5787_v62 }
 0x185   : > { %5452 = vmatpush3.bf16.msra.mxu1 %v5788_v61 }
 0x186   : > { %5453 = vmatprep.subr.bf16.mxu1 %v6149_v0 }
 0x187   : > { %5167 = vmatpush3.bf16.msra.mxu0 %v5789_v1 }
 0x188   : > { %5168 = vmatprep.subr.bf16.mxu0 %v5790_v3 }
 0x189   : > { %5454 = vmatpush3.bf16.msra.mxu1 %v5791_v2 }
 0x18a   : > { %5455 = vmatprep.subr.bf16.mxu1 %v6149_v0 }
 0x18b   : > { %5169 = vmatpush3.bf16.msra.mxu0 %v5792_v4 }
 0x18c   : > { %5170 = vmatprep.subr.bf16.mxu0 %v5793_v5 }
 0x18d   : > { %5456 = vmatpush3.bf16.msra.mxu1 %v5794_v6 }
 0x18e   : > { %5461 = vmatprep.subr.bf16.mxu1 %v6149_v0 }
 0x18f   : > { %5171 = vmatpush3.bf16.msra.mxu0 %v5795_v7 }
 0x190   : > { %5172 = vmatprep.subr.bf16.mxu0 %v5797_v8 }
 0x193   : > { %5173 = vmatpush3.bf16.msra.mxu0 %v5798_v9 }
 0x230   : > { %v1523_v10 = vpop.f32.mrf.mxu1 }
 0x232   : > { %v5439_v11 = vpop.f32.mrf.mxu1 }
 0x234   : > { %v1526_v12 = vpop.f32.mrf.mxu1 }
 0x236   : > { %v5143_v13 = vpop.f32.mrf.mxu0  ;;  %v5440_v14 = vpop.f32.mrf.mxu1 }
 0x238   : > { %v5144_v16 = vpop.f32.mrf.mxu0 }
 0x239   : > { %v5145_v17 = vadd.f32 %v5144_v16, %v5143_v13 }
 0x23a   : > { %v5146_v18 = vpop.f32.mrf.mxu0 }
 0x23b   : > { %v1483_v19 = vadd.f32 %v5145_v17, %v4806_v15 }
 0x23c   : > { %v5147_v20 = vpop.f32.mrf.mxu0 }
 0x23d   : > { %v1524_v21 = vadd.f32 %v1523_v10, %v1483_v19  ;;  %v5148_v22 = vadd.f32 %v5147_v20, %v5146_v18 }
 0x23f   : > { %v1530_v23 = vmax.f32 %v1524_v21, 0.0  ;;  %v1486_v24 = vadd.f32 %v5148_v22, %v4806_v15  ;;  %v1945_v22 = vld [vmem:[#allocation5] sm:$0x1] }
 0x241   : > { %v5076_v25 = vpack.c.bf16 %v1530_v23, %v1530_v23  ;;  %v1527_v26 = vadd.f32 %v1526_v12, %v1486_v24  ;;  %v1946_v23 = vsel %vm6504_vm9, 0, %v1945_v22  ;;  %v1948_v24 = vld [vmem:[#allocation5 + $0x8] sm:$0x1] }
 0x242   : > { %1947 = vst [vmem:[#allocation5] sm:$0x1] %v1946_v23 }
 0x243   : > { %v1545_v27 = vshrl.u32 %v5076_v25, 16  ;;  %v1531_v28 = vmax.f32 %v1527_v26, 0.0  ;;  %v1548_v30 = vshll.u32 %v5076_v25, 16  ;;  %v5799_v25 = vld [vmem:[%s7413_s4 + $0xb8] sm:$0xff]   ;;  %v1949_v26 = vsel %vm6511_vm11, 0, %v1948_v24  ;;  %s7302_s4 = scalar_lea.hbm %s7360_s23, %s5071_s0 }
 0x244   : > { %1950 = vst [vmem:[#allocation5 + $0x8] sm:$0x1] %v1949_v26 }
 0x245   : > { %v1547_v29 = vrot.slane %v1545_v27, 7  ;;  %v5077_v31 = vpack.c.bf16 %v1531_v28, %v1531_v28  ;;  %v5801_v27 = vld [vmem:[%s7414_s26 + $0xb0] sm:$0xff]   ;;  %v5800_v28 = vld [vmem:[%s7414_s26 + $0x78] sm:$0xff]  }
 0x246   : > { %5189 = vmatprep.subr.bf16.mxu0 %v5800_v28 }
 0x247   : > { %v1550_v33 = vor.u32 %v1548_v30, %v1547_v29  ;;  %v1553_v34 = vshrl.u32 %v5077_v31, 16  ;;  %v1556_v37 = vshll.u32 %v5077_v31, 16  ;;  %v1551_v39 = vrot.slane %v1547_v29, 4  ;;  %v5802_v29 = vld [vmem:[%s7414_s26 + $0x38] sm:$0xff]   ;;  %v5804_v30 = vld [vmem:[%s7414_s26 + $0xa8] sm:$0xff]   ;;  %v5803_v31 = vld [vmem:[%s7414_s26 + $0x70] sm:$0xff]  }
 0x249   : > { %v1565_v35 = vsel %vm6601_vm13, %v1550_v33, %v1564_v32  ;;  %v1555_v36 = vrot.slane %v1553_v34, 7  ;;  %v5805_v32 = vld [vmem:[%s7414_s26 + $0x30] sm:$0xff]   ;;  %v5807_v33 = vld [vmem:[%s7414_s26 + $0xa0] sm:$0xff]   ;;  %v5806_v34 = vld [vmem:[%s7414_s26 + $0x68] sm:$0xff]  }
 0x24a   : > { %1566 = vst [vmem:[#allocation4] sm:$0xf] %v1565_v35  ;;  %v5808_v35 = vld [vmem:[%s7414_s26 + $0x28] sm:$0xff]  }
 0x24b   : > { %v1558_v40 = vor.u32 %v1556_v37, %v1555_v36  ;;  %v1560_v41 = vrot.slane %v1555_v36, 4  ;;  %v5810_v36 = vld [vmem:[%s7414_s26 + $0x98] sm:$0xff]   ;;  %v5809_v37 = vld [vmem:[%s7414_s26 + $0x60] sm:$0xff]  }
 0x24d   : > { %v1559_v42 = vsel %vm6608_vm15, %v1551_v39, %v1558_v40  ;;  %v1569_v44 = vsel %vm6504_vm9, %v1560_v41, %v1568_v38  ;;  %v5811_v38 = vld [vmem:[%s7414_s26 + $0x20] sm:$0xff]   ;;  %v5813_v39 = vld [vmem:[%s7414_s26 + $0x90] sm:$0xff]   ;;  %v5812_v40 = vld [vmem:[%s7414_s26 + $0x58] sm:$0xff]  }
 0x24e   : > { %1567 = vst [vmem:[#allocation4 + $0x4] sm:$0xf] %v1559_v42  ;;  %1570 = vst [vmem:[#allocation4 + $0x8] sm:$0x1] %v1569_v44  ;;  %v5814_v41 = vld [vmem:[%s7414_s26 + $0x18] sm:$0xff]   ;;  %v5816_v42 = vld [vmem:[%s7414_s26 + $0x88] sm:$0xff]  }
 0x24f   : > { %v5815_v44 = vld [vmem:[%s7414_s26 + $0x50] sm:$0xff]  }
 0x251   : > { %v1571_v46 = vld [vmem:[#allocation4] sm:$0xf] }
 0x252   : > { %v1575_v47 = vld [vmem:[#allocation4] sm:$0xf]  ;;  %1573 = vst [vmem:[#allocation2] sm:$0xf] %v1571_v46  ;;  %v5817_v46 = vld [vmem:[%s7414_s26 + $0x10] sm:$0xff]  }
 0x253   : > { %v1579_v48 = vshrl.u32 %v1575_v47, 16  ;;  %v1582_v49 = vshll.u32 %v1575_v47, 16  ;;  %v1606_v53 = vld [vmem:[#allocation4] sm:$0xe]  ;;  %v5818_v47 = vld [vmem:[%s7414_s26 + $0x48] sm:$0xff]  }
 0x254   : > { %v4836_v1 = vrot.slane %v1606_v53, 9 }
 0x255   : > { %v1581_v50 = vrot.slane %v1579_v48, 4  ;;  %v1584_v52 = vrot.slane %v1582_v49, 5  ;;  %v1572_v54 = vld [vmem:[#allocation4 + $0x4] sm:$0xf]  ;;  %v1577_v56 = vld [vmem:[#allocation4 + $0x8] sm:$0x1] }
 0x256   : > { %v1576_v55 = vld [vmem:[#allocation4 + $0x4] sm:$0xf]  ;;  %1574 = vst [vmem:[#allocation2 + $0xc] sm:$0xf] %v1572_v54  ;;  %v1608_v3 = vld [vmem:[#allocation4 + $0x8] sm:$0x1] }
 0x257   : > { %v1585_v57 = vor.u32 %v1584_v52, %v1581_v50  ;;  %v1588_v59 = vshll.u32 %v1576_v55, 16  ;;  %v1592_v61 = vshrl.u32 %v1576_v55, 16  ;;  %v1607_v62 = vld [vmem:[#allocation4 + $0x4] sm:$0xf]  ;;  %v1598_v7 = vshll.u32 %v1577_v56, 16  ;;  %v5819_v48 = vld [vmem:[%s7414_s26 + $0x80] sm:$0xff]  }
 0x258   : > { %v1614_v2 = vrot.slane %v1607_v62, 5  ;;  %v1617_v10 = vrot.slane %v1608_v3, 5  ;;  %v5820_v49 = vld [vmem:[%s7414_s26 + $0x8] sm:$0xff]   ;;  %v5822_v50 = vld [vmem:[%s7414_s26 + $0x40] sm:$0xff]   ;;  %v5089_v55 = vld [vmem:[#allocation3] sm:$0xff]  }
 0x259   : > { %v1586_v4 = vrot.slane %v1585_v57, 4  ;;  %v1590_v5 = vrot.slane %v1588_v59, 5  ;;  %v1594_v6 = vrot.slane %v1592_v61, 4  ;;  %v1600_v15 = vrot.slane %v1598_v7, 5  ;;  %v5823_v52 = vld [vmem:[%s7414_s26] sm:$0xff]  }
 0x25a   : > { %v1615_v8 = vsel %vm6481_vm5, %v4836_v1, %v1614_v2  ;;  %v1616_v9 = vrot.slane %v1614_v2, 4  ;;  %v5090_v59 = vunpack.c.l.bf16 %v5089_v55  ;;  %v5091_v61 = vunpack.c.h.bf16 %v5089_v55  ;;  %v1926_v1 = vld [vmem:[#allocation3 + $0x8] sm:$0x1] }
 0x25b   : > { %v1591_v11 = vsel %vm6488_vm6, %v1586_v4, %v1590_v5  ;;  %v1595_v12 = vor.u32 %v1594_v6, %v1590_v5  ;;  %1621 = vst [vmem:[#allocation2 + $0x8] sm:$0xf] %v1615_v8  ;;  %v4837_v2 = vld [vmem:[%s7415_s6] ss:$0 sm:$0xff]  ;;  %v1929_v8 = vunpack.c.l.bf16 %v1926_v1 }
 0x25c   : > { %1604 = vst [vmem:[#allocation2 + $0x4] sm:$0xf] %v1591_v11  ;;  %v1618_v13 = vsel %vm6481_vm5, %v1616_v9, %v1617_v10  ;;  %v1934_v5 = vrot.slane %v5090_v59, 1  ;;  %v1935_v6 = vrot.slane %v5091_v61, 1 }
 0x25d   : > { %v1596_v14 = vrot.slane %v1595_v12, 4  ;;  %1622 = vst [vmem:[#allocation2 + $0x14] sm:$0xf] %v1618_v13 }
 0x25e   : > { %v1936_v13 = vsel %vm1933_vm2, %v1934_v5, %v1935_v6 }
 0x25f   : > { %v1601_v16 = vsel %vm6488_vm6, %v1596_v14, %v1600_v15  ;;  %v1937_v14 = vrot.slane %v1929_v8, 1 }
 0x260   : > { %1605 = vst [vmem:[#allocation2 + $0x10] sm:$0xf] %v1601_v16 }
 0x263   : > { %v1623_v18 = vld [vmem:[#allocation2] sm:$0xff] }
 0x264   : > { %v5796_v17 = vld [vmem:[#allocation2 + $0x8] ss:$12 sps:$4 sm:$0xff]  }
 0x265   : > { %5458 = vmatmul.mubr.bf16.vlgmr.msra.gmra.mxu1 %v5796_v17 }
 0x266   : > { %5477 = vmatprep.mubr.msk.bf16.mxu1 %vm6150_vm0, %v6149_v0  ;;  %5462 = vmatpush3.bf16.msra.mxu1 %v5799_v25 }
 0x267   : > { %v1625_v19 = vld [vmem:[#allocation2 + $0xc] sm:$0xff]  ;;  %5463 = vmatprep.subr.bf16.mxu1 %v6149_v0 }
 0x268   : > { %v4839_v20 = vcombine.high %v1623_v18, %v1625_v19  ;;  %v4838_v21 = vcombine.low %v1623_v18, %v1625_v19  ;;  %v1938_v19 = vsel %vm1933_vm2, %v1935_v6, %v1937_v14 }
 0x26a   : > { %1874 = vmatprep.mubr.bf16.mxu0 %v4839_v20  ;;  %5464 = vmatpush3.bf16.msra.mxu1 %v5801_v27  ;;  %v1977_v27 = vld [vmem:[#allocation5] sm:$0xf] }
 0x26b   : > { %1875 = vmatmul.mubr.bf16.vlgmr.msra.gmra.mxu0 %v4838_v21  ;;  %5465 = vmatprep.subr.bf16.mxu1 %v6149_v0 }
 0x26c   : > { %5190 = vmatpush3.bf16.msra.mxu0 %v5802_v29 }
 0x26d   : > { %5191 = vmatprep.subr.bf16.mxu0 %v5803_v31 }
 0x26e   : > { %5466 = vmatpush3.bf16.msra.mxu1 %v5804_v30 }
 0x26f   : > { %5467 = vmatprep.subr.bf16.mxu1 %v6149_v0 }
 0x270   : > { %5192 = vmatpush3.bf16.msra.mxu0 %v5805_v32 }
 0x271   : > { %5193 = vmatprep.subr.bf16.mxu0 %v5806_v34 }
 0x272   : > { %5468 = vmatpush3.bf16.msra.mxu1 %v5807_v33  ;;  %v1981_v33 = vld [vmem:[#allocation5 + $0x8] sm:$0x1] }
 0x273   : > { %5469 = vmatprep.subr.bf16.mxu1 %v6149_v0 }
 0x274   : > { %5194 = vmatpush3.bf16.msra.mxu0 %v5808_v35 }
 0x275   : > { %5195 = vmatprep.subr.bf16.mxu0 %v5809_v37 }
 0x276   : > { %5470 = vmatpush3.bf16.msra.mxu1 %v5810_v36 }
 0x277   : > { %5471 = vmatprep.subr.bf16.mxu1 %v6149_v0 }
 0x278   : > { %5196 = vmatpush3.bf16.msra.mxu0 %v5811_v38 }
 0x279   : > { %5197 = vmatprep.subr.bf16.mxu0 %v5812_v40 }
 0x27a   : > { %5472 = vmatpush3.bf16.msra.mxu1 %v5813_v39 }
 0x27b   : > { %5473 = vmatprep.subr.bf16.mxu1 %v6149_v0 }
 0x27c   : > { %5198 = vmatpush3.bf16.msra.mxu0 %v5814_v41 }
 0x27d   : > { %5199 = vmatprep.subr.bf16.mxu0 %v5815_v44 }
 0x27e   : > { %5474 = vmatpush3.bf16.msra.mxu1 %v5816_v42 }
 0x27f   : > { %5475 = vmatprep.subr.bf16.mxu1 %v6149_v0 }
 0x280   : > { %5200 = vmatpush3.bf16.msra.mxu0 %v5817_v46 }
 0x281   : > { %5201 = vmatprep.subr.bf16.mxu0 %v5818_v47 }
 0x282   : > { %5476 = vmatpush3.bf16.msra.mxu1 %v5819_v48 }
 0x283   : > { %5481 = vmatprep.subr.bf16.mxu1 %v6149_v0 }
 0x284   : > { %5202 = vmatpush3.bf16.msra.mxu0 %v5820_v49 }
 0x285   : > { %5203 = vmatprep.subr.bf16.mxu0 %v5822_v50 }
 0x288   : > { %5204 = vmatpush3.bf16.msra.mxu0 %v5823_v52 }
 0x325   : > { %v1917_v53 = vpop.f32.mrf.mxu1 }
 0x327   : > { %v5459_v54 = vpop.f32.mrf.mxu1 }
 0x329   : > { %v1920_v56 = vpop.f32.mrf.mxu1 }
 0x32b   : > { %v5174_v57 = vpop.f32.mrf.mxu0  ;;  %v5460_v62 = vpop.f32.mrf.mxu1 }
 0x32d   : > { %v5175_v3 = vpop.f32.mrf.mxu0 }
 0x32e   : > { %v5176_v4 = vadd.f32 %v5175_v3, %v5174_v57 }
 0x32f   : > { %v5177_v7 = vpop.f32.mrf.mxu0 }
 0x330   : > { %v1877_v9 = vadd.f32 %v5176_v4, %v4837_v2 }
 0x331   : > { %v5178_v10 = vpop.f32.mrf.mxu0 }
 0x332   : > { %v1918_v11 = vadd.f32 %v1917_v53, %v1877_v9  ;;  %v5179_v12 = vadd.f32 %v5178_v10, %v5177_v7 }
 0x334   : > { %v1941_v15 = vadd.f32 %v1936_v13, %v1918_v11  ;;  %v1880_v16 = vadd.f32 %v5179_v12, %v4837_v2 }
 0x336   : > { %v1943_v17 = vmax.f32 %v1941_v15, 0.0  ;;  %v1921_v18 = vadd.f32 %v1920_v56, %v1880_v16 }
 0x338   : > { %v5078_v20 = vpack.c.bf16 %v1943_v17, %v1943_v17  ;;  %v1942_v21 = vadd.f32 %v1938_v19, %v1921_v18  ;;  %v2339_v17 = vld [vmem:[#allocation6] sm:$0x1]  ;;  %v2342_v19 = vld [vmem:[#allocation6 + $0x8] sm:$0x1] }
 0x339   : > { %v2340_v18 = vsel %vm6504_vm9, 0, %v2339_v17 }
 0x33a   : > { %v1958_v22 = vshrl.u32 %v5078_v20, 16  ;;  %v1944_v23 = vmax.f32 %v1942_v21, 0.0  ;;  %v1961_v25 = vshll.u32 %v5078_v20, 16  ;;  %2341 = vst [vmem:[#allocation6] sm:$0x1] %v2340_v18  ;;  %v5824_v20 = vld [vmem:[%s7346_s9 + $0xb8] sm:$0xff]  }
 0x33b   : > { %v2343_v21 = vsel %vm6511_vm11, 0, %v2342_v19 }
 0x33c   : > { %v1960_v24 = vrot.slane %v1958_v22, 7  ;;  %v5079_v26 = vpack.c.bf16 %v1944_v23, %v1944_v23  ;;  %2344 = vst [vmem:[#allocation6 + $0x8] sm:$0x1] %v2343_v21  ;;  %v5826_v22 = vld [vmem:[%s7346_s9 + $0xb0] sm:$0xff]   ;;  %v5825_v23 = vld [vmem:[%s7346_s9 + $0x78] sm:$0xff]  }
 0x33d   : > { %5220 = vmatprep.subr.bf16.mxu0 %v5825_v23 }
 0x33e   : > { %v1963_v28 = vor.u32 %v1961_v25, %v1960_v24  ;;  %v1966_v29 = vshrl.u32 %v5079_v26, 16  ;;  %v1969_v32 = vshll.u32 %v5079_v26, 16  ;;  %v1964_v34 = vrot.slane %v1960_v24, 4  ;;  %v5827_v24 = vld [vmem:[%s7346_s9 + $0x38] sm:$0xff]   ;;  %v5829_v25 = vld [vmem:[%s7346_s9 + $0xa8] sm:$0xff]   ;;  %v5828_v26 = vld [vmem:[%s7346_s9 + $0x70] sm:$0xff]  }
 0x340   : > { %v1978_v30 = vsel %vm6601_vm13, %v1963_v28, %v1977_v27  ;;  %v1968_v31 = vrot.slane %v1966_v29, 7  ;;  %v5830_v27 = vld [vmem:[%s7346_s9 + $0x30] sm:$0xff]   ;;  %v5832_v28 = vld [vmem:[%s7346_s9 + $0xa0] sm:$0xff]   ;;  %v5831_v29 = vld [vmem:[%s7346_s9 + $0x68] sm:$0xff]  }
 0x341   : > { %1979 = vst [vmem:[#allocation5] sm:$0xf] %v1978_v30  ;;  %v5833_v30 = vld [vmem:[%s7346_s9 + $0x28] sm:$0xff]  }
 0x342   : > { %v1971_v35 = vor.u32 %v1969_v32, %v1968_v31  ;;  %v1973_v36 = vrot.slane %v1968_v31, 4  ;;  %v5835_v31 = vld [vmem:[%s7346_s9 + $0x98] sm:$0xff]   ;;  %v5834_v32 = vld [vmem:[%s7346_s9 + $0x60] sm:$0xff]  }
 0x344   : > { %v1972_v37 = vsel %vm6608_vm15, %v1964_v34, %v1971_v35  ;;  %v1982_v38 = vsel %vm6504_vm9, %v1973_v36, %v1981_v33  ;;  %v5836_v33 = vld [vmem:[%s7346_s9 + $0x20] sm:$0xff]   ;;  %v5838_v34 = vld [vmem:[%s7346_s9 + $0x90] sm:$0xff]   ;;  %v5837_v35 = vld [vmem:[%s7346_s9 + $0x58] sm:$0xff]  }
 0x345   : > { %1980 = vst [vmem:[#allocation5 + $0x4] sm:$0xf] %v1972_v37  ;;  %1983 = vst [vmem:[#allocation5 + $0x8] sm:$0x1] %v1982_v38  ;;  %v5839_v36 = vld [vmem:[%s7346_s9 + $0x18] sm:$0xff]   ;;  %v5841_v37 = vld [vmem:[%s7346_s9 + $0x88] sm:$0xff]  }
 0x346   : > { %v5840_v38 = vld [vmem:[%s7346_s9 + $0x50] sm:$0xff]  }
 0x348   : > { %v1984_v39 = vld [vmem:[#allocation5] sm:$0xf] }
 0x349   : > { %v1988_v40 = vld [vmem:[#allocation5] sm:$0xf]  ;;  %1986 = vst [vmem:[#allocation2] sm:$0xf] %v1984_v39 }
 0x34a   : > { %v2019_v41 = vld [vmem:[#allocation5] sm:$0xe]  ;;  %v1992_v42 = vshrl.u32 %v1988_v40, 16  ;;  %v1995_v44 = vshll.u32 %v1988_v40, 16  ;;  %v5843_v40 = vld [vmem:[%s7346_s9 + $0x48] sm:$0xff]  }
 0x34b   : > { %v4867_v48 = vrot.slane %v2019_v41, 9  ;;  %v5842_v39 = vld [vmem:[%s7346_s9 + $0x10] sm:$0xff]   ;;  %v5844_v41 = vld [vmem:[%s7346_s9 + $0x80] sm:$0xff]  }
 0x34c   : > { %v1994_v46 = vrot.slane %v1992_v42, 4  ;;  %v1997_v47 = vrot.slane %v1995_v44, 5  ;;  %v1989_v49 = vld [vmem:[#allocation5 + $0x4] sm:$0xf]  ;;  %v2021_v52 = vld [vmem:[#allocation5 + $0x8] sm:$0x1] }
 0x34d   : > { %v2020_v50 = vld [vmem:[#allocation5 + $0x4] sm:$0xf]  ;;  %v2001_v54 = vshll.u32 %v1989_v49, 16  ;;  %v2005_v55 = vshrl.u32 %v1989_v49, 16  ;;  %v1990_v59 = vld [vmem:[#allocation5 + $0x8] sm:$0x1] }
 0x34e   : > { %v1998_v53 = vor.u32 %v1997_v47, %v1994_v46  ;;  %v2027_v56 = vrot.slane %v2020_v50, 5  ;;  %v1985_v57 = vld [vmem:[#allocation5 + $0x4] sm:$0xf]  ;;  %v2030_v4 = vrot.slane %v2021_v52, 5  ;;  %v2011_v5 = vshll.u32 %v1990_v59, 16  ;;  %v5845_v42 = vld [vmem:[%s7346_s9 + $0x8] sm:$0xff]  }
 0x34f   : > { %1987 = vst [vmem:[#allocation2 + $0xc] sm:$0xf] %v1985_v57  ;;  %v2003_v62 = vrot.slane %v2001_v54, 5  ;;  %v2007_v1 = vrot.slane %v2005_v55, 4  ;;  %v5847_v44 = vld [vmem:[%s7346_s9 + $0x40] sm:$0xff]  }
 0x350   : > { %v1999_v61 = vrot.slane %v1998_v53, 4  ;;  %v2028_v2 = vsel %vm6481_vm5, %v4867_v48, %v2027_v56  ;;  %v2029_v3 = vrot.slane %v2027_v56, 4  ;;  %v2013_v10 = vrot.slane %v2011_v5, 5  ;;  %v5848_v46 = vld [vmem:[%s7346_s9] sm:$0xff]  }
 0x351   : > { %2034 = vst [vmem:[#allocation2 + $0x8] sm:$0xf] %v2028_v2  ;;  %v2008_v7 = vor.u32 %v2007_v1, %v2003_v62  ;;  %v4868_v53 = vld [vmem:[%s7345_s8] ss:$0 sm:$0xff] }
 0x352   : > { %v2004_v6 = vsel %vm6488_vm6, %v1999_v61, %v2003_v62  ;;  %v2031_v8 = vsel %vm6481_vm5, %v2029_v3, %v2030_v4 }
 0x353   : > { %2017 = vst [vmem:[#allocation2 + $0x4] sm:$0xf] %v2004_v6  ;;  %v2009_v9 = vrot.slane %v2008_v7, 4  ;;  %2035 = vst [vmem:[#allocation2 + $0x14] sm:$0xf] %v2031_v8 }
 0x355   : > { %v2014_v11 = vsel %vm6488_vm6, %v2009_v9, %v2013_v10  ;;  %v2371_v10 = vld [vmem:[#allocation6] sm:$0xf] }
 0x356   : > { %2018 = vst [vmem:[#allocation2 + $0x10] sm:$0xf] %v2014_v11 }
 0x35a   : > { %v5821_v12 = vld [vmem:[#allocation2 + $0x8] ss:$12 sps:$4 sm:$0xff]   ;;  %v2036_v13 = vld [vmem:[#allocation2] sm:$0xff] }
 0x35b   : > { %5478 = vmatmul.mubr.bf16.vlgmr.msra.gmra.mxu1 %v5821_v12 }
 0x35c   : > { %5497 = vmatprep.mubr.msk.bf16.mxu1 %vm6150_vm0, %v6149_v0  ;;  %5482 = vmatpush3.bf16.msra.mxu1 %v5824_v20 }
 0x35d   : > { %v2038_v14 = vld [vmem:[#allocation2 + $0xc] sm:$0xff]  ;;  %5483 = vmatprep.subr.bf16.mxu1 %v6149_v0 }
 0x35e   : > { %v4870_v15 = vcombine.high %v2036_v13, %v2038_v14  ;;  %v4869_v16 = vcombine.low %v2036_v13, %v2038_v14 }
 0x360   : > { %2287 = vmatprep.mubr.bf16.mxu0 %v4870_v15  ;;  %5484 = vmatpush3.bf16.msra.mxu1 %v5826_v22 }
 0x361   : > { %2288 = vmatmul.mubr.bf16.vlgmr.msra.gmra.mxu0 %v4869_v16  ;;  %5485 = vmatprep.subr.bf16.mxu1 %v6149_v0  ;;  %v2375_v16 = vld [vmem:[#allocation6 + $0x8] sm:$0x1] }
 0x362   : > { %5221 = vmatpush3.bf16.msra.mxu0 %v5827_v24 }
 0x363   : > { %5222 = vmatprep.subr.bf16.mxu0 %v5828_v26 }
 0x364   : > { %5486 = vmatpush3.bf16.msra.mxu1 %v5829_v25 }
 0x365   : > { %5487 = vmatprep.subr.bf16.mxu1 %v6149_v0 }
 0x366   : > { %5223 = vmatpush3.bf16.msra.mxu0 %v5830_v27 }
 0x367   : > { %5224 = vmatprep.subr.bf16.mxu0 %v5831_v29 }
 0x368   : > { %5488 = vmatpush3.bf16.msra.mxu1 %v5832_v28 }
 0x369   : > { %5489 = vmatprep.subr.bf16.mxu1 %v6149_v0 }
 0x36a   : > { %5225 = vmatpush3.bf16.msra.mxu0 %v5833_v30 }
 0x36b   : > { %5226 = vmatprep.subr.bf16.mxu0 %v5834_v32 }
 0x36c   : > { %5490 = vmatpush3.bf16.msra.mxu1 %v5835_v31 }
 0x36d   : > { %5491 = vmatprep.subr.bf16.mxu1 %v6149_v0 }
 0x36e   : > { %5227 = vmatpush3.bf16.msra.mxu0 %v5836_v33 }
 0x36f   : > { %5228 = vmatprep.subr.bf16.mxu0 %v5837_v35 }
 0x370   : > { %5492 = vmatpush3.bf16.msra.mxu1 %v5838_v34 }
 0x371   : > { %5493 = vmatprep.subr.bf16.mxu1 %v6149_v0 }
 0x372   : > { %5229 = vmatpush3.bf16.msra.mxu0 %v5839_v36 }
 0x373   : > { %5230 = vmatprep.subr.bf16.mxu0 %v5840_v38 }
 0x374   : > { %5494 = vmatpush3.bf16.msra.mxu1 %v5841_v37 }
 0x375   : > { %5495 = vmatprep.subr.bf16.mxu1 %v6149_v0 }
 0x376   : > { %5231 = vmatpush3.bf16.msra.mxu0 %v5842_v39 }
 0x377   : > { %5232 = vmatprep.subr.bf16.mxu0 %v5843_v40 }
 0x378   : > { %5496 = vmatpush3.bf16.msra.mxu1 %v5844_v41 }
 0x379   : > { %5501 = vmatprep.subr.bf16.mxu1 %v6149_v0 }
 0x37a   : > { %5233 = vmatpush3.bf16.msra.mxu0 %v5845_v42 }
 0x37b   : > { %5234 = vmatprep.subr.bf16.mxu0 %v5847_v44 }
 0x37e   : > { %5235 = vmatpush3.bf16.msra.mxu0 %v5848_v46 }
 0x41b   : > { %v2330_v47 = vpop.f32.mrf.mxu1 }
 0x41d   : > { %v5479_v48 = vpop.f32.mrf.mxu1 }
 0x41f   : > { %v2333_v49 = vpop.f32.mrf.mxu1 }
 0x421   : > { %v5205_v50 = vpop.f32.mrf.mxu0  ;;  %v5480_v52 = vpop.f32.mrf.mxu1 }
 0x423   : > { %v5206_v54 = vpop.f32.mrf.mxu0 }
 0x424   : > { %v5207_v55 = vadd.f32 %v5206_v54, %v5205_v50 }
 0x425   : > { %v5208_v56 = vpop.f32.mrf.mxu0 }
 0x426   : > { %v2290_v57 = vadd.f32 %v5207_v55, %v4868_v53 }
 0x427   : > { %v5209_v59 = vpop.f32.mrf.mxu0 }
 0x428   : > { %v2331_v61 = vadd.f32 %v2330_v47, %v2290_v57  ;;  %v5210_v62 = vadd.f32 %v5209_v59, %v5208_v56 }
 0x42a   : > { %v2337_v1 = vmax.f32 %v2331_v61, 0.0  ;;  %v2293_v2 = vadd.f32 %v5210_v62, %v4868_v53  ;;  %v2751_v62 = vld [vmem:[#allocation7] sm:$0x1] }
 0x42c   : > { %v5080_v3 = vpack.c.bf16 %v2337_v1, %v2337_v1  ;;  %v2334_v4 = vadd.f32 %v2333_v49, %v2293_v2  ;;  %v2752_v1 = vsel %vm6504_vm9, 0, %v2751_v62  ;;  %v2754_v2 = vld [vmem:[#allocation7 + $0x8] sm:$0x1] }
 0x42d   : > { %2753 = vst [vmem:[#allocation7] sm:$0x1] %v2752_v1 }
 0x42e   : > { %v2352_v5 = vshrl.u32 %v5080_v3, 16  ;;  %v2338_v6 = vmax.f32 %v2334_v4, 0.0  ;;  %v2355_v8 = vshll.u32 %v5080_v3, 16  ;;  %v2755_v3 = vsel %vm6511_vm11, 0, %v2754_v2  ;;  %v5849_v4 = vld [vmem:[%s7348_s11 + $0xb8] sm:$0xff]  }
 0x42f   : > { %2756 = vst [vmem:[#allocation7 + $0x8] sm:$0x1] %v2755_v3 }
 0x430   : > { %v2354_v7 = vrot.slane %v2352_v5, 7  ;;  %v5081_v9 = vpack.c.bf16 %v2338_v6, %v2338_v6  ;;  %v5850_v5 = vld [vmem:[%s7348_s11 + $0x78] sm:$0xff]  }
 0x431   : > { %v5851_v6 = vld [vmem:[%s7348_s11 + $0x38] sm:$0xff]   ;;  %5251 = vmatprep.subr.bf16.mxu0 %v5850_v5 }
 0x432   : > { %v2357_v11 = vor.u32 %v2355_v8, %v2354_v7  ;;  %v2360_v12 = vshrl.u32 %v5081_v9, 16  ;;  %v2363_v15 = vshll.u32 %v5081_v9, 16  ;;  %v2358_v17 = vrot.slane %v2354_v7, 4  ;;  %v5852_v7 = vld [vmem:[%s7348_s11 + $0xb0] sm:$0xff]  }
 0x433   : > { %v5853_v8 = vld [vmem:[%s7348_s11 + $0x70] sm:$0xff]  }
 0x434   : > { %v2372_v13 = vsel %vm6601_vm13, %v2357_v11, %v2371_v10  ;;  %v2362_v14 = vrot.slane %v2360_v12, 7  ;;  %v5854_v9 = vld [vmem:[%s7348_s11 + $0x30] sm:$0xff]   ;;  %v5855_v10 = vld [vmem:[%s7348_s11 + $0xa8] sm:$0xff]  }
 0x435   : > { %2373 = vst [vmem:[#allocation6] sm:$0xf] %v2372_v13  ;;  %v5856_v11 = vld [vmem:[%s7348_s11 + $0x68] sm:$0xff]   ;;  %v5858_v13 = vld [vmem:[%s7348_s11 + $0xa0] sm:$0xff]  }
 0x436   : > { %v2365_v18 = vor.u32 %v2363_v15, %v2362_v14  ;;  %v2367_v19 = vrot.slane %v2362_v14, 4  ;;  %v5857_v12 = vld [vmem:[%s7348_s11 + $0x28] sm:$0xff]   ;;  %v5859_v14 = vld [vmem:[%s7348_s11 + $0x60] sm:$0xff]  }
 0x437   : > { %v5860_v15 = vld [vmem:[%s7348_s11 + $0x20] sm:$0xff]   ;;  %v2783_v5 = vld [vmem:[#allocation7] sm:$0xf] }
 0x438   : > { %v2366_v20 = vsel %vm6608_vm15, %v2358_v17, %v2365_v18  ;;  %v2376_v21 = vsel %vm6504_vm9, %v2367_v19, %v2375_v16  ;;  %v5861_v16 = vld [vmem:[%s7348_s11 + $0x98] sm:$0xff]   ;;  %v5864_v19 = vld [vmem:[%s7348_s11 + $0x90] sm:$0xff]  }
 0x439   : > { %2374 = vst [vmem:[#allocation6 + $0x4] sm:$0xf] %v2366_v20  ;;  %2377 = vst [vmem:[#allocation6 + $0x8] sm:$0x1] %v2376_v21  ;;  %v5862_v17 = vld [vmem:[%s7348_s11 + $0x58] sm:$0xff]   ;;  %v5865_v20 = vld [vmem:[%s7348_s11 + $0x50] sm:$0xff]  }
 0x43a   : > { %v5863_v18 = vld [vmem:[%s7348_s11 + $0x18] sm:$0xff]   ;;  %v5866_v21 = vld [vmem:[%s7348_s11 + $0x10] sm:$0xff]  }
 0x43c   : > { %v2378_v22 = vld [vmem:[#allocation6] sm:$0xf] }
 0x43d   : > { %v2382_v23 = vld [vmem:[#allocation6] sm:$0xf]  ;;  %2380 = vst [vmem:[#allocation2] sm:$0xf] %v2378_v22  ;;  %v5867_v22 = vld [vmem:[%s7348_s11 + $0x88] sm:$0xff]  }
 0x43e   : > { %v2386_v24 = vshrl.u32 %v2382_v23, 16  ;;  %v2389_v25 = vshll.u32 %v2382_v23, 16  ;;  %v2413_v28 = vld [vmem:[#allocation6] sm:$0xe]  ;;  %v5868_v23 = vld [vmem:[%s7348_s11 + $0x48] sm:$0xff]  }
 0x43f   : > { %v4898_v36 = vrot.slane %v2413_v28, 9 }
 0x440   : > { %v2388_v26 = vrot.slane %v2386_v24, 4  ;;  %v2391_v27 = vrot.slane %v2389_v25, 5  ;;  %v2379_v29 = vld [vmem:[#allocation6 + $0x4] sm:$0xf]  ;;  %v2384_v31 = vld [vmem:[#allocation6 + $0x8] sm:$0x1] }
 0x441   : > { %v2383_v30 = vld [vmem:[#allocation6 + $0x4] sm:$0xf]  ;;  %2381 = vst [vmem:[#allocation2 + $0xc] sm:$0xf] %v2379_v29  ;;  %v2415_v37 = vld [vmem:[#allocation6 + $0x8] sm:$0x1] }
 0x442   : > { %v2392_v32 = vor.u32 %v2391_v27, %v2388_v26  ;;  %v2395_v33 = vshll.u32 %v2383_v30, 16  ;;  %v2399_v34 = vshrl.u32 %v2383_v30, 16  ;;  %v2414_v35 = vld [vmem:[#allocation6 + $0x4] sm:$0xf]  ;;  %v2405_v42 = vshll.u32 %v2384_v31, 16  ;;  %v5869_v24 = vld [vmem:[%s7348_s11 + $0x8] sm:$0xff]  }
 0x443   : > { %v2421_v38 = vrot.slane %v2414_v35, 5  ;;  %v2424_v47 = vrot.slane %v2415_v37, 5  ;;  %v5870_v25 = vld [vmem:[%s7348_s11 + $0x80] sm:$0xff]   ;;  %v5093_v30 = vld [vmem:[#allocation5] sm:$0xff]  }
 0x444   : > { %v2393_v39 = vrot.slane %v2392_v32, 4  ;;  %v2397_v40 = vrot.slane %v2395_v33, 5  ;;  %v2401_v41 = vrot.slane %v2399_v34, 4  ;;  %v2407_v53 = vrot.slane %v2405_v42, 5  ;;  %v5871_v26 = vld [vmem:[%s7348_s11 + $0x40] sm:$0xff]  }
 0x445   : > { %v2422_v44 = vsel %vm6481_vm5, %v4898_v36, %v2421_v38  ;;  %v2423_v46 = vrot.slane %v2421_v38, 4  ;;  %v5872_v27 = vld [vmem:[%s7348_s11] sm:$0xff]   ;;  %v5094_v33 = vunpack.c.l.bf16 %v5093_v30  ;;  %v5095_v34 = vunpack.c.h.bf16 %v5093_v30  ;;  %v2733_v36 = vld [vmem:[#allocation5 + $0x8] sm:$0x1] }
 0x446   : > { %v2398_v48 = vsel %vm6488_vm6, %v2393_v39, %v2397_v40  ;;  %v2402_v49 = vor.u32 %v2401_v41, %v2397_v40  ;;  %2428 = vst [vmem:[#allocation2 + $0x8] sm:$0xf] %v2422_v44  ;;  %v4899_v37 = vld [vmem:[%s7347_s10] ss:$0 sm:$0xff]  ;;  %v2736_v44 = vunpack.c.l.bf16 %v2733_v36 }
 0x447   : > { %2411 = vst [vmem:[#allocation2 + $0x4] sm:$0xf] %v2398_v48  ;;  %v2425_v50 = vsel %vm6481_vm5, %v2423_v46, %v2424_v47  ;;  %v2740_v40 = vrot.slane %v5094_v33, 1  ;;  %v2741_v41 = vrot.slane %v5095_v34, 1 }
 0x448   : > { %v2403_v52 = vrot.slane %v2402_v49, 4  ;;  %2429 = vst [vmem:[#allocation2 + $0x14] sm:$0xf] %v2425_v50 }
 0x449   : > { %v2742_v50 = vsel %vm1933_vm2, %v2740_v40, %v2741_v41 }
 0x44a   : > { %v2408_v54 = vsel %vm6488_vm6, %v2403_v52, %v2407_v53  ;;  %v2743_v52 = vrot.slane %v2736_v44, 1 }
 0x44b   : > { %2412 = vst [vmem:[#allocation2 + $0x10] sm:$0xf] %v2408_v54 }
 0x44e   : > { %v2430_v56 = vld [vmem:[#allocation2] sm:$0xff] }
 0x44f   : > { %v5846_v55 = vld [vmem:[#allocation2 + $0x8] ss:$12 sps:$4 sm:$0xff]   ;;  %v2892_v33 = vld [vmem:[#allocation2 + $0x4] sm:$0x2] }
 0x450   : > { %5498 = vmatmul.mubr.bf16.vlgmr.msra.gmra.mxu1 %v5846_v55 }
 0x451   : > { %5517 = vmatprep.mubr.msk.bf16.mxu1 %vm6150_vm0, %v6149_v0  ;;  %5502 = vmatpush3.bf16.msra.mxu1 %v5849_v4 }
 0x452   : > { %v2432_v57 = vld [vmem:[#allocation2 + $0xc] sm:$0xff]  ;;  %5503 = vmatprep.subr.bf16.mxu1 %v6149_v0 }
 0x453   : > { %v4900_v59 = vcombine.low %v2430_v56, %v2432_v57  ;;  %v4901_v61 = vcombine.high %v2430_v56, %v2432_v57  ;;  %v2744_v57 = vsel %vm1933_vm2, %v2741_v41, %v2743_v52 }
 0x455   : > { %2681 = vmatprep.mubr.bf16.mxu0 %v4901_v61  ;;  %5504 = vmatpush3.bf16.msra.mxu1 %v5852_v7 }
 0x456   : > { %2682 = vmatmul.mubr.bf16.vlgmr.msra.gmra.mxu0 %v4900_v59  ;;  %5505 = vmatprep.subr.bf16.mxu1 %v6149_v0 }
 0x457   : > { %5252 = vmatpush3.bf16.msra.mxu0 %v5851_v6 }
 0x458   : > { %5253 = vmatprep.subr.bf16.mxu0 %v5853_v8 }
 0x459   : > { %5506 = vmatpush3.bf16.msra.mxu1 %v5855_v10 }
 0x45a   : > { %5507 = vmatprep.subr.bf16.mxu1 %v6149_v0 }
 0x45b   : > { %5254 = vmatpush3.bf16.msra.mxu0 %v5854_v9 }
 0x45c   : > { %5255 = vmatprep.subr.bf16.mxu0 %v5856_v11  ;;  %v2787_v11 = vld [vmem:[#allocation7 + $0x8] sm:$0x1] }
 0x45d   : > { %5508 = vmatpush3.bf16.msra.mxu1 %v5858_v13 }
 0x45e   : > { %5509 = vmatprep.subr.bf16.mxu1 %v6149_v0 }
 0x45f   : > { %5256 = vmatpush3.bf16.msra.mxu0 %v5857_v12 }
 0x460   : > { %5257 = vmatprep.subr.bf16.mxu0 %v5859_v14 }
 0x461   : > { %5510 = vmatpush3.bf16.msra.mxu1 %v5861_v16 }
 0x462   : > { %5511 = vmatprep.subr.bf16.mxu1 %v6149_v0 }
 0x463   : > { %5258 = vmatpush3.bf16.msra.mxu0 %v5860_v15 }
 0x464   : > { %5259 = vmatprep.subr.bf16.mxu0 %v5862_v17  ;;  %v2791_v17 = vld [vmem:[#allocation2] sm:$0x1] }
 0x465   : > { %5512 = vmatpush3.bf16.msra.mxu1 %v5864_v19 }
 0x466   : > { %5513 = vmatprep.subr.bf16.mxu1 %v6149_v0 }
 0x467   : > { %5260 = vmatpush3.bf16.msra.mxu0 %v5863_v18 }
 0x468   : > { %5261 = vmatprep.subr.bf16.mxu0 %v5865_v20  ;;  %v5904_v20 = vld [vmem:[#allocation15 + $0x30] sm:$0xff]  }
 0x469   : > { %5514 = vmatpush3.bf16.msra.mxu1 %v5867_v22 }
 0x46a   : > { %5515 = vmatprep.subr.bf16.mxu1 %v6149_v0 }
 0x46b   : > { %5262 = vmatpush3.bf16.msra.mxu0 %v5866_v21 }
 0x46c   : > { %5263 = vmatprep.subr.bf16.mxu0 %v5868_v23 }
 0x46d   : > { %5516 = vmatpush3.bf16.msra.mxu1 %v5870_v25 }
 0x46e   : > { %5521 = vmatprep.subr.bf16.mxu1 %v6149_v0 }
 0x46f   : > { %5264 = vmatpush3.bf16.msra.mxu0 %v5869_v24  ;;  %v2812_v24 = vld [vmem:[#allocation2] sm:$0x2] }
 0x470   : > { %5265 = vmatprep.subr.bf16.mxu0 %v5871_v26 }
 0x473   : > { %5266 = vmatpush3.bf16.msra.mxu0 %v5872_v27 }
 0x510   : > { %v2724_v28 = vpop.f32.mrf.mxu1 }
 0x512   : > { %v5499_v29 = vpop.f32.mrf.mxu1 }
 0x513   : > { %v2874_v29 = vld [vmem:[#allocation2 + $0x4] sm:$0x1] }
 0x514   : > { %v2727_v31 = vpop.f32.mrf.mxu1 }
 0x516   : > { %v5236_v32 = vpop.f32.mrf.mxu0  ;;  %v5500_v35 = vpop.f32.mrf.mxu1 }
 0x517   : > { %v2937_v35 = vld [vmem:[#allocation2 + $0x8] sm:$0x1] }
 0x518   : > { %v5237_v38 = vpop.f32.mrf.mxu0 }
 0x519   : > { %v5238_v39 = vadd.f32 %v5237_v38, %v5236_v32 }
 0x51a   : > { %v5239_v42 = vpop.f32.mrf.mxu0 }
 0x51b   : > { %v2684_v46 = vadd.f32 %v5238_v39, %v4899_v37 }
 0x51c   : > { %v5240_v47 = vpop.f32.mrf.mxu0 }
 0x51d   : > { %v2725_v48 = vadd.f32 %v2724_v28, %v2684_v46  ;;  %v5241_v49 = vadd.f32 %v5240_v47, %v5239_v42  ;;  %v2955_v46 = vld [vmem:[#allocation2 + $0x8] sm:$0x2] }
 0x51f   : > { %v2747_v53 = vadd.f32 %v2742_v50, %v2725_v48  ;;  %v2687_v54 = vadd.f32 %v5241_v49, %v4899_v37 }
 0x521   : > { %v2749_v55 = vmax.f32 %v2747_v53, 0.0  ;;  %v2728_v56 = vadd.f32 %v2727_v31, %v2687_v54  ;;  %v2834_v53 = vld [vmem:[#allocation2] sm:$0x4] }
 0x523   : > { %v5082_v59 = vpack.c.bf16 %v2749_v55, %v2749_v55  ;;  %v2748_v61 = vadd.f32 %v2744_v57, %v2728_v56  ;;  %v5907_v57 = vld [vmem:[#allocation15 + $0x18] sm:$0xff]  }
 0x525   : > { %v2764_v62 = vshrl.u32 %v5082_v59, 16  ;;  %v2750_v1 = vmax.f32 %v2748_v61, 0.0  ;;  %v2767_v3 = vshll.u32 %v5082_v59, 16 }
 0x527   : > { %v2766_v2 = vrot.slane %v2764_v62, 7  ;;  %v5083_v4 = vpack.c.bf16 %v2750_v1, %v2750_v1 }
 0x529   : > { %v2769_v6 = vor.u32 %v2767_v3, %v2766_v2  ;;  %v2772_v7 = vshrl.u32 %v5083_v4, 16  ;;  %v2775_v10 = vshll.u32 %v5083_v4, 16  ;;  %v2770_v12 = vrot.slane %v2766_v2, 4  ;;  %v2854_v3 = vld [vmem:[#allocation2] sm:$0x8] }
 0x52b   : > { %v2784_v8 = vsel %vm6601_vm13, %v2769_v6, %v2783_v5  ;;  %v2774_v9 = vrot.slane %v2772_v7, 7 }
 0x52c   : > { %2785 = vst [vmem:[#allocation7] sm:$0xf] %v2784_v8 }
 0x52d   : > { %v2777_v13 = vor.u32 %v2775_v10, %v2774_v9  ;;  %v2779_v14 = vrot.slane %v2774_v9, 4 }
 0x52f   : > { %v2778_v15 = vsel %vm6608_vm15, %v2770_v12, %v2777_v13  ;;  %v2788_v16 = vsel %vm6504_vm9, %v2779_v14, %v2787_v11  ;;  %vm2852_vm15 = vcmask 1043459  }
 0x530   : > { %2786 = vst [vmem:[#allocation7 + $0x4] sm:$0xf] %v2778_v15  ;;  %2789 = vst [vmem:[#allocation7 + $0x8] sm:$0x1] %v2788_v16 }
 0x531   : > { %vm7068_vm10 = vmand %vm2852_vm15, %vm775_vm1 }
 0x532   : > { %vm7084_vm1 = vmand %vm2831_vm8, %vm2843_vm3 }
 0x533   : > { %v2790_v18 = vld [vmem:[#allocation7] sm:$0x1]  ;;  %v2804_v19 = vld [vmem:[#allocation7] sm:$0x4]  ;;  %v2794_v58 = vld [vmem:[#allocation7] sm:$0x2] }
 0x534   : > { %v2792_v21 = vsel %vm6504_vm9, %v2790_v18, %v2791_v17  ;;  %v4930_v22 = vrot.slane %v2804_v19, 9  ;;  %v2867_v23 = vld [vmem:[#allocation7] sm:$0x1]  ;;  %v2885_v26 = vld [vmem:[#allocation7] sm:$0x4]  ;;  %v2796_v31 = vshll.u32 %v2794_v58, 16  ;;  %vm7099_vm8 = vmand %vm2852_vm15, %vm2862_vm12 }
 0x535   : > { %2793 = vst [vmem:[#allocation2] sm:$0x1] %v2792_v21  ;;  %v2869_v25 = vshrl.u32 %v2867_v23, 16  ;;  %v2815_v28 = vld [vmem:[#allocation7] sm:$0x8]  ;;  %v2887_v30 = vshrl.u32 %v2885_v26, 16 }
 0x536   : > { %v2813_v27 = vsel %vm7033_vm7, %v4930_v22, %v2812_v24  ;;  %v2932_v34 = vld [vmem:[#allocation7] sm:$0x2]  ;;  %v2950_v38 = vld [vmem:[#allocation7] sm:$0x8]  ;;  %v2817_v39 = vshll.u32 %v2815_v28, 16  ;;  %v4929_v47 = vrot.slane %v2796_v31, 9 }
 0x537   : > { %2814 = vst [vmem:[#allocation2] sm:$0x2] %v2813_v27  ;;  %v2875_v32 = vsel %vm6504_vm9, %v2869_v25, %v2874_v29  ;;  %v4934_v36 = vrot.slane %v2887_v30, 9  ;;  %v4936_v37 = vrot.slane %v2932_v34, 9  ;;  %v2940_v40 = vld [vmem:[#allocation7] sm:$0x4] }
 0x538   : > { %2876 = vst [vmem:[#allocation2 + $0x4] sm:$0x1] %v2875_v32  ;;  %v4938_v41 = vrot.slane %v2950_v38, 10  ;;  %v2877_v48 = vld [vmem:[#allocation7] sm:$0x2]  ;;  %v2942_v56 = vshll.u32 %v2940_v40, 16 }
 0x539   : > { %v2893_v42 = vsel %vm7033_vm7, %v4934_v36, %v2892_v33  ;;  %v2938_v44 = vsel %vm6504_vm9, %v4936_v37, %v2937_v35  ;;  %v2827_v50 = vld [vmem:[#allocation7 + $0x4] sm:$0x1]  ;;  %v2895_v55 = vld [vmem:[#allocation7] sm:$0x8]  ;;  %v4931_v62 = vrot.slane %v2817_v39, 10  ;;  %v4933_v4 = vrot.slane %v2877_v48, 9 }
 0x53a   : > { %2894 = vst [vmem:[#allocation2 + $0x4] sm:$0x2] %v2893_v42  ;;  %2939 = vst [vmem:[#allocation2 + $0x8] sm:$0x1] %v2938_v44  ;;  %v2956_v49 = vsel %vm7033_vm7, %v4938_v41, %v2955_v46  ;;  %v2829_v59 = vrot.slane %v2827_v50, 6  ;;  %v4935_v10 = vrot.slane %v2895_v55, 10 }
 0x53b   : > { %2957 = vst [vmem:[#allocation2 + $0x8] sm:$0x2] %v2956_v49  ;;  %v2837_v1 = vld [vmem:[#allocation7 + $0x4] sm:$0x2]  ;;  %v2848_v2 = vld [vmem:[#allocation7 + $0x4] sm:$0x4] }
 0x53c   : > { %v2801_v54 = vld [vmem:[#allocation2] sm:$0x1]  ;;  %v2835_v6 = vsel %vm7050_vm14, %v2829_v59, %v2834_v53  ;;  %v2850_v7 = vrot.slane %v2848_v2, 7  ;;  %v2903_v8 = vld [vmem:[#allocation7 + $0x4] sm:$0x1]  ;;  %v4937_v15 = vrot.slane %v2942_v56, 10 }
 0x53d   : > { %v2802_v61 = vsel %vm6511_vm11, %v4929_v47, %v2801_v54  ;;  %2836 = vst [vmem:[#allocation2] sm:$0x4] %v2835_v6  ;;  %v2905_v13 = vshrl.u32 %v2903_v8, 16  ;;  %v2839_v16 = vshll.u32 %v2837_v1, 16  ;;  %v2909_v18 = vld [vmem:[#allocation2 + $0x4] sm:$0x4] }
 0x53e   : > { %2803 = vst [vmem:[#allocation2] sm:$0x1] %v2802_v61  ;;  %v2824_v5 = vld [vmem:[#allocation2] sm:$0x2]  ;;  %v2855_v17 = vsel %vm7068_vm10, %v2850_v7, %v2854_v3  ;;  %v2919_v19 = vld [vmem:[#allocation7 + $0x4] sm:$0x4] }
 0x53f   : > { %v2882_v9 = vld [vmem:[#allocation2 + $0x4] sm:$0x1]  ;;  %v2825_v11 = vsel %vm7056_vm4, %v4931_v62, %v2824_v5  ;;  %2856 = vst [vmem:[#allocation2] sm:$0x8] %v2855_v17  ;;  %v2907_v21 = vrot.slane %v2905_v13, 6  ;;  %v2921_v58 = vshrl.u32 %v2919_v19, 16 }
 0x540   : > { %v2883_v14 = vsel %vm6511_vm11, %v4933_v4, %v2882_v9  ;;  %2826 = vst [vmem:[#allocation2] sm:$0x2] %v2825_v11  ;;  %v2958_v22 = vld [vmem:[#allocation7 + $0x4] sm:$0x1]  ;;  %v2967_v23 = vld [vmem:[#allocation7 + $0x4] sm:$0x2] }
 0x541   : > { %2884 = vst [vmem:[#allocation2 + $0x4] sm:$0x1] %v2883_v14  ;;  %v2971_v24 = vld [vmem:[#allocation2 + $0x8] sm:$0x4]  ;;  %v2947_v25 = vld [vmem:[#allocation2 + $0x8] sm:$0x1]  ;;  %v2910_v32 = vsel %vm7050_vm14, %v2907_v21, %v2909_v18 }
 0x542   : > { %v2900_v26 = vld [vmem:[#allocation2 + $0x4] sm:$0x2]  ;;  %v2925_v27 = vld [vmem:[#allocation2 + $0x4] sm:$0x8]  ;;  %v2960_v28 = vshll.u32 %v2958_v22, 16  ;;  %v2969_v29 = vrot.slane %v2967_v23, 7  ;;  %v2948_v30 = vsel %vm6511_vm11, %v4937_v15, %v2947_v25 }
 0x543   : > { %v2901_v31 = vsel %vm7056_vm4, %v4935_v10, %v2900_v26  ;;  %v2923_v33 = vrot.slane %v2921_v58, 7  ;;  %v2964_v34 = vld [vmem:[#allocation2 + $0x8] sm:$0x2]  ;;  %v2983_v35 = vld [vmem:[#allocation2 + $0x8] sm:$0x8]  ;;  %v2841_v41 = vrot.slane %v2839_v16, 7 }
 0x544   : > { %2949 = vst [vmem:[#allocation2 + $0x8] sm:$0x1] %v2948_v30  ;;  %v2857_v37 = vld [vmem:[#allocation7 + $0x4] sm:$0x8]  ;;  %2902 = vst [vmem:[#allocation2 + $0x4] sm:$0x2] %v2901_v31  ;;  %v2972_v39 = vsel %vm7050_vm14, %v2969_v29, %v2971_v24 }
 0x545   : > { %2911 = vst [vmem:[#allocation2 + $0x4] sm:$0x4] %v2910_v32  ;;  %v2962_v38 = vrot.slane %v2960_v28, 7  ;;  %v2982_v40 = vld [vmem:[#allocation7 + $0x4] sm:$0x8]  ;;  %v2926_v42 = vsel %vm7068_vm10, %v2923_v33, %v2925_v27  ;;  %v2859_v50 = vshll.u32 %v2857_v37, 16 }
 0x546   : > { %2973 = vst [vmem:[#allocation2 + $0x8] sm:$0x4] %v2972_v39  ;;  %v2984_v44 = vsel %vm7068_vm10, %v2982_v40, %v2983_v35  ;;  %v2986_v46 = vld [vmem:[#allocation7 + $0x8] sm:$0x1]  ;;  %v2845_v47 = vld [vmem:[#allocation2] sm:$0x4] }
 0x547   : > { %2927 = vst [vmem:[#allocation2 + $0x4] sm:$0x8] %v2926_v42  ;;  %v2965_v48 = vsel %vm7056_vm4, %v2962_v38, %v2964_v34  ;;  %2985 = vst [vmem:[#allocation2 + $0x8] sm:$0x8] %v2984_v44  ;;  %v2846_v49 = vsel %vm7084_vm1, %v2841_v41, %v2845_v47  ;;  %v2912_v53 = vld [vmem:[#allocation7 + $0x4] sm:$0x2] }
 0x548   : > { %2966 = vst [vmem:[#allocation2 + $0x8] sm:$0x2] %v2965_v48  ;;  %2847 = vst [vmem:[#allocation2] sm:$0x4] %v2846_v49  ;;  %v2864_v55 = vld [vmem:[#allocation2] sm:$0x8] }
 0x549   : > { %v2974_v56 = vld [vmem:[#allocation7 + $0x4] sm:$0x4]  ;;  %v2988_v59 = vshll.u32 %v2986_v46, 16  ;;  %v2865_v61 = vsel %vm7099_vm8, %v2859_v50, %v2864_v55  ;;  %v2914_v62 = vrot.slane %v2912_v53, 7  ;;  %v2928_v6 = vld [vmem:[#allocation7 + $0x4] sm:$0x8] }
 0x54a   : > { %2866 = vst [vmem:[#allocation2] sm:$0x8] %v2865_v61  ;;  %v2976_v2 = vshll.u32 %v2974_v56, 16  ;;  %v3288_v17 = vld [vmem:[#allocation8] sm:$0x1]  ;;  %v5876_v58 = vld [vmem:[#allocation12 + $0xb8] sm:$0xff]  }
 0x54b   : > { %v2990_v5 = vrot.slane %v2988_v59, 5  ;;  %v5873_v13 = vld [vmem:[#allocation2 + $0x8] ss:$0 sps:$4 sm:$0xff]   ;;  %v3291_v18 = vld [vmem:[#allocation8 + $0x4] sm:$0x1]  ;;  %v3289_v19 = vsel %vm6504_vm9, 0, %v3288_v17 }
 0x54c   : > { %v2916_v1 = vld [vmem:[#allocation2 + $0x4] sm:$0x4]  ;;  %5518 = vmatmul.mubr.bf16.vlgmr.msra.gmra.mxu1 %v5873_v13  ;;  %v3292_v21 = vsel %vm6511_vm11, 0, %v3291_v18  ;;  %3290 = vst [vmem:[#allocation8] sm:$0x1] %v3289_v19  ;;  %v5878_v23 = vld [vmem:[#allocation12 + $0x78] sm:$0xff]  }
 0x54d   : > { %v2917_v3 = vsel %vm7084_vm1, %v2914_v62, %v2916_v1  ;;  %v2979_v4 = vld [vmem:[#allocation2 + $0x8] sm:$0x4]  ;;  %5537 = vmatprep.mubr.msk.bf16.mxu1 %vm6150_vm0, %v6149_v0  ;;  %3293 = vst [vmem:[#allocation8 + $0x4] sm:$0x1] %v3292_v21  ;;  %5522 = vmatpush3.bf16.msra.mxu1 %v5876_v58  ;;  %v5879_v24 = vld [vmem:[#allocation12 + $0x38] sm:$0xff]   ;;  %v5880_v25 = vld [vmem:[#allocation12 + $0xa8] sm:$0xff]  }
 0x54e   : > { %2918 = vst [vmem:[#allocation2 + $0x4] sm:$0x4] %v2917_v3  ;;  %v2929_v7 = vld [vmem:[#allocation2 + $0x4] sm:$0x8]  ;;  %v2980_v8 = vsel %vm7084_vm1, %v2976_v2, %v2979_v4  ;;  %v2992_v9 = vld [vmem:[#allocation2 + $0x8] sm:$0x8]  ;;  %5523 = vmatprep.subr.bf16.mxu1 %v6149_v0  ;;  %5282 = vmatprep.subr.bf16.mxu0 %v5878_v23 }
 0x54f   : > { %v2930_v10 = vsel %vm7099_vm8, %v2928_v6, %v2929_v7  ;;  %v2993_v11 = vsel %vm7099_vm8, %v2990_v5, %v2992_v9  ;;  %2981 = vst [vmem:[#allocation2 + $0x8] sm:$0x4] %v2980_v8  ;;  %v5877_v22 = vld [vmem:[#allocation12 + $0xb0] sm:$0xff]   ;;  %v5883_v28 = vld [vmem:[#allocation12 + $0xa0] sm:$0xff]   ;;  %v5884_v29 = vld [vmem:[#allocation12 + $0x68] sm:$0xff]  }
 0x550   : > { %2931 = vst [vmem:[#allocation2 + $0x4] sm:$0x8] %v2930_v10  ;;  %2994 = vst [vmem:[#allocation2 + $0x8] sm:$0x8] %v2993_v11  ;;  %v5881_v26 = vld [vmem:[#allocation12 + $0x70] sm:$0xff]   ;;  %v5885_v30 = vld [vmem:[#allocation12 + $0x28] sm:$0xff]  }
 0x551   : > { %5524 = vmatpush3.bf16.msra.mxu1 %v5877_v22  ;;  %v5882_v27 = vld [vmem:[#allocation12 + $0x30] sm:$0xff]   ;;  %v5886_v31 = vld [vmem:[#allocation12 + $0x98] sm:$0xff]   ;;  %v5887_v32 = vld [vmem:[#allocation12 + $0x60] sm:$0xff]  }
 0x552   : > { %5525 = vmatprep.subr.bf16.mxu1 %v6149_v0  ;;  %v5888_v33 = vld [vmem:[#allocation12 + $0x20] sm:$0xff]   ;;  %v5889_v34 = vld [vmem:[#allocation12 + $0x90] sm:$0xff]   ;;  %v5890_v35 = vld [vmem:[#allocation12 + $0x58] sm:$0xff]  }
 0x553   : > { %v5891_v37 = vld [vmem:[#allocation12 + $0x18] sm:$0xff]   ;;  %v5892_v38 = vld [vmem:[#allocation12 + $0x88] sm:$0xff]   ;;  %v5893_v39 = vld [vmem:[#allocation12 + $0x50] sm:$0xff]  }
 0x554   : > { %v5894_v40 = vld [vmem:[#allocation12 + $0x10] sm:$0xff]   ;;  %v5895_v41 = vld [vmem:[#allocation12 + $0x80] sm:$0xff]   ;;  %v5896_v42 = vld [vmem:[#allocation12 + $0x48] sm:$0xff]  }
 0x555   : > { %5526 = vmatpush3.bf16.msra.mxu1 %v5880_v25  ;;  %v5897_v44 = vld [vmem:[#allocation12 + $0x8] sm:$0xff]   ;;  %v5899_v46 = vld [vmem:[#allocation12 + $0x40] sm:$0xff]   ;;  %v5908_v36 = vld [vmem:[#allocation15 + $0x10] sm:$0xff]  }
 0x556   : > { %5527 = vmatprep.subr.bf16.mxu1 %v6149_v0  ;;  %v5900_v47 = vld [vmem:[#allocation12] sm:$0xff]   ;;  %v4939_v55 = vld [vmem:[%s7349_s12] ss:$0 sm:$0xff] }
 0x557   : > { %v2995_v14 = vld [vmem:[#allocation2] sm:$0xff]  ;;  %v3308_v9 = vld [vmem:[#allocation8] sm:$0xf]  ;;  %v3311_v10 = vld [vmem:[#allocation8 + $0x4] sm:$0x1] }
 0x558   : > { %v4941_v15 = vcombine.high %v2995_v14, %v2995_v14  ;;  %v4940_v16 = vcombine.low %v2995_v14, %v2995_v14  ;;  %v5910_v54 = vld [vmem:[#allocation15] sm:$0xff]  }
 0x559   : > { %5528 = vmatpush3.bf16.msra.mxu1 %v5883_v28 }
 0x55a   : > { %3239 = vmatprep.mubr.bf16.mxu0 %v4941_v15  ;;  %5529 = vmatprep.subr.bf16.mxu1 %v6149_v0 }
 0x55b   : > { %3240 = vmatmul.mubr.bf16.vlgmr.msra.gmra.mxu0 %v4940_v16 }
 0x55c   : > { %5283 = vmatpush3.bf16.msra.mxu0 %v5879_v24 }
 0x55d   : > { %5284 = vmatprep.subr.bf16.mxu0 %v5881_v26  ;;  %5530 = vmatpush3.bf16.msra.mxu1 %v5886_v31 }
 0x55e   : > { %5531 = vmatprep.subr.bf16.mxu1 %v6149_v0 }
 0x560   : > { %5285 = vmatpush3.bf16.msra.mxu0 %v5882_v27 }
 0x561   : > { %5286 = vmatprep.subr.bf16.mxu0 %v5884_v29  ;;  %5532 = vmatpush3.bf16.msra.mxu1 %v5889_v34  ;;  %v3688_v34 = vld [vmem:[#allocation7 + $0x4] sm:$0x4] }
 0x562   : > { %5533 = vmatprep.subr.bf16.mxu1 %v6149_v0 }
 0x564   : > { %5287 = vmatpush3.bf16.msra.mxu0 %v5885_v30 }
 0x565   : > { %5288 = vmatprep.subr.bf16.mxu0 %v5887_v32  ;;  %5534 = vmatpush3.bf16.msra.mxu1 %v5892_v38  ;;  %v3654_v32 = vld [vmem:[#allocation7] sm:$0x4] }
 0x566   : > { %5535 = vmatprep.subr.bf16.mxu1 %v6149_v0 }
 0x568   : > { %5289 = vmatpush3.bf16.msra.mxu0 %v5888_v33  ;;  %v3672_v33 = vld [vmem:[#allocation7 + $0x4] sm:$0x1] }
 0x569   : > { %5290 = vmatprep.subr.bf16.mxu0 %v5890_v35  ;;  %5536 = vmatpush3.bf16.msra.mxu1 %v5895_v41  ;;  %v3674_v38 = vshrl.u32 %v3672_v33, 16  ;;  %v5918_v33 = vld [vmem:[#allocation17 + $0xa0] sm:$0xff]  }
 0x56c   : > { %5291 = vmatpush3.bf16.msra.mxu0 %v5891_v37  ;;  %v3656_v37 = vshrl.u32 %v3654_v32, 16  ;;  %v5917_v32 = vld [vmem:[#allocation17 + $0x30] sm:$0xff]  }
 0x56d   : > { %5292 = vmatprep.subr.bf16.mxu0 %v5893_v39  ;;  %v3690_v39 = vshrl.u32 %v3688_v34, 16  ;;  %v5919_v34 = vld [vmem:[#allocation17 + $0x68] sm:$0xff]  }
 0x570   : > { %5293 = vmatpush3.bf16.msra.mxu0 %v5894_v40  ;;  %v3636_v40 = vld [vmem:[#allocation7] sm:$0x1] }
 0x571   : > { %5294 = vmatprep.subr.bf16.mxu0 %v5896_v42 }
 0x574   : > { %5295 = vmatpush3.bf16.msra.mxu0 %v5897_v44 }
 0x575   : > { %5296 = vmatprep.subr.bf16.mxu0 %v5899_v46 }
 0x578   : > { %5297 = vmatpush3.bf16.msra.mxu0 %v5900_v47 }
 0x579   : > { %5541 = vmatprep.subr.bf16.mxu0 %v6149_v0 }
 0x60c   : > { %v3281_v48 = vpop.f32.mrf.mxu1 }
 0x60e   : > { %v5519_v49 = vpop.f32.mrf.mxu1 }
 0x60f   : > { %v4999_v49 = vrot.slane %v3656_v37, 9  ;;  %v5921_v37 = vld [vmem:[#allocation17 + $0x98] sm:$0xff]  }
 0x610   : > { %v3284_v53 = vpop.f32.mrf.mxu1 }
 0x611   : > { %v3692_v53 = vrot.slane %v3690_v39, 7  ;;  %v5923_v39 = vld [vmem:[#allocation17 + $0x20] sm:$0xff]  }
 0x612   : > { %v5520_v61 = vpop.f32.mrf.mxu1 }
 0x61b   : > { %v5267_v50 = vpop.f32.mrf.mxu0 }
 0x61d   : > { %v5268_v56 = vpop.f32.mrf.mxu0 }
 0x61e   : > { %v5269_v59 = vadd.f32 %v5268_v56, %v5267_v50  ;;  %v3676_v50 = vrot.slane %v3674_v38, 6  ;;  %v5922_v38 = vld [vmem:[#allocation17 + $0x60] sm:$0xff]  }
 0x61f   : > { %v5270_v62 = vpop.f32.mrf.mxu0 }
 0x620   : > { %v3242_v1 = vadd.f32 %v5269_v59, %v4939_v55 }
 0x621   : > { %v5271_v2 = vpop.f32.mrf.mxu0 }
 0x622   : > { %v3282_v3 = vadd.f32 %v3281_v48, %v3242_v1  ;;  %v3638_v48 = vshrl.u32 %v3636_v40, 16  ;;  %v5924_v40 = vld [vmem:[#allocation17 + $0x90] sm:$0xff]  }
 0x624   : > { %v3287_v4 = vmax.f32 %v3282_v3, 0.0  ;;  %v5903_v3 = vld [vmem:[#allocation15 + $0x38] sm:$0xff]  }
 0x626   : > { %v5084_v5 = vpack.c.bf16 %v3287_v4, %v3287_v4  ;;  %v3646_v4 = vld [vmem:[#allocation7] sm:$0x2] }
 0x627   : > { %v4998_v52 = vrot.slane %v3646_v4, 9 }
 0x628   : > { %v3299_v6 = vshrl.u32 %v5084_v5, 16  ;;  %v3302_v8 = vshll.u32 %v5084_v5, 16  ;;  %v3664_v5 = vld [vmem:[#allocation7] sm:$0x8] }
 0x629   : > { %v5000_v12 = vrot.slane %v3664_v5, 10 }
 0x62a   : > { %v3301_v7 = vrot.slane %v3299_v6, 7  ;;  %v3681_v6 = vld [vmem:[#allocation7 + $0x4] sm:$0x2] }
 0x62c   : > { %v3304_v11 = vor.u32 %v3302_v8, %v3301_v7  ;;  %v3305_v13 = vrot.slane %v3301_v7, 4  ;;  %v3683_v7 = vrot.slane %v3681_v6, 7  ;;  %v4969_v6 = vld [vmem:[%s7351_s14] ss:$0 sm:$0xff] }
 0x62e   : > { %v3309_v14 = vsel %vm6601_vm13, %v3304_v11, %v3308_v9  ;;  %v3312_v15 = vsel %vm6504_vm9, %v3305_v13, %v3311_v10  ;;  %v3697_v11 = vld [vmem:[#allocation7 + $0x4] sm:$0x8]  ;;  %v5905_v13 = vld [vmem:[#allocation15 + $0x28] sm:$0xff]  }
 0x62f   : > { %3310 = vst [vmem:[#allocation8] sm:$0xf] %v3309_v14  ;;  %3313 = vst [vmem:[#allocation8 + $0x4] sm:$0x1] %v3312_v15 }
 0x636   : > { %v3314_v16 = vld [vmem:[#allocation8] sm:$0xf]  ;;  %v3317_v18 = vld [vmem:[#allocation8 + $0x4] sm:$0x1] }
 0x637   : > { %v3316_v17 = vld [vmem:[#allocation8] sm:$0xf]  ;;  %3315 = vst [vmem:[#allocation2] sm:$0xf] %v3314_v16  ;;  %v3335_v22 = vld [vmem:[#allocation8 + $0x4] sm:$0x1] }
 0x638   : > { %v3319_v19 = vshrl.u32 %v3316_v17, 16  ;;  %v3322_v21 = vshll.u32 %v3316_v17, 16  ;;  %v3334_v58 = vld [vmem:[#allocation8] sm:$0xe]  ;;  %v3328_v26 = vshll.u32 %v3317_v18, 16  ;;  %v3340_v27 = vrot.slane %v3335_v22, 5 }
 0x639   : > { %v4968_v23 = vrot.slane %v3334_v58, 9  ;;  %v3815_v22 = vld [vmem:[#allocation9] sm:$0x1] }
 0x63a   : > { %v3321_v24 = vrot.slane %v3319_v19, 4  ;;  %v3324_v25 = vrot.slane %v3322_v21, 5  ;;  %v3330_v31 = vrot.slane %v3328_v26, 5  ;;  %v5906_v19 = vld [vmem:[#allocation15 + $0x20] sm:$0xff]   ;;  %v5909_v21 = vld [vmem:[#allocation15 + $0x8] sm:$0xff]   ;;  %v5911_v26 = vld [vmem:[#allocation17 + $0xb8] sm:$0xff]  }
 0x63b   : > { %v3341_v29 = vsel %vm6481_vm5, %v4968_v23, %v3340_v27  ;;  %v3818_v23 = vld [vmem:[#allocation9 + $0x4] sm:$0x1]  ;;  %v5912_v27 = vld [vmem:[#allocation17 + $0xb0] sm:$0xff]  }
 0x63c   : > { %v3325_v28 = vor.u32 %v3324_v25, %v3321_v24  ;;  %3343 = vst [vmem:[#allocation2 + $0x8] sm:$0xf] %v3341_v29  ;;  %v3816_v24 = vsel %vm6504_vm9, 0, %v3815_v22  ;;  %v3819_v25 = vsel %vm6511_vm11, 0, %v3818_v23  ;;  %v5914_v29 = vld [vmem:[#allocation17 + $0x38] sm:$0xff]  }
 0x63d   : > { %3817 = vst [vmem:[#allocation9] sm:$0x1] %v3816_v24  ;;  %3820 = vst [vmem:[#allocation9 + $0x4] sm:$0x1] %v3819_v25 }
 0x63e   : > { %v3326_v30 = vrot.slane %v3325_v28, 4  ;;  %v3643_v42 = vld [vmem:[#allocation2] sm:$0x1]  ;;  %v3661_v44 = vld [vmem:[#allocation2] sm:$0x2]  ;;  %v5913_v28 = vld [vmem:[#allocation17 + $0x78] sm:$0xff]  }
 0x63f   : > { %v3678_v46 = vld [vmem:[#allocation2] sm:$0x4]  ;;  %v3694_v47 = vld [vmem:[#allocation2] sm:$0x8]  ;;  %v3644_v56 = vsel %vm6504_vm9, %v3638_v48, %v3643_v42  ;;  %v3662_v59 = vsel %vm7033_vm7, %v4999_v49, %v3661_v44  ;;  %5322 = vmatprep.subr.bf16.mxu1 %v5913_v28  ;;  %v5926_v42 = vld [vmem:[#allocation17 + $0x18] sm:$0xff]  }
 0x640   : > { %v3331_v35 = vsel %vm6488_vm6, %v3326_v30, %v3330_v31  ;;  %v3679_v61 = vsel %vm7050_vm14, %v3676_v50, %v3678_v46  ;;  %v3695_v62 = vsel %vm7068_vm10, %v3692_v53, %v3694_v47  ;;  %v5915_v30 = vld [vmem:[#allocation17 + $0xa8] sm:$0xff]   ;;  %v5916_v31 = vld [vmem:[#allocation17 + $0x70] sm:$0xff]   ;;  %v5930_v48 = vld [vmem:[#allocation17 + $0x80] sm:$0xff]  }
 0x641   : > { %3333 = vst [vmem:[#allocation2 + $0x4] sm:$0xf] %v3331_v35  ;;  %v5920_v35 = vld [vmem:[#allocation17 + $0x28] sm:$0xff]   ;;  %v5928_v46 = vld [vmem:[#allocation17 + $0x50] sm:$0xff]   ;;  %v5934_v53 = vld [vmem:[#allocation17 + $0x40] sm:$0xff]  }
 0x642   : > { %v5927_v44 = vld [vmem:[#allocation17 + $0x88] sm:$0xff]   ;;  %v5929_v47 = vld [vmem:[#allocation17 + $0x10] sm:$0xff]  }
 0x643   : > { %v5898_v41 = vld [vmem:[#allocation2 + $0x8] ss:$0 sps:$4 sm:$0xff]   ;;  %v5931_v49 = vld [vmem:[#allocation17 + $0x48] sm:$0xff]  }
 0x644   : > { %5538 = vmatmul.mubr.bf16.vlgmr.msra.gmra.mxu1 %v5898_v41  ;;  %v5925_v41 = vld [vmem:[#allocation17 + $0x58] sm:$0xff]   ;;  %v5932_v50 = vld [vmem:[#allocation17 + $0x8] sm:$0xff]  }
 0x645   : > { %5323 = vmatpush3.bf16.msra.mxu1 %v5914_v29 }
 0x646   : > { %5324 = vmatprep.subr.bf16.mxu1 %v5916_v31 }
 0x648   : > { %v3344_v55 = vld [vmem:[#allocation2] sm:$0xff] }
 0x649   : > { %v4971_v1 = vcombine.high %v3344_v55, %v3344_v55  ;;  %v4970_v2 = vcombine.low %v3344_v55, %v3344_v55  ;;  %3645 = vst [vmem:[#allocation2] sm:$0x1] %v3644_v56  ;;  %3663 = vst [vmem:[#allocation2] sm:$0x2] %v3662_v59  ;;  %5325 = vmatpush3.bf16.msra.mxu1 %v5917_v32  ;;  %v5935_v55 = vld [vmem:[#allocation17] sm:$0xff]  }
 0x64a   : > { %3680 = vst [vmem:[#allocation2] sm:$0x4] %v3679_v61  ;;  %3696 = vst [vmem:[#allocation2] sm:$0x8] %v3695_v62  ;;  %5326 = vmatprep.subr.bf16.mxu1 %v5919_v34 }
 0x64b   : > { %3588 = vmatprep.mubr.bf16.mxu0 %v4971_v1 }
 0x64c   : > { %3589 = vmatmul.mubr.bf16.vlgmr.msra.gmra.mxu0 %v4970_v2 }
 0x64d   : > { %5542 = vmatpush3.bf16.msra.mxu0 %v5903_v3  ;;  %5557 = vmatprep.mubr.msk.bf16.mxu0 %vm6150_vm0, %v6149_v0 }
 0x64e   : > { %5543 = vmatprep.subr.bf16.mxu0 %v6149_v0  ;;  %5327 = vmatpush3.bf16.msra.mxu1 %v5920_v35 }
 0x64f   : > { %5328 = vmatprep.subr.bf16.mxu1 %v5922_v38 }
 0x650   : > { %v3651_v8 = vld [vmem:[#allocation2] sm:$0x1]  ;;  %v3669_v9 = vld [vmem:[#allocation2] sm:$0x2] }
 0x651   : > { %v3685_v10 = vld [vmem:[#allocation2] sm:$0x4]  ;;  %5544 = vmatpush3.bf16.msra.mxu0 %v5904_v20  ;;  %v3652_v14 = vsel %vm6511_vm11, %v4998_v52, %v3651_v8  ;;  %v3670_v15 = vsel %vm7056_vm4, %v5000_v12, %v3669_v9  ;;  %v3698_v17 = vld [vmem:[#allocation2] sm:$0x8]  ;;  %v5001_v52 = vld [vmem:[%s7353_s16] ss:$0 sm:$0xff] }
 0x652   : > { %v3686_v16 = vsel %vm7084_vm1, %v3683_v7, %v3685_v10  ;;  %5545 = vmatprep.subr.bf16.mxu0 %v6149_v0  ;;  %3653 = vst [vmem:[#allocation2] sm:$0x1] %v3652_v14  ;;  %3671 = vst [vmem:[#allocation2] sm:$0x2] %v3670_v15  ;;  %v3699_v18 = vsel %vm7099_vm8, %v3697_v11, %v3698_v17  ;;  %5329 = vmatpush3.bf16.msra.mxu1 %v5923_v39 }
 0x653   : > { %3687 = vst [vmem:[#allocation2] sm:$0x4] %v3686_v16  ;;  %3700 = vst [vmem:[#allocation2] sm:$0x8] %v3699_v18  ;;  %5330 = vmatprep.subr.bf16.mxu1 %v5925_v41 }
 0x655   : > { %5546 = vmatpush3.bf16.msra.mxu0 %v5905_v13 }
 0x656   : > { %5547 = vmatprep.subr.bf16.mxu0 %v6149_v0  ;;  %5331 = vmatpush3.bf16.msra.mxu1 %v5926_v42 }
 0x657   : > { %5332 = vmatprep.subr.bf16.mxu1 %v5928_v46  ;;  %v4164_v46 = vld [vmem:[#allocation10] sm:$0x1] }
 0x659   : > { %5548 = vmatpush3.bf16.msra.mxu0 %v5906_v19  ;;  %v3835_v19 = vld [vmem:[#allocation9] sm:$0xf] }
 0x65a   : > { %5549 = vmatprep.subr.bf16.mxu0 %v6149_v0  ;;  %v3701_v58 = vld [vmem:[#allocation2] sm:$0xf]  ;;  %5333 = vmatpush3.bf16.msra.mxu1 %v5929_v47  ;;  %v4167_v47 = vld [vmem:[#allocation10 + $0x4] sm:$0x1] }
 0x65b   : > { %5334 = vmatprep.subr.bf16.mxu1 %v5931_v49  ;;  %v4168_v49 = vsel %vm6511_vm11, 0, %v4167_v47 }
 0x65c   : > { %4169 = vst [vmem:[#allocation10 + $0x4] sm:$0x1] %v4168_v49 }
 0x65d   : > { %5550 = vmatpush3.bf16.msra.mxu0 %v5907_v57  ;;  %v3838_v57 = vld [vmem:[#allocation9 + $0x4] sm:$0x1] }
 0x65e   : > { %5551 = vmatprep.subr.bf16.mxu0 %v6149_v0  ;;  %5335 = vmatpush3.bf16.msra.mxu1 %v5932_v50  ;;  %v5938_v50 = vld [vmem:[#allocation18 + $0xb8] sm:$0xff]  }
 0x65f   : > { %5336 = vmatprep.subr.bf16.mxu1 %v5934_v53  ;;  %v5939_v53 = vld [vmem:[#allocation18 + $0xb0] sm:$0xff]  }
 0x661   : > { %5552 = vmatpush3.bf16.msra.mxu0 %v5908_v36 }
 0x662   : > { %5553 = vmatprep.subr.bf16.mxu0 %v6149_v0  ;;  %5337 = vmatpush3.bf16.msra.mxu1 %v5935_v55  ;;  %v5940_v55 = vld [vmem:[#allocation18 + $0x78] sm:$0xff]  }
 0x663   : > { %5353 = vmatprep.subr.bf16.mxu1 %v5940_v55 }
 0x665   : > { %5554 = vmatpush3.bf16.msra.mxu0 %v5909_v21 }
 0x666   : > { %5555 = vmatprep.subr.bf16.mxu0 %v6149_v0 }
 0x669   : > { %5556 = vmatpush3.bf16.msra.mxu0 %v5910_v54 }
 0x66a   : > { %5561 = vmatprep.subr.bf16.mxu0 %v6149_v0 }
 0x66c   : > { %5558 = vmatmul.mubr.bf16.vlgmr.msra.gmra.mxu0 %v3701_v58 }
 0x66d   : > { %5577 = vmatprep.mubr.msk.bf16.mxu0 %vm6150_vm0, %v6149_v0  ;;  %5562 = vmatpush3.bf16.msra.mxu0 %v5911_v26 }
 0x66e   : > { %5563 = vmatprep.subr.bf16.mxu0 %v6149_v0 }
 0x671   : > { %5564 = vmatpush3.bf16.msra.mxu0 %v5912_v27 }
 0x672   : > { %5565 = vmatprep.subr.bf16.mxu0 %v6149_v0 }
 0x675   : > { %5566 = vmatpush3.bf16.msra.mxu0 %v5915_v30 }
 0x676   : > { %5567 = vmatprep.subr.bf16.mxu0 %v6149_v0 }
 0x679   : > { %5568 = vmatpush3.bf16.msra.mxu0 %v5918_v33 }
 0x67a   : > { %5569 = vmatprep.subr.bf16.mxu0 %v6149_v0 }
 0x67d   : > { %5570 = vmatpush3.bf16.msra.mxu0 %v5921_v37 }
 0x67e   : > { %5571 = vmatprep.subr.bf16.mxu0 %v6149_v0 }
 0x681   : > { %5572 = vmatpush3.bf16.msra.mxu0 %v5924_v40 }
 0x682   : > { %5573 = vmatprep.subr.bf16.mxu0 %v6149_v0 }
 0x685   : > { %5574 = vmatpush3.bf16.msra.mxu0 %v5927_v44 }
 0x686   : > { %5575 = vmatprep.subr.bf16.mxu0 %v6149_v0 }
 0x689   : > { %5576 = vmatpush3.bf16.msra.mxu0 %v5930_v48  ;;  %v4165_v48 = vsel %vm6504_vm9, 0, %v4164_v46 }
 0x68a   : > { %5581 = vmatprep.subr.bf16.mxu0 %v6149_v0  ;;  %4166 = vst [vmem:[#allocation10] sm:$0x1] %v4165_v48 }
 0x704   : > { %v3630_v56 = vpop.f32.mrf.mxu1 }
 0x706   : > { %v5539_v59 = vpop.f32.mrf.mxu1 }
 0x707   : > { %v5942_v59 = vld [vmem:[#allocation18 + $0xa8] sm:$0xff]  }
 0x708   : > { %v3633_v61 = vpop.f32.mrf.mxu1 }
 0x709   : > { %v5943_v61 = vld [vmem:[#allocation18 + $0x70] sm:$0xff]  }
 0x70a   : > { %v5540_v62 = vpop.f32.mrf.mxu1 }
 0x70b   : > { %v5944_v62 = vld [vmem:[#allocation18 + $0x30] sm:$0xff]  }
 0x70c   : > { %v5298_v1 = vpop.f32.mrf.mxu0 }
 0x70e   : > { %v5299_v2 = vpop.f32.mrf.mxu0 }
 0x70f   : > { %v5300_v5 = vadd.f32 %v5299_v2, %v5298_v1  ;;  %v5945_v1 = vld [vmem:[#allocation18 + $0xa0] sm:$0xff]   ;;  %v5946_v2 = vld [vmem:[#allocation18 + $0x68] sm:$0xff]  }
 0x710   : > { %v5301_v3 = vpop.f32.mrf.mxu0 }
 0x711   : > { %v3591_v20 = vadd.f32 %v5300_v5, %v4969_v6  ;;  %v5947_v3 = vld [vmem:[#allocation18 + $0x28] sm:$0xff]   ;;  %v5949_v5 = vld [vmem:[#allocation18 + $0x60] sm:$0xff]  }
 0x712   : > { %v5302_v4 = vpop.f32.mrf.mxu0  ;;  %v5950_v6 = vld [vmem:[#allocation18 + $0x20] sm:$0xff]  }
 0x713   : > { %v3631_v7 = vadd.f32 %v3630_v56, %v3591_v20  ;;  %v5941_v56 = vld [vmem:[#allocation18 + $0x38] sm:$0xff]   ;;  %v5951_v20 = vld [vmem:[#allocation18 + $0x90] sm:$0xff]  }
 0x714   : > { %v5948_v4 = vld [vmem:[#allocation18 + $0x98] sm:$0xff]  }
 0x72c   : > { %v3807_v12 = vpop.f32.mrf.mxu0 }
 0x72d   : > { %v3808_v8 = vadd.f32 %v5001_v52, %v3807_v12  ;;  %v5952_v52 = vld [vmem:[#allocation18 + $0x58] sm:$0xff]  }
 0x72e   : > { %v5559_v9 = vpop.f32.mrf.mxu0  ;;  %v5953_v12 = vld [vmem:[#allocation18 + $0x18] sm:$0xff]  }
 0x72f   : > { %v3813_v10 = vadd.f32 %v3808_v8, %v3631_v7  ;;  %v5954_v7 = vld [vmem:[#allocation18 + $0x88] sm:$0xff]   ;;  %v5955_v8 = vld [vmem:[#allocation18 + $0x50] sm:$0xff]  }
 0x730   : > { %v3810_v11 = vpop.f32.mrf.mxu0  ;;  %v5956_v9 = vld [vmem:[#allocation18 + $0x10] sm:$0xff]  }
 0x731   : > { %v3814_v13 = vmax.f32 %v3813_v10, 0.0  ;;  %v5957_v10 = vld [vmem:[#allocation18 + $0x80] sm:$0xff]   ;;  %v5958_v11 = vld [vmem:[#allocation18 + $0x48] sm:$0xff]  }
 0x732   : > { %v5560_v14 = vpop.f32.mrf.mxu0 }
 0x733   : > { %v5085_v15 = vpack.c.bf16 %v3814_v13, %v3814_v13  ;;  %v5959_v13 = vld [vmem:[#allocation18 + $0x8] sm:$0xff]   ;;  %v5961_v14 = vld [vmem:[#allocation18 + $0x40] sm:$0xff]  }
 0x735   : > { %v3826_v16 = vshrl.u32 %v5085_v15, 16  ;;  %v3829_v18 = vshll.u32 %v5085_v15, 16  ;;  %v5962_v15 = vld [vmem:[#allocation18] sm:$0xff]  }
 0x737   : > { %v3828_v17 = vrot.slane %v3826_v16, 7 }
 0x739   : > { %v3831_v36 = vor.u32 %v3829_v18, %v3828_v17  ;;  %v3832_v21 = vrot.slane %v3828_v17, 4 }
 0x73b   : > { %v3836_v54 = vsel %vm6601_vm13, %v3831_v36, %v3835_v19  ;;  %v3839_v58 = vsel %vm6504_vm9, %v3832_v21, %v3838_v57  ;;  %v5012_v36 = vld [vmem:[%s7355_s18] ss:$0 sm:$0xff] }
 0x73c   : > { %3837 = vst [vmem:[#allocation9] sm:$0xf] %v3836_v54  ;;  %3840 = vst [vmem:[#allocation9 + $0x4] sm:$0x1] %v3839_v58 }
 0x743   : > { %v3841_v22 = vld [vmem:[#allocation9] sm:$0xf]  ;;  %v3844_v24 = vld [vmem:[#allocation9 + $0x4] sm:$0x1] }
 0x744   : > { %v3843_v23 = vld [vmem:[#allocation9] sm:$0xf]  ;;  %3842 = vst [vmem:[#allocation2] sm:$0xf] %v3841_v22  ;;  %v3862_v28 = vld [vmem:[#allocation9 + $0x4] sm:$0x1] }
 0x745   : > { %v3846_v25 = vshrl.u32 %v3843_v23, 16  ;;  %v3849_v26 = vshll.u32 %v3843_v23, 16  ;;  %v3861_v27 = vld [vmem:[#allocation9] sm:$0xe]  ;;  %v3855_v32 = vshll.u32 %v3844_v24, 16  ;;  %v3867_v33 = vrot.slane %v3862_v28, 5 }
 0x746   : > { %v5011_v29 = vrot.slane %v3861_v27, 9 }
 0x747   : > { %v3848_v30 = vrot.slane %v3846_v25, 4  ;;  %v3851_v31 = vrot.slane %v3849_v26, 5  ;;  %v3857_v38 = vrot.slane %v3855_v32, 5 }
 0x748   : > { %v3868_v35 = vsel %vm6481_vm5, %v5011_v29, %v3867_v33 }
 0x749   : > { %v3852_v34 = vor.u32 %v3851_v31, %v3848_v30  ;;  %3870 = vst [vmem:[#allocation2 + $0x8] sm:$0xf] %v3868_v35  ;;  %v4184_v30 = vld [vmem:[#allocation10] sm:$0xf]  ;;  %v4187_v31 = vld [vmem:[#allocation10 + $0x4] sm:$0x1] }
 0x74b   : > { %v3853_v37 = vrot.slane %v3852_v34, 4 }
 0x74d   : > { %v3858_v39 = vsel %vm6488_vm6, %v3853_v37, %v3857_v38 }
 0x74e   : > { %3860 = vst [vmem:[#allocation2 + $0x4] sm:$0xf] %v3858_v39 }
 0x750   : > { %v5933_v40 = vld [vmem:[#allocation2 + $0x8] ss:$0 sps:$4 sm:$0xff]  }
 0x751   : > { %5578 = vmatmul.mubr.bf16.vlgmr.msra.gmra.mxu0 %v5933_v40 }
 0x752   : > { %5597 = vmatprep.mubr.msk.bf16.mxu0 %vm6150_vm0, %v6149_v0  ;;  %5582 = vmatpush3.bf16.msra.mxu0 %v5938_v50 }
 0x753   : > { %5583 = vmatprep.subr.bf16.mxu0 %v6149_v0 }
 0x755   : > { %v3871_v41 = vld [vmem:[#allocation2] sm:$0xff] }
 0x756   : > { %v5014_v42 = vcombine.high %v3871_v41, %v3871_v41  ;;  %v5013_v44 = vcombine.low %v3871_v41, %v3871_v41  ;;  %5584 = vmatpush3.bf16.msra.mxu0 %v5939_v53 }
 0x757   : > { %5585 = vmatprep.subr.bf16.mxu0 %v6149_v0 }
 0x758   : > { %4115 = vmatprep.mubr.bf16.mxu1 %v5014_v42 }
 0x759   : > { %4116 = vmatmul.mubr.bf16.vlgmr.msra.gmra.mxu1 %v5013_v44 }
 0x75a   : > { %5354 = vmatpush3.bf16.msra.mxu1 %v5941_v56  ;;  %5586 = vmatpush3.bf16.msra.mxu0 %v5942_v59 }
 0x75b   : > { %5587 = vmatprep.subr.bf16.mxu0 %v6149_v0  ;;  %5355 = vmatprep.subr.bf16.mxu1 %v5943_v61 }
 0x75e   : > { %5356 = vmatpush3.bf16.msra.mxu1 %v5944_v62  ;;  %5588 = vmatpush3.bf16.msra.mxu0 %v5945_v1 }
 0x75f   : > { %5589 = vmatprep.subr.bf16.mxu0 %v6149_v0  ;;  %5357 = vmatprep.subr.bf16.mxu1 %v5946_v2 }
 0x762   : > { %5358 = vmatpush3.bf16.msra.mxu1 %v5947_v3  ;;  %5590 = vmatpush3.bf16.msra.mxu0 %v5948_v4  ;;  %v4524_v4 = vld [vmem:[#allocation11] sm:$0x1] }
 0x763   : > { %5591 = vmatprep.subr.bf16.mxu0 %v6149_v0  ;;  %5359 = vmatprep.subr.bf16.mxu1 %v5949_v5  ;;  %v4525_v5 = vsel %vm6504_vm9, 0, %v4524_v4 }
 0x764   : > { %4526 = vst [vmem:[#allocation11] sm:$0x1] %v4525_v5 }
 0x766   : > { %5360 = vmatpush3.bf16.msra.mxu1 %v5950_v6  ;;  %5592 = vmatpush3.bf16.msra.mxu0 %v5951_v20  ;;  %v4578_v6 = vld [vmem:[%s7358_s21 + $0x78] sm:$0xff]  ;;  %v4577_v20 = vld [vmem:[%s7358_s21 + $0x70] sm:$0xff] }
 0x767   : > { %5593 = vmatprep.subr.bf16.mxu0 %v6149_v0  ;;  %5361 = vmatprep.subr.bf16.mxu1 %v5952_v52  ;;  %v4576_v52 = vld [vmem:[%s7358_s21 + $0x68] sm:$0xff] }
 0x76a   : > { %5362 = vmatpush3.bf16.msra.mxu1 %v5953_v12  ;;  %5594 = vmatpush3.bf16.msra.mxu0 %v5954_v7  ;;  %v4574_v12 = vld [vmem:[%s7358_s21 + $0x58] sm:$0xff]  ;;  %v4573_v7 = vld [vmem:[%s7358_s21 + $0x50] sm:$0xff] }
 0x76b   : > { %5363 = vmatprep.subr.bf16.mxu1 %v5955_v8  ;;  %5595 = vmatprep.subr.bf16.mxu0 %v6149_v0  ;;  %v4572_v8 = vld [vmem:[%s7358_s21 + $0x48] sm:$0xff] }
 0x76e   : > { %5364 = vmatpush3.bf16.msra.mxu1 %v5956_v9  ;;  %5596 = vmatpush3.bf16.msra.mxu0 %v5957_v10  ;;  %v4571_v9 = vld [vmem:[%s7358_s21 + $0x40] sm:$0xff]  ;;  %v4570_v10 = vld [vmem:[%s7358_s21 + $0x38] sm:$0xff] }
 0x76f   : > { %5365 = vmatprep.subr.bf16.mxu1 %v5958_v11  ;;  %v4569_v11 = vld [vmem:[%s7358_s21 + $0x30] sm:$0xff] }
 0x772   : > { %5366 = vmatpush3.bf16.msra.mxu1 %v5959_v13  ;;  %v4568_v13 = vld [vmem:[%s7358_s21 + $0x28] sm:$0xff] }
 0x773   : > { %5367 = vmatprep.subr.bf16.mxu1 %v5961_v14  ;;  %v4567_v14 = vld [vmem:[%s7358_s21 + $0x20] sm:$0xff] }
 0x776   : > { %5368 = vmatpush3.bf16.msra.mxu1 %v5962_v15  ;;  %v4566_v15 = vld [vmem:[%s7358_s21 + $0x18] sm:$0xff] }
 0x777   : > { %5601 = vmatprep.subr.mxu1 %v6149_v0 }
 0x811   : > { %v4157_v16 = vpop.f32.mrf.mxu0 }
 0x813   : > { %v5579_v17 = vpop.f32.mrf.mxu0 }
 0x814   : > { %v4564_v17 = vld [vmem:[%s7358_s21 + $0x8] sm:$0xff] }
 0x815   : > { %v4160_v18 = vpop.f32.mrf.mxu0 }
 0x816   : > { %v4563_v18 = vld [vmem:[%s7358_s21] sm:$0xff] }
 0x817   : > { %v5580_v19 = vpop.f32.mrf.mxu0 }
 0x819   : > { %v5338_v57 = vpop.f32.mrf.mxu1 }
 0x81b   : > { %v5339_v21 = vpop.f32.mrf.mxu1 }
 0x81c   : > { %v5340_v54 = vadd.f32 %v5339_v21, %v5338_v57  ;;  %v4513_v21 = vld [vmem:[#allocation9 + $0x4] sm:$0x1] }
 0x81d   : > { %v5341_v58 = vpop.f32.mrf.mxu1 }
 0x81e   : > { %v4118_v22 = vadd.f32 %v5340_v54, %v5012_v36  ;;  %v4512_v36 = vld [vmem:[#allocation9] sm:$0xf] }
 0x81f   : > { %v5342_v23 = vpop.f32.mrf.mxu1 }
 0x820   : > { %v4158_v24 = vadd.f32 %v4157_v16, %v4118_v22  ;;  %v4565_v16 = vld [vmem:[%s7358_s21 + $0x10] sm:$0xff]  ;;  %v4514_v23 = vunpack.c.l.bf16 %v4512_v36 }
 0x822   : > { %v4163_v25 = vmax.f32 %v4158_v24, 0.0  ;;  %v4515_v24 = vunpack.c.l.bf16 %v4513_v21 }
 0x824   : > { %v5086_v26 = vpack.c.bf16 %v4163_v25, %v4163_v25  ;;  %v5042_v25 = vld [vmem:[%s7357_s20] ss:$0 sm:$0xff] }
 0x826   : > { %v4175_v27 = vshrl.u32 %v5086_v26, 16  ;;  %v4178_v29 = vshll.u32 %v5086_v26, 16 }
 0x828   : > { %v4177_v28 = vrot.slane %v4175_v27, 7 }
 0x82a   : > { %v4180_v32 = vor.u32 %v4178_v29, %v4177_v28  ;;  %v4181_v33 = vrot.slane %v4177_v28, 4  ;;  %v4518_v28 = vrot.slane %v4514_v23, 1  ;;  %v4519_v29 = vrot.slane %v4515_v24, 1 }
 0x82c   : > { %v4185_v34 = vsel %vm6601_vm13, %v4180_v32, %v4184_v30  ;;  %v4188_v35 = vsel %vm6504_vm9, %v4181_v33, %v4187_v31  ;;  %v4520_v33 = vsel %vm1933_vm2, %v4518_v28, %v4519_v29 }
 0x82d   : > { %4186 = vst [vmem:[#allocation10] sm:$0xf] %v4185_v34  ;;  %4189 = vst [vmem:[#allocation10 + $0x4] sm:$0x1] %v4188_v35 }
 0x834   : > { %v4190_v37 = vld [vmem:[#allocation10] sm:$0xf]  ;;  %v4193_v39 = vld [vmem:[#allocation10 + $0x4] sm:$0x1] }
 0x835   : > { %v4192_v38 = vld [vmem:[#allocation10] sm:$0xf]  ;;  %4191 = vst [vmem:[#allocation2] sm:$0xf] %v4190_v37  ;;  %v4211_v44 = vld [vmem:[#allocation10 + $0x4] sm:$0x1] }
 0x836   : > { %v4195_v40 = vshrl.u32 %v4192_v38, 16  ;;  %v4198_v41 = vshll.u32 %v4192_v38, 16  ;;  %v4210_v42 = vld [vmem:[#allocation10] sm:$0xe]  ;;  %v4204_v49 = vshll.u32 %v4193_v39, 16  ;;  %v4216_v50 = vrot.slane %v4211_v44, 5 }
 0x837   : > { %v5041_v46 = vrot.slane %v4210_v42, 9  ;;  %v4547_v42 = vld [vmem:[#allocation11 + $0x4] sm:$0x1] }
 0x838   : > { %v4197_v47 = vrot.slane %v4195_v40, 4  ;;  %v4200_v48 = vrot.slane %v4198_v41, 5  ;;  %v4206_v59 = vrot.slane %v4204_v49, 5  ;;  %v4544_v41 = vld [vmem:[#allocation11] sm:$0xf] }
 0x839   : > { %v4217_v55 = vsel %vm6481_vm5, %v5041_v46, %v4216_v50  ;;  %vm4650_vm5 = vcmask 73728  }
 0x83a   : > { %v4201_v53 = vor.u32 %v4200_v48, %v4197_v47  ;;  %4219 = vst [vmem:[#allocation2 + $0x8] sm:$0xf] %v4217_v55 }
 0x83c   : > { %v4202_v56 = vrot.slane %v4201_v53, 4 }
 0x83e   : > { %v4207_v61 = vsel %vm6488_vm6, %v4202_v56, %v4206_v59 }
 0x83f   : > { %4209 = vst [vmem:[#allocation2 + $0x4] sm:$0xf] %v4207_v61 }
 0x841   : > { %v5960_v62 = vld [vmem:[#allocation2 + $0x8] ss:$0 sps:$4 sm:$0xff]  }
 0x842   : > { %5598 = vmatmul.mubr.bf16.vlgmr.msra.gmra.mxu0 %v5960_v62 }
 0x846   : > { %v4220_v1 = vld [vmem:[#allocation2] sm:$0xff] }
 0x847   : > { %v5043_v2 = vcombine.low %v4220_v1, %v4220_v1  ;;  %v5044_v3 = vcombine.high %v4220_v1, %v4220_v1 }
 0x849   : > { %4464 = vmatprep.mubr.bf16.mxu1 %v5044_v3 }
 0x84a   : > { %4465 = vmatmul.mubr.bf16.vlgmr.msra.gmra.mxu1 %v5043_v2 }
 0x84b   : > { %5633 = vmatprep.mubr.msk.f32.mxu1 %vm6150_vm0, %v6149_v0  ;;  %5602 = vmatpush3.msra.mxu1 %v4578_v6  ;;  %vm4554_vm0 = vcmask 1041408  }
 0x84c   : > { %5603 = vmatprep.subr.mxu1 %v6149_v0 }
 0x84d   : > { %5604 = vmatpush3.msra.mxu1 %v4577_v20 }
 0x84e   : > { %5605 = vmatprep.subr.mxu1 %v6149_v0 }
 0x84f   : > { %5606 = vmatpush3.msra.mxu1 %v4576_v52 }
 0x850   : > { %5607 = vmatprep.subr.mxu1 %v6149_v0 }
 0x851   : > { %5608 = vmatpush3.msra.mxu1 %v4575_v63 }
 0x852   : > { %5609 = vmatprep.subr.mxu1 %v6149_v0 }
 0x853   : > { %5610 = vmatpush3.msra.mxu1 %v4574_v12 }
 0x854   : > { %5611 = vmatprep.subr.mxu1 %v6149_v0 }
 0x855   : > { %5612 = vmatpush3.msra.mxu1 %v4573_v7 }
 0x856   : > { %5613 = vmatprep.subr.mxu1 %v6149_v0 }
 0x857   : > { %5614 = vmatpush3.msra.mxu1 %v4572_v8 }
 0x858   : > { %5615 = vmatprep.subr.mxu1 %v6149_v0 }
 0x859   : > { %5616 = vmatpush3.msra.mxu1 %v4571_v9 }
 0x85a   : > { %5617 = vmatprep.subr.mxu1 %v6149_v0 }
 0x85b   : > { %5618 = vmatpush3.msra.mxu1 %v4570_v10 }
 0x85c   : > { %5619 = vmatprep.subr.mxu1 %v6149_v0 }
 0x85d   : > { %5620 = vmatpush3.msra.mxu1 %v4569_v11 }
 0x85e   : > { %5621 = vmatprep.subr.mxu1 %v6149_v0 }
 0x85f   : > { %5622 = vmatpush3.msra.mxu1 %v4568_v13 }
 0x860   : > { %5623 = vmatprep.subr.mxu1 %v6149_v0 }
 0x861   : > { %5624 = vmatpush3.msra.mxu1 %v4567_v14 }
 0x862   : > { %5625 = vmatprep.subr.mxu1 %v6149_v0 }
 0x863   : > { %5626 = vmatpush3.msra.mxu1 %v4566_v15 }
 0x864   : > { %5627 = vmatprep.subr.mxu1 %v6149_v0 }
 0x865   : > { %5628 = vmatpush3.msra.mxu1 %v4565_v16 }
 0x866   : > { %5629 = vmatprep.subr.mxu1 %v6149_v0 }
 0x867   : > { %5630 = vmatpush3.msra.mxu1 %v4564_v17 }
 0x868   : > { %5631 = vmatprep.subr.mxu1 %v6149_v0 }
 0x869   : > { %5632 = vmatpush3.msra.mxu1 %v4563_v18 }
 0x902   : > { %v4506_v19 = vpop.f32.mrf.mxu0 }
 0x904   : > { %v5599_v57 = vpop.f32.mrf.mxu0 }
 0x906   : > { %v4509_v54 = vpop.f32.mrf.mxu0 }
 0x908   : > { %v5600_v58 = vpop.f32.mrf.mxu0 }
 0x90a   : > { %v5369_v22 = vpop.f32.mrf.mxu1 }
 0x90c   : > { %v5370_v26 = vpop.f32.mrf.mxu1 }
 0x90d   : > { %v5371_v27 = vadd.f32 %v5370_v26, %v5369_v22 }
 0x90e   : > { %v5372_v30 = vpop.f32.mrf.mxu1 }
 0x90f   : > { %v4467_v0 = vadd.f32 %v5371_v27, %v5042_v25 }
 0x910   : > { %v5373_v31 = vpop.f32.mrf.mxu1 }
 0x911   : > { %v4507_v32 = vadd.f32 %v4506_v19, %v4467_v0 }
 0x913   : > { %v4522_v34 = vadd.f32 %v4520_v33, %v4507_v32 }
 0x915   : > { %v4523_v35 = vmax.f32 %v4522_v34, 0.0 }
 0x917   : > { %v5087_v37 = vpack.c.bf16 %v4523_v35, %v4523_v35 }
 0x919   : > { %v4535_v38 = vshrl.u32 %v5087_v37, 16  ;;  %v4538_v40 = vshll.u32 %v5087_v37, 16 }
 0x91b   : > { %v4537_v39 = vrot.slane %v4535_v38, 7 }
 0x91d   : > { %v4540_v44 = vor.u32 %v4538_v40, %v4537_v39  ;;  %v4541_v46 = vrot.slane %v4537_v39, 4 }
 0x91f   : > { %v4545_v47 = vsel %vm6601_vm13, %v4540_v44, %v4544_v41  ;;  %v4548_v48 = vsel %vm6504_vm9, %v4541_v46, %v4547_v42 }
 0x920   : > { %4546 = vst [vmem:[#allocation11] sm:$0xf] %v4545_v47  ;;  %4549 = vst [vmem:[#allocation11 + $0x4] sm:$0x1] %v4548_v48 }
 0x927   : > { %v4550_v49 = vld [vmem:[#allocation11] sm:$0xf]  ;;  %v4551_v50 = vld [vmem:[#allocation11 + $0x4] sm:$0x1] }
 0x928   : > { %v4552_v53 = vunpack.c.l.bf16 %v4550_v49  ;;  %v4553_v55 = vunpack.c.l.bf16 %v4551_v50 }
 0x92a   : > { %v4555_v56 = vsel %vm4554_vm0, %v4553_v55, 0.0 }
 0x92b   : > { %v4556_v59 = vadd.f32 %v4555_v56, %v4552_v53 }
 0x92d   : > { %v4557_v61 = vrot.slane %v4556_v59, 4 }
 0x92f   : > { %v4558_v62 = vadd.f32 %v4557_v61, %v4556_v59 }
 0x931   : > { %v4559_v1 = vrot.slane %v4558_v62, 2 }
 0x933   : > { %v4560_v2 = vadd.f32 %v4559_v1, %v4558_v62 }
 0x935   : > { %v4561_v51 = vrot.slane %v4560_v2, 1 }
 0x937   : > { %v4562_v3 = vadd.f32 %v4561_v51, %v4560_v2 }
 0x939   : > { %5634 = vmatmul.mubr.f32.vlgmr.msra.gmra.mxu1 %v4562_v3 }
 0x9f9   : > { %v4646_v4 = vpop.f32.mrf.mxu1 }
 0x9fa   : > { %v4647_v43 = vadd.f32 %v4646_v4, %v4579_v60 }
 0x9fb   : > { %v5635_v5 = vpop.f32.mrf.mxu1 }
 0x9fc   : > { %4651 = vst.msk [vmem:[%s761_s29] sm:$0x1] %vm4650_vm5, %v4647_v43 }
 0x9fd   : > { %6082 = shalt.err (!%p6079_p11)
}
 0x9fe   : > { %s6083_s0 = scalar_lea.hbm %s7302_s4, 16  ;;  %s6087_s15 = scalar_lea.hbm %s7360_s23, 32 }
 0x9ff   : > { %p6084_p0 = scmp.ne.s32.totalorder %s7302_s4, %s6083_s0  ;;  %p6088_p3 = scmp.lt.s32.totalorder %s7302_s4, %s7360_s23 }
 0xa00   : > { %p6089_p9 = scmp.lt.s32.totalorder %s6087_s15, %s6083_s0 }
 0xa01   : > { %p6085_p2 = pnand %p6084_p0, %p6310_p5 }
 0xa02   : > { %p6090_p10 = por %p6089_p9, %p6088_p3 }
 0xa03   : > { %p6086_p1 = pneg %p6085_p2 }
 0xa05   : > { %p6091_p12 = pnand %p6090_p10, %p6086_p1 }
 0xa07   : > { %6094 = shalt.err (!%p6091_p12)
}
 0xa08   : > { %5653 = dma.vmem_to_hbm [thread:$0]  (%p6310_p5), %s4666_s13, 16, %s7302_s4, %s4653_s24  }
 0xa09 PF: > { %s7428_s2 = sld [smem:[#allocation27_spill]] }
 0xa0a   : > { %s7429_s28 = sld [smem:[#allocation25_spill]] }
 0xa0f   : > { %p5680_p13 = scmp.ge.s32.totalorder %s7428_s2, 2 }
 0xa10   : > { %s4677_s3 = sand.u32 1, %s7429_s28  }
 0xa11   : > { %p5669_p4 = pnand %p5680_p13, %p6314_p6  ;;  %s4678_s1 = scalar_lea.sflag [#allocation14], %s4677_s3 }
 0xa13   : > { %p5670_p7 = pneg %p5669_p4 }
 0xa15   : > { %6124 = dma.done.wait (%p5670_p7), %s4678_s1, 16  }
 0xa16   : > { %6126 = vsyncadd (%p5670_p7), %s4678_s1, 4294967280  ;;  %s7431_s25 = sld [smem:[#allocation28_spill]]  ;;  %s7434_s4 = smov %s6133_s30 }
 0xa17   : > { %s7432_s0 = sld [smem:[#allocation26_spill]] }
 0xa18   : > { %s7433_s24 = sld [smem:[#allocation29_spill]] }
 0xa1c   : > { %p36_p8 = scmp.ge.s32.totalorder %s7431_s25, 4  }
 0xa1d   : > { %s7435_s30 = smov %s7432_s0 }
 0xa1e   :  { %38 = sbr.rel (!%p36_p8) target bundleno = 17 (0x11), region = 164 }
 0xa23   :  { %4682 = vsyncpa [#allocation13], 1 }
 0xa24   :  { %4684 = vsyncpa [#allocation13 + $0x1], 1 }
 0xa25   :  { %4685 = vsyncpa [#allocation16], 1 }
 0xa26   :  { %4686 = vsyncpa [#allocation19], 1 }
 0xa27   :  { %4687 = vsyncpa [#allocation14], 1 }
 0xa28   :  { %4689 = vsyncpa [#allocation14 + $0x1], 1 }

</bundles_post_ra>
